<compile_context>
chip_gen: v6e
topology: v6e:2x2x1
jax: 0.10.0
libtpu: 0.0.40
codegen_flags: <defaults>
</compile_context>

<pallas_src>
import jax
import jax.numpy as jnp
from jax import lax
from jax.experimental import pallas as pl
from jax.experimental.pallas import tpu as pltpu


# --------------------------- Kernel A: attention + gating + gi hoist ---------
def _attn_gate_kernel(Pk_ref, Pq_ref, wq_t_ref, bq_ref, wp_t_ref, bp_ref,
                      ws_ref, wg_p_t_ref, wg_c_t_ref, bg_ref,
                      wih_l_t_ref, bih_l_ref, wih_r_t_ref, bih_r_ref,
                      gi_l_ref, gi_r_ref):
    B, T, H = Pk_ref.shape
    TQ = Pq_ref.shape[1]

    P = Pk_ref[...]                         # (B, T, H)   keys / values
    p_blk = Pq_ref[...]                     # (B, TQ, H)  query block (window of P)

    # Key projection wq(P): one (B*T, H) @ (H, H) MXU matmul.
    wqP = (jnp.dot(P.reshape(B * T, H), wq_t_ref[...],
                   preferred_element_type=jnp.float32)
           + bq_ref[...]).reshape(B, T, H)

    # Query projection wp(p_i) for the whole block: (B*TQ, H) @ (H, H).
    p2 = p_blk.reshape(B * TQ, H)
    wpP = (jnp.dot(p2, wp_t_ref[...], preferred_element_type=jnp.float32)
           + bp_ref[...]).reshape(B, TQ, H)

    # Additive-attention scores for every (query, key) pair in the block.
    scores = jnp.tanh(wqP[:, None, :, :] + wpP[:, :, None, :])      # (B, TQ, T, H)
    e = jnp.sum(scores * ws_ref[...][None, None, :, :], axis=-1)    # (B, TQ, T)
    # (ws bias dropped: a constant shift of every logit is softmax-invariant)

    e = e - jnp.max(e, axis=-1, keepdims=True)                      # stable softmax
    ex = jnp.exp(e)
    attn = ex / jnp.sum(ex, axis=-1, keepdims=True)                 # softmax over keys

    # Context: batched (B, TQ, T) @ (B, T, H) -> (B, TQ, H) on the MXU.
    c = lax.dot_general(attn, P, (((2,), (1,)), ((0,), (0,))),
                        preferred_element_type=jnp.float32)
    c2 = c.reshape(B * TQ, H)

    # Gate g = sigmoid(wg([p, c])) as two (B*TQ, H) @ (H, H) matmuls.
    g = jax.nn.sigmoid(
        jnp.dot(p2, wg_p_t_ref[...], preferred_element_type=jnp.float32)
        + jnp.dot(c2, wg_c_t_ref[...], preferred_element_type=jnp.float32)
        + bg_ref[...])
    cg = (g * c2).reshape(B, TQ, H)                                 # gated context

    # Time-major rows so the hoisted GRU input-gate matmuls land directly in the
    # (TQ, B, 3H) output layout the sequential kernel wants.
    cg_t = jnp.transpose(cg, (1, 0, 2)).reshape(TQ * B, H)
    gi_l_ref[...] = (jnp.dot(cg_t, wih_l_t_ref[...],
                             preferred_element_type=jnp.float32)
                     + bih_l_ref[...]).reshape(TQ, B, 3 * H)
    gi_r_ref[...] = (jnp.dot(cg_t, wih_r_t_ref[...],
                             preferred_element_type=jnp.float32)
                     + bih_r_ref[...]).reshape(TQ, B, 3 * H)


# --------------------------- Kernel B: the two GRU recurrences ---------------
def _bigru_kernel(gi_l_ref, gi_r_ref, whh_l_t_ref, bhh_l_ref,
                  whh_r_t_ref, bhh_r_ref, out_ref, hl_scr, hr_scr):
    T, B, H3 = gi_l_ref.shape
    H = H3 // 3

    # Hoist loop-invariant weight loads.
    whh_l_t = whh_l_t_ref[...]
    bhh_l = bhh_l_ref[...]
    whh_r_t = whh_r_t_ref[...]
    bhh_r = bhh_r_ref[...]
    h0 = jnp.zeros((B, H), jnp.float32)

    def gru_step(gi, h, whh_t, bhh):
        # PyTorch nn.GRUCell, gate order (r, z, n); input-gate matmul was hoisted.
        gh = jnp.dot(h, whh_t, preferred_element_type=jnp.float32) + bhh
        r = jax.nn.sigmoid(gi[:, 0 * H:1 * H] + gh[:, 0 * H:1 * H])
        z = jax.nn.sigmoid(gi[:, 1 * H:2 * H] + gh[:, 1 * H:2 * H])
        n = jnp.tanh(gi[:, 2 * H:3 * H] + r * gh[:, 2 * H:3 * H])
        return (1.0 - z) * n + z * h

    def fwd(i, h):
        h_new = gru_step(gi_l_ref[i], h, whh_l_t, bhh_l)
        hl_scr[i] = h_new
        return h_new

    lax.fori_loop(0, T, fwd, h0, unroll=True)

    def bwd(j, h):
        i = T - 1 - j
        h_new = gru_step(gi_r_ref[i], h, whh_r_t, bhh_r)
        hr_scr[i] = h_new
        return h_new

    lax.fori_loop(0, T, bwd, h0, unroll=True)

    # Single lane-dense (T, B, 2H) store: [out_l | out_r].
    out_ref[...] = jnp.concatenate([hl_scr[...], hr_scr[...]], axis=-1)


# --------------------------------- wrapper -----------------------------------
def self_matching_forward(P, params):
    B, T, H = P.shape
    P = P.astype(jnp.float32)

    # Query-block size for the parallel attention/gating phase.
    tq = 128 if (T % 128 == 0) else T
    num_q = T // tq

    def full_spec(x):
        nd = x.ndim
        return pl.BlockSpec(x.shape, lambda q, nd=nd: (0,) * nd)

    weights = (
        params["wq_w"].T, params["wq_b"][None, :],
        params["wp_w"].T, params["wp_b"][None, :],
        params["ws_w"],                                     # (1, H); bias dropped
        params["wg_w"][:, :H].T, params["wg_w"][:, H:].T, params["wg_b"][None, :],
        params["wih_l"].T, params["bih_l"][None, :],
        params["wih_r"].T, params["bih_r"][None, :],
    )
    attn_inputs = (P, P) + weights
    in_specs = [
        pl.BlockSpec((B, T, H), lambda q: (0, 0, 0)),       # full P (keys/values)
        pl.BlockSpec((B, tq, H), lambda q: (0, q, 0)),      # query-block window of P
    ] + [full_spec(w) for w in weights]

    gi_spec = pl.BlockSpec((tq, B, 3 * H), lambda q: (q, 0, 0))
    gi_l, gi_r = pl.pallas_call(
        _attn_gate_kernel,
        out_shape=(jax.ShapeDtypeStruct((T, B, 3 * H), jnp.float32),
                   jax.ShapeDtypeStruct((T, B, 3 * H), jnp.float32)),
        grid=(num_q,),
        in_specs=in_specs,
        out_specs=(gi_spec, gi_spec),
        compiler_params=pltpu.CompilerParams(
            dimension_semantics=("parallel",),
            vmem_limit_bytes=64 * 1024 * 1024),
    )(*attn_inputs)

    vmem = pl.BlockSpec(memory_space=pltpu.MemorySpace.VMEM)
    gru_inputs = (
        gi_l, gi_r,
        params["whh_l"].T, params["bhh_l"][None, :],
        params["whh_r"].T, params["bhh_r"][None, :],
    )
    out_tb = pl.pallas_call(
        _bigru_kernel,
        out_shape=jax.ShapeDtypeStruct((T, B, 2 * H), jnp.float32),
        in_specs=[vmem] * len(gru_inputs),
        out_specs=vmem,
        scratch_shapes=[pltpu.VMEM((T, B, H), jnp.float32),   # out_l rows
                        pltpu.VMEM((T, B, H), jnp.float32)],  # out_r rows
    )(*gru_inputs)

    return jnp.transpose(out_tb, (1, 0, 2))                   # (B, T, 2H)


# ------------------------ pure-JAX reference (for checking) ------------------
def _linear(x, w, b):
    return x @ w.T + b


def _gru_ref(x, h, wih, whh, bih, bhh, H):
    gi = _linear(x, wih, bih)
    gh = _linear(h, whh, bhh)
    r = jax.nn.sigmoid(gi[:, :H] + gh[:, :H])
    z = jax.nn.sigmoid(gi[:, H:2 * H] + gh[:, H:2 * H])
    n = jnp.tanh(gi[:, 2 * H:] + r * gh[:, 2 * H:])
    return (1.0 - z) * n + z * h


def reference_forward(P, params):
    B, T, H = P.shape
    hp_l = jnp.zeros((B, H), jnp.float32)
    hp_r = jnp.zeros((B, H), jnp.float32)
    c_list, out_l = [], []
    wqP = _linear(P.reshape(B * T, H), params["wq_w"], params["wq_b"]).reshape(B, T, H)
    for i in range(T):
        p = P[:, i, :]
        attn = wqP + _linear(p, params["wp_w"], params["wp_b"])[:, None, :]
        e = _linear(jnp.tanh(attn).reshape(B * T, H),
                    params["ws_w"], params["ws_b"]).reshape(B, T)
        a = jax.nn.softmax(e, axis=1)
        c = jnp.einsum("bt,bth->bh", a, P)
        g = jax.nn.sigmoid(_linear(jnp.concatenate([p, c], axis=1),
                                   params["wg_w"], params["wg_b"]))
        c = g * c
        c_list.append(c)
        hp_l = _gru_ref(c, hp_l, params["wih_l"], params["whh_l"],
                        params["bih_l"], params["bhh_l"], H)
        out_l.append(hp_l)
    out_r = [None] * T
    for i in range(T):
        c = c_list[T - i - 1]
        hp_r = _gru_ref(c, hp_r, params["wih_r"], params["whh_r"],
                        params["bih_r"], params["bhh_r"], H)
        out_r[T - i - 1] = hp_r
    return jnp.concatenate([jnp.stack(out_l, axis=1),
                            jnp.stack(out_r, axis=1)], axis=2)


# ------------------------------- params ---------------------------------------
def init_params(key, H):
    keys = jax.random.split(key, 16)
    scale = 1.0 / jnp.sqrt(jnp.float32(H))

    def u(k, shape):
        return jax.random.uniform(k, shape, jnp.float32, -1.0, 1.0) * scale

    return {
        "wq_w": u(keys[0], (H, H)),       "wq_b": u(keys[1], (H,)),
        "wp_w": u(keys[2], (H, H)),       "wp_b": u(keys[3], (H,)),
        "ws_w": u(keys[4], (1, H)),       "ws_b": u(keys[5], (1,)),
        "wg_w": u(keys[6], (H, 2 * H)),   "wg_b": u(keys[7], (H,)),
        "wih_l": u(keys[8], (3 * H, H)),  "whh_l": u(keys[9], (3 * H, H)),
        "bih_l": u(keys[10], (3 * H,)),   "bhh_l": u(keys[11], (3 * H,)),
        "wih_r": u(keys[12], (3 * H, H)), "whh_r": u(keys[13], (3 * H, H)),
        "bih_r": u(keys[14], (3 * H,)),   "bhh_r": u(keys[15], (3 * H,)),
    }
    # NOTE: AttentionLayer.wv exists in __init__ but is never used when v=None,
    # so it is intentionally omitted.


if __name__ == "__main__":
    B, T, H = 2, 8, 32
    key = jax.random.PRNGKey(0)
    k_p, k_w = jax.random.split(key)
    P = jax.random.normal(k_p, (B, T, H), jnp.float32)
    params = init_params(k_w, H)

    out = jax.jit(self_matching_forward)(P, params)
    out = jax.block_until_ready(out)
    assert out.shape == (B, T, 2 * H), out.shape

    ref = reference_forward(P, params)
    err = float(jnp.max(jnp.abs(out - ref)))
    assert err < 1e-4, f"max abs err {err}"
    print("KERNEL_OK")
</pallas_src>

<mosaic_0001>
module attributes {stable_mosaic.version = 11 : i64} {
  func.func @_attn_gate_kernel(%arg0: i32, %arg1: memref<2x8x32xf32, #tpu.memory_space<vmem>>, %arg2: memref<2x8x32xf32, #tpu.memory_space<vmem>>, %arg3: memref<32x32xf32, #tpu.memory_space<vmem>>, %arg4: memref<1x32xf32, #tpu.memory_space<vmem>>, %arg5: memref<32x32xf32, #tpu.memory_space<vmem>>, %arg6: memref<1x32xf32, #tpu.memory_space<vmem>>, %arg7: memref<1x32xf32, #tpu.memory_space<vmem>>, %arg8: memref<32x32xf32, #tpu.memory_space<vmem>>, %arg9: memref<32x32xf32, #tpu.memory_space<vmem>>, %arg10: memref<1x32xf32, #tpu.memory_space<vmem>>, %arg11: memref<32x96xf32, #tpu.memory_space<vmem>>, %arg12: memref<1x96xf32, #tpu.memory_space<vmem>>, %arg13: memref<32x96xf32, #tpu.memory_space<vmem>>, %arg14: memref<1x96xf32, #tpu.memory_space<vmem>>, %arg15: memref<8x2x96xf32, #tpu.memory_space<vmem>>, %arg16: memref<8x2x96xf32, #tpu.memory_space<vmem>>) attributes {dimension_semantics = [#tpu.dimension_semantics<parallel>], iteration_bounds = array<i64: 1>, scalar_prefetch = 0 : i64, scratch_operands = 0 : i64, tpu.core_type = #tpu.core_type<tc>, window_params = [{pipeline_mode = #tpu.pipeline_mode<synchronous>, transform_indices = @transform_0, window_bounds = array<i64: 2, 8, 32>}, {transform_indices = @transform_1, window_bounds = array<i64: 2, 8, 32>}, {pipeline_mode = #tpu.pipeline_mode<synchronous>, transform_indices = @transform_2, window_bounds = array<i64: 32, 32>}, {pipeline_mode = #tpu.pipeline_mode<synchronous>, transform_indices = @transform_3, window_bounds = array<i64: 1, 32>}, {pipeline_mode = #tpu.pipeline_mode<synchronous>, transform_indices = @transform_4, window_bounds = array<i64: 32, 32>}, {pipeline_mode = #tpu.pipeline_mode<synchronous>, transform_indices = @transform_5, window_bounds = array<i64: 1, 32>}, {pipeline_mode = #tpu.pipeline_mode<synchronous>, transform_indices = @transform_6, window_bounds = array<i64: 1, 32>}, {pipeline_mode = #tpu.pipeline_mode<synchronous>, transform_indices = @transform_7, window_bounds = array<i64: 32, 32>}, {pipeline_mode = #tpu.pipeline_mode<synchronous>, transform_indices = @transform_8, window_bounds = array<i64: 32, 32>}, {pipeline_mode = #tpu.pipeline_mode<synchronous>, transform_indices = @transform_9, window_bounds = array<i64: 1, 32>}, {pipeline_mode = #tpu.pipeline_mode<synchronous>, transform_indices = @transform_10, window_bounds = array<i64: 32, 96>}, {pipeline_mode = #tpu.pipeline_mode<synchronous>, transform_indices = @transform_11, window_bounds = array<i64: 1, 96>}, {pipeline_mode = #tpu.pipeline_mode<synchronous>, transform_indices = @transform_12, window_bounds = array<i64: 32, 96>}, {pipeline_mode = #tpu.pipeline_mode<synchronous>, transform_indices = @transform_13, window_bounds = array<i64: 1, 96>}, {transform_indices = @transform_14, window_bounds = array<i64: 8, 2, 96>}, {transform_indices = @transform_15, window_bounds = array<i64: 8, 2, 96>}]} {
    %c0 = arith.constant 0 : index
    %c0_0 = arith.constant 0 : index
    %c0_1 = arith.constant 0 : index
    %0 = vector.load %arg1[%c0, %c0_0, %c0_1] : memref<2x8x32xf32, #tpu.memory_space<vmem>>, vector<2x8x32xf32>
    %c0_2 = arith.constant 0 : index
    %c0_3 = arith.constant 0 : index
    %c0_4 = arith.constant 0 : index
    %1 = vector.load %arg2[%c0_2, %c0_3, %c0_4] : memref<2x8x32xf32, #tpu.memory_space<vmem>>, vector<2x8x32xf32>
    %2 = vector.shape_cast %0 : vector<2x8x32xf32> to vector<16x32xf32>
    %c0_5 = arith.constant 0 : index
    %c0_6 = arith.constant 0 : index
    %3 = vector.load %arg3[%c0_5, %c0_6] : memref<32x32xf32, #tpu.memory_space<vmem>>, vector<32x32xf32>
    %cst = arith.constant dense<0.000000e+00> : vector<16x32xf32>
    %4 = tpu.matmul %2, %3, %cst {dimension_numbers = #tpu.dot_dimension_numbers<[1], [0], [0], [1], [0, 0, 1, 1], [], []>} : vector<16x32xf32>, vector<32x32xf32>, vector<16x32xf32> -> vector<16x32xf32>
    %c0_7 = arith.constant 0 : index
    %c0_8 = arith.constant 0 : index
    %5 = vector.load %arg4[%c0_7, %c0_8] : memref<1x32xf32, #tpu.memory_space<vmem>>, vector<1x32xf32>
    %6 = vector.broadcast %5 : vector<1x32xf32> to vector<16x32xf32>
    %7 = arith.addf %4, %6 : vector<16x32xf32>
    %8 = vector.shape_cast %7 : vector<16x32xf32> to vector<2x8x32xf32>
    %9 = vector.shape_cast %1 : vector<2x8x32xf32> to vector<16x32xf32>
    %c0_9 = arith.constant 0 : index
    %c0_10 = arith.constant 0 : index
    %10 = vector.load %arg5[%c0_9, %c0_10] : memref<32x32xf32, #tpu.memory_space<vmem>>, vector<32x32xf32>
    %cst_11 = arith.constant dense<0.000000e+00> : vector<16x32xf32>
    %11 = tpu.matmul %9, %10, %cst_11 {dimension_numbers = #tpu.dot_dimension_numbers<[1], [0], [0], [1], [0, 0, 1, 1], [], []>} : vector<16x32xf32>, vector<32x32xf32>, vector<16x32xf32> -> vector<16x32xf32>
    %c0_12 = arith.constant 0 : index
    %c0_13 = arith.constant 0 : index
    %12 = vector.load %arg6[%c0_12, %c0_13] : memref<1x32xf32, #tpu.memory_space<vmem>>, vector<1x32xf32>
    %13 = vector.broadcast %12 : vector<1x32xf32> to vector<16x32xf32>
    %14 = arith.addf %11, %13 : vector<16x32xf32>
    %15 = vector.shape_cast %14 : vector<16x32xf32> to vector<2x8x32xf32>
    %16 = vector.shape_cast %8 : vector<2x8x32xf32> to vector<2x1x8x32xf32>
    %17 = vector.shape_cast %15 : vector<2x8x32xf32> to vector<2x8x1x32xf32>
    %18 = vector.broadcast %16 : vector<2x1x8x32xf32> to vector<2x8x8x32xf32>
    %19 = vector.broadcast %17 : vector<2x8x1x32xf32> to vector<2x8x8x32xf32>
    %20 = arith.addf %18, %19 : vector<2x8x8x32xf32>
    %21 = math.tanh %20 : vector<2x8x8x32xf32>
    %c0_14 = arith.constant 0 : index
    %c0_15 = arith.constant 0 : index
    %22 = vector.load %arg7[%c0_14, %c0_15] : memref<1x32xf32, #tpu.memory_space<vmem>>, vector<1x32xf32>
    %23 = vector.shape_cast %22 : vector<1x32xf32> to vector<1x1x1x32xf32>
    %24 = vector.broadcast %23 : vector<1x1x1x32xf32> to vector<2x8x8x32xf32>
    %25 = arith.mulf %21, %24 : vector<2x8x8x32xf32>
    %cst_16 = arith.constant dense<0.000000e+00> : vector<2x8x8xf32>
    %26 = vector.multi_reduction <add>, %25, %cst_16 [3] : vector<2x8x8x32xf32> to vector<2x8x8xf32>
    %cst_17 = arith.constant dense<0xFF800000> : vector<2x8xf32>
    %27 = vector.multi_reduction <maximumf>, %26, %cst_17 [2] : vector<2x8x8xf32> to vector<2x8xf32>
    %28 = vector.shape_cast %27 : vector<2x8xf32> to vector<2x8x1xf32>
    %29 = vector.broadcast %28 : vector<2x8x1xf32> to vector<2x8x8xf32>
    %30 = arith.subf %26, %29 : vector<2x8x8xf32>
    %31 = math.exp %30 : vector<2x8x8xf32>
    %cst_18 = arith.constant dense<0.000000e+00> : vector<2x8xf32>
    %32 = vector.multi_reduction <add>, %31, %cst_18 [2] : vector<2x8x8xf32> to vector<2x8xf32>
    %33 = vector.shape_cast %32 : vector<2x8xf32> to vector<2x8x1xf32>
    %34 = vector.broadcast %33 : vector<2x8x1xf32> to vector<2x8x8xf32>
    %35 = arith.divf %31, %34 : vector<2x8x8xf32>
    %cst_19 = arith.constant dense<0.000000e+00> : vector<2x8x32xf32>
    %36 = tpu.matmul %35, %0, %cst_19 {dimension_numbers = #tpu.dot_dimension_numbers<[2], [1], [1], [2], [0, 0, 0, 1, 1, 2], [0], [0]>} : vector<2x8x8xf32>, vector<2x8x32xf32>, vector<2x8x32xf32> -> vector<2x8x32xf32>
    %37 = vector.shape_cast %36 : vector<2x8x32xf32> to vector<16x32xf32>
    %c0_20 = arith.constant 0 : index
    %c0_21 = arith.constant 0 : index
    %38 = vector.load %arg8[%c0_20, %c0_21] : memref<32x32xf32, #tpu.memory_space<vmem>>, vector<32x32xf32>
    %cst_22 = arith.constant dense<0.000000e+00> : vector<16x32xf32>
    %39 = tpu.matmul %9, %38, %cst_22 {dimension_numbers = #tpu.dot_dimension_numbers<[1], [0], [0], [1], [0, 0, 1, 1], [], []>} : vector<16x32xf32>, vector<32x32xf32>, vector<16x32xf32> -> vector<16x32xf32>
    %c0_23 = arith.constant 0 : index
    %c0_24 = arith.constant 0 : index
    %40 = vector.load %arg9[%c0_23, %c0_24] : memref<32x32xf32, #tpu.memory_space<vmem>>, vector<32x32xf32>
    %cst_25 = arith.constant dense<0.000000e+00> : vector<16x32xf32>
    %41 = tpu.matmul %37, %40, %cst_25 {dimension_numbers = #tpu.dot_dimension_numbers<[1], [0], [0], [1], [0, 0, 1, 1], [], []>} : vector<16x32xf32>, vector<32x32xf32>, vector<16x32xf32> -> vector<16x32xf32>
    %42 = arith.addf %39, %41 : vector<16x32xf32>
    %c0_26 = arith.constant 0 : index
    %c0_27 = arith.constant 0 : index
    %43 = vector.load %arg10[%c0_26, %c0_27] : memref<1x32xf32, #tpu.memory_space<vmem>>, vector<1x32xf32>
    %44 = vector.broadcast %43 : vector<1x32xf32> to vector<16x32xf32>
    %45 = arith.addf %42, %44 : vector<16x32xf32>
    %46 = arith.negf %45 : vector<16x32xf32>
    %47 = math.exp %46 : vector<16x32xf32>
    %cst_28 = arith.constant 1.000000e+00 : f32
    %48 = vector.broadcast %cst_28 : f32 to vector<16x32xf32>
    %49 = arith.addf %48, %47 : vector<16x32xf32>
    %50 = arith.divf %48, %49 : vector<16x32xf32>
    %51 = arith.mulf %50, %37 : vector<16x32xf32>
    %52 = vector.shape_cast %51 : vector<16x32xf32> to vector<2x8x32xf32>
    %53 = tpu.transpose %52, [1, 0, 2] : vector<2x8x32xf32> -> vector<8x2x32xf32>
    %54 = vector.shape_cast %53 : vector<8x2x32xf32> to vector<16x32xf32>
    %c0_29 = arith.constant 0 : index
    %c0_30 = arith.constant 0 : index
    %55 = vector.load %arg11[%c0_29, %c0_30] : memref<32x96xf32, #tpu.memory_space<vmem>>, vector<32x96xf32>
    %cst_31 = arith.constant dense<0.000000e+00> : vector<16x96xf32>
    %56 = tpu.matmul %54, %55, %cst_31 {dimension_numbers = #tpu.dot_dimension_numbers<[1], [0], [0], [1], [0, 0, 1, 1], [], []>} : vector<16x32xf32>, vector<32x96xf32>, vector<16x96xf32> -> vector<16x96xf32>
    %c0_32 = arith.constant 0 : index
    %c0_33 = arith.constant 0 : index
    %57 = vector.load %arg12[%c0_32, %c0_33] : memref<1x96xf32, #tpu.memory_space<vmem>>, vector<1x96xf32>
    %58 = vector.broadcast %57 : vector<1x96xf32> to vector<16x96xf32>
    %59 = arith.addf %56, %58 : vector<16x96xf32>
    %60 = vector.shape_cast %59 : vector<16x96xf32> to vector<8x2x96xf32>
    %c0_34 = arith.constant 0 : index
    %c0_35 = arith.constant 0 : index
    %c0_36 = arith.constant 0 : index
    %61 = vector.load %arg15[%c0_34, %c0_35, %c0_36] : memref<8x2x96xf32, #tpu.memory_space<vmem>>, vector<8x2x96xf32>
    tpu.vector_store %arg15[%c0_34, %c0_35, %c0_36], %60 {strides = array<i32>} : memref<8x2x96xf32, #tpu.memory_space<vmem>>, vector<8x2x96xf32>,
    %c0_37 = arith.constant 0 : index
    %c0_38 = arith.constant 0 : index
    %62 = vector.load %arg13[%c0_37, %c0_38] : memref<32x96xf32, #tpu.memory_space<vmem>>, vector<32x96xf32>
    %cst_39 = arith.constant dense<0.000000e+00> : vector<16x96xf32>
    %63 = tpu.matmul %54, %62, %cst_39 {dimension_numbers = #tpu.dot_dimension_numbers<[1], [0], [0], [1], [0, 0, 1, 1], [], []>} : vector<16x32xf32>, vector<32x96xf32>, vector<16x96xf32> -> vector<16x96xf32>
    %c0_40 = arith.constant 0 : index
    %c0_41 = arith.constant 0 : index
    %64 = vector.load %arg14[%c0_40, %c0_41] : memref<1x96xf32, #tpu.memory_space<vmem>>, vector<1x96xf32>
    %65 = vector.broadcast %64 : vector<1x96xf32> to vector<16x96xf32>
    %66 = arith.addf %63, %65 : vector<16x96xf32>
    %67 = vector.shape_cast %66 : vector<16x96xf32> to vector<8x2x96xf32>
    %c0_42 = arith.constant 0 : index
    %c0_43 = arith.constant 0 : index
    %c0_44 = arith.constant 0 : index
    %68 = vector.load %arg16[%c0_42, %c0_43, %c0_44] : memref<8x2x96xf32, #tpu.memory_space<vmem>>, vector<8x2x96xf32>
    tpu.vector_store %arg16[%c0_42, %c0_43, %c0_44], %67 {strides = array<i32>} : memref<8x2x96xf32, #tpu.memory_space<vmem>>, vector<8x2x96xf32>,
    return
  }
  func.func @transform_0(%arg0: i32) -> (i32, i32, i32) {
    %c0_i32 = arith.constant 0 : i32
    %c0_i32_0 = arith.constant 0 : i32
    %c0_i32_1 = arith.constant 0 : i32
    %c0_i32_2 = arith.constant 0 : i32
    return %c0_i32, %c0_i32_0, %c0_i32_1 : i32, i32, i32
  }
  func.func @transform_1(%arg0: i32) -> (i32, i32, i32) {
    %c0_i32 = arith.constant 0 : i32
    %c0_i32_0 = arith.constant 0 : i32
    %c0_i32_1 = arith.constant 0 : i32
    return %c0_i32, %arg0, %c0_i32_0 : i32, i32, i32
  }
  func.func @transform_2(%arg0: i32) -> (i32, i32) {
    %c0_i32 = arith.constant 0 : i32
    %c0_i32_0 = arith.constant 0 : i32
    %c0_i32_1 = arith.constant 0 : i32
    return %c0_i32, %c0_i32_0 : i32, i32
  }
  func.func @transform_3(%arg0: i32) -> (i32, i32) {
    %c0_i32 = arith.constant 0 : i32
    %c0_i32_0 = arith.constant 0 : i32
    %c0_i32_1 = arith.constant 0 : i32
    return %c0_i32, %c0_i32_0 : i32, i32
  }
  func.func @transform_4(%arg0: i32) -> (i32, i32) {
    %c0_i32 = arith.constant 0 : i32
    %c0_i32_0 = arith.constant 0 : i32
    %c0_i32_1 = arith.constant 0 : i32
    return %c0_i32, %c0_i32_0 : i32, i32
  }
  func.func @transform_5(%arg0: i32) -> (i32, i32) {
    %c0_i32 = arith.constant 0 : i32
    %c0_i32_0 = arith.constant 0 : i32
    %c0_i32_1 = arith.constant 0 : i32
    return %c0_i32, %c0_i32_0 : i32, i32
  }
  func.func @transform_6(%arg0: i32) -> (i32, i32) {
    %c0_i32 = arith.constant 0 : i32
    %c0_i32_0 = arith.constant 0 : i32
    %c0_i32_1 = arith.constant 0 : i32
    return %c0_i32, %c0_i32_0 : i32, i32
  }
  func.func @transform_7(%arg0: i32) -> (i32, i32) {
    %c0_i32 = arith.constant 0 : i32
    %c0_i32_0 = arith.constant 0 : i32
    %c0_i32_1 = arith.constant 0 : i32
    return %c0_i32, %c0_i32_0 : i32, i32
  }
  func.func @transform_8(%arg0: i32) -> (i32, i32) {
    %c0_i32 = arith.constant 0 : i32
    %c0_i32_0 = arith.constant 0 : i32
    %c0_i32_1 = arith.constant 0 : i32
    return %c0_i32, %c0_i32_0 : i32, i32
  }
  func.func @transform_9(%arg0: i32) -> (i32, i32) {
    %c0_i32 = arith.constant 0 : i32
    %c0_i32_0 = arith.constant 0 : i32
    %c0_i32_1 = arith.constant 0 : i32
    return %c0_i32, %c0_i32_0 : i32, i32
  }
  func.func @transform_10(%arg0: i32) -> (i32, i32) {
    %c0_i32 = arith.constant 0 : i32
    %c0_i32_0 = arith.constant 0 : i32
    %c0_i32_1 = arith.constant 0 : i32
    return %c0_i32, %c0_i32_0 : i32, i32
  }
  func.func @transform_11(%arg0: i32) -> (i32, i32) {
    %c0_i32 = arith.constant 0 : i32
    %c0_i32_0 = arith.constant 0 : i32
    %c0_i32_1 = arith.constant 0 : i32
    return %c0_i32, %c0_i32_0 : i32, i32
  }
  func.func @transform_12(%arg0: i32) -> (i32, i32) {
    %c0_i32 = arith.constant 0 : i32
    %c0_i32_0 = arith.constant 0 : i32
    %c0_i32_1 = arith.constant 0 : i32
    return %c0_i32, %c0_i32_0 : i32, i32
  }
  func.func @transform_13(%arg0: i32) -> (i32, i32) {
    %c0_i32 = arith.constant 0 : i32
    %c0_i32_0 = arith.constant 0 : i32
    %c0_i32_1 = arith.constant 0 : i32
    return %c0_i32, %c0_i32_0 : i32, i32
  }
  func.func @transform_14(%arg0: i32) -> (i32, i32, i32) {
    %c0_i32 = arith.constant 0 : i32
    %c0_i32_0 = arith.constant 0 : i32
    %c0_i32_1 = arith.constant 0 : i32
    return %arg0, %c0_i32, %c0_i32_0 : i32, i32, i32
  }
  func.func @transform_15(%arg0: i32) -> (i32, i32, i32) {
    %c0_i32 = arith.constant 0 : i32
    %c0_i32_0 = arith.constant 0 : i32
    %c0_i32_1 = arith.constant 0 : i32
    return %arg0, %c0_i32, %c0_i32_0 : i32, i32, i32
  }
}

module attributes {stable_mosaic.version = 11 : i64} {
  func.func @_bigru_kernel(%arg0: memref<8x2x96xf32, #tpu.memory_space<vmem>>, %arg1: memref<8x2x96xf32, #tpu.memory_space<vmem>>, %arg2: memref<32x96xf32, #tpu.memory_space<vmem>>, %arg3: memref<1x96xf32, #tpu.memory_space<vmem>>, %arg4: memref<32x96xf32, #tpu.memory_space<vmem>>, %arg5: memref<1x96xf32, #tpu.memory_space<vmem>>, %arg6: memref<8x2x64xf32, #tpu.memory_space<vmem>>, %arg7: memref<8x2x32xf32, #tpu.memory_space<vmem>>, %arg8: memref<8x2x32xf32, #tpu.memory_space<vmem>>) attributes {dimension_semantics = [], scalar_prefetch = 0 : i64, scratch_operands = 2 : i64, tpu.core_type = #tpu.core_type<tc>} {
    %c0 = arith.constant 0 : index
    %c0_0 = arith.constant 0 : index
    %0 = vector.load %arg2[%c0, %c0_0] : memref<32x96xf32, #tpu.memory_space<vmem>>, vector<32x96xf32>
    %c0_1 = arith.constant 0 : index
    %c0_2 = arith.constant 0 : index
    %1 = vector.load %arg3[%c0_1, %c0_2] : memref<1x96xf32, #tpu.memory_space<vmem>>, vector<1x96xf32>
    %c0_3 = arith.constant 0 : index
    %c0_4 = arith.constant 0 : index
    %2 = vector.load %arg4[%c0_3, %c0_4] : memref<32x96xf32, #tpu.memory_space<vmem>>, vector<32x96xf32>
    %c0_5 = arith.constant 0 : index
    %c0_6 = arith.constant 0 : index
    %3 = vector.load %arg5[%c0_5, %c0_6] : memref<1x96xf32, #tpu.memory_space<vmem>>, vector<1x96xf32>
    %cst = arith.constant 0.000000e+00 : f32
    %4 = vector.broadcast %cst : f32 to vector<2x32xf32>
    %c0_i32 = arith.constant 0 : i32
    %5 = arith.index_cast %c0_i32 : i32 to index
    %c0_7 = arith.constant 0 : index
    %c0_8 = arith.constant 0 : index
    %6 = vector.load %arg0[%5, %c0_7, %c0_8] : memref<8x2x96xf32, #tpu.memory_space<vmem>>, vector<1x2x96xf32>
    %7 = vector.shape_cast %6 : vector<1x2x96xf32> to vector<2x96xf32>
    %cst_9 = arith.constant dense<0.000000e+00> : vector<2x96xf32>
    %8 = tpu.matmul %4, %0, %cst_9 {dimension_numbers = #tpu.dot_dimension_numbers<[1], [0], [0], [1], [0, 0, 1, 1], [], []>} : vector<2x32xf32>, vector<32x96xf32>, vector<2x96xf32> -> vector<2x96xf32>
    %9 = vector.broadcast %1 : vector<1x96xf32> to vector<2x96xf32>
    %10 = arith.addf %8, %9 : vector<2x96xf32>
    %11 = vector.extract_strided_slice %7 {offsets = [0, 0], sizes = [2, 32], strides = [1, 1]} : vector<2x96xf32> to vector<2x32xf32>
    %12 = vector.extract_strided_slice %10 {offsets = [0, 0], sizes = [2, 32], strides = [1, 1]} : vector<2x96xf32> to vector<2x32xf32>
    %13 = arith.addf %11, %12 : vector<2x32xf32>
    %14 = arith.negf %13 : vector<2x32xf32>
    %15 = math.exp %14 : vector<2x32xf32>
    %cst_10 = arith.constant 1.000000e+00 : f32
    %16 = vector.broadcast %cst_10 : f32 to vector<2x32xf32>
    %17 = arith.addf %16, %15 : vector<2x32xf32>
    %18 = arith.divf %16, %17 : vector<2x32xf32>
    %19 = vector.extract_strided_slice %7 {offsets = [0, 32], sizes = [2, 32], strides = [1, 1]} : vector<2x96xf32> to vector<2x32xf32>
    %20 = vector.extract_strided_slice %10 {offsets = [0, 32], sizes = [2, 32], strides = [1, 1]} : vector<2x96xf32> to vector<2x32xf32>
    %21 = arith.addf %19, %20 : vector<2x32xf32>
    %22 = arith.negf %21 : vector<2x32xf32>
    %23 = math.exp %22 : vector<2x32xf32>
    %cst_11 = arith.constant 1.000000e+00 : f32
    %24 = vector.broadcast %cst_11 : f32 to vector<2x32xf32>
    %25 = arith.addf %24, %23 : vector<2x32xf32>
    %26 = arith.divf %24, %25 : vector<2x32xf32>
    %27 = vector.extract_strided_slice %7 {offsets = [0, 64], sizes = [2, 32], strides = [1, 1]} : vector<2x96xf32> to vector<2x32xf32>
    %28 = vector.extract_strided_slice %10 {offsets = [0, 64], sizes = [2, 32], strides = [1, 1]} : vector<2x96xf32> to vector<2x32xf32>
    %29 = arith.mulf %18, %28 : vector<2x32xf32>
    %30 = arith.addf %27, %29 : vector<2x32xf32>
    %31 = math.tanh %30 : vector<2x32xf32>
    %cst_12 = arith.constant 1.000000e+00 : f32
    %32 = vector.broadcast %cst_12 : f32 to vector<2x32xf32>
    %33 = arith.subf %32, %26 : vector<2x32xf32>
    %34 = arith.mulf %33, %31 : vector<2x32xf32>
    %35 = arith.mulf %26, %4 : vector<2x32xf32>
    %36 = arith.addf %34, %35 : vector<2x32xf32>
    %37 = arith.index_cast %c0_i32 : i32 to index
    %c0_13 = arith.constant 0 : index
    %c0_14 = arith.constant 0 : index
    %38 = vector.load %arg7[%37, %c0_13, %c0_14] : memref<8x2x32xf32, #tpu.memory_space<vmem>>, vector<1x2x32xf32>
    %39 = vector.shape_cast %38 : vector<1x2x32xf32> to vector<2x32xf32>
    %40 = vector.shape_cast %36 : vector<2x32xf32> to vector<1x2x32xf32>
    tpu.vector_store %arg7[%37, %c0_13, %c0_14], %40 {strides = array<i32>} : memref<8x2x32xf32, #tpu.memory_space<vmem>>, vector<1x2x32xf32>,
    %c1_i32 = arith.constant 1 : i32
    %41 = arith.index_cast %c1_i32 : i32 to index
    %c0_15 = arith.constant 0 : index
    %c0_16 = arith.constant 0 : index
    %42 = vector.load %arg0[%41, %c0_15, %c0_16] : memref<8x2x96xf32, #tpu.memory_space<vmem>>, vector<1x2x96xf32>
    %43 = vector.shape_cast %42 : vector<1x2x96xf32> to vector<2x96xf32>
    %cst_17 = arith.constant dense<0.000000e+00> : vector<2x96xf32>
    %44 = tpu.matmul %36, %0, %cst_17 {dimension_numbers = #tpu.dot_dimension_numbers<[1], [0], [0], [1], [0, 0, 1, 1], [], []>} : vector<2x32xf32>, vector<32x96xf32>, vector<2x96xf32> -> vector<2x96xf32>
    %45 = vector.broadcast %1 : vector<1x96xf32> to vector<2x96xf32>
    %46 = arith.addf %44, %45 : vector<2x96xf32>
    %47 = vector.extract_strided_slice %43 {offsets = [0, 0], sizes = [2, 32], strides = [1, 1]} : vector<2x96xf32> to vector<2x32xf32>
    %48 = vector.extract_strided_slice %46 {offsets = [0, 0], sizes = [2, 32], strides = [1, 1]} : vector<2x96xf32> to vector<2x32xf32>
    %49 = arith.addf %47, %48 : vector<2x32xf32>
    %50 = arith.negf %49 : vector<2x32xf32>
    %51 = math.exp %50 : vector<2x32xf32>
    %cst_18 = arith.constant 1.000000e+00 : f32
    %52 = vector.broadcast %cst_18 : f32 to vector<2x32xf32>
    %53 = arith.addf %52, %51 : vector<2x32xf32>
    %54 = arith.divf %52, %53 : vector<2x32xf32>
    %55 = vector.extract_strided_slice %43 {offsets = [0, 32], sizes = [2, 32], strides = [1, 1]} : vector<2x96xf32> to vector<2x32xf32>
    %56 = vector.extract_strided_slice %46 {offsets = [0, 32], sizes = [2, 32], strides = [1, 1]} : vector<2x96xf32> to vector<2x32xf32>
    %57 = arith.addf %55, %56 : vector<2x32xf32>
    %58 = arith.negf %57 : vector<2x32xf32>
    %59 = math.exp %58 : vector<2x32xf32>
    %cst_19 = arith.constant 1.000000e+00 : f32
    %60 = vector.broadcast %cst_19 : f32 to vector<2x32xf32>
    %61 = arith.addf %60, %59 : vector<2x32xf32>
    %62 = arith.divf %60, %61 : vector<2x32xf32>
    %63 = vector.extract_strided_slice %43 {offsets = [0, 64], sizes = [2, 32], strides = [1, 1]} : vector<2x96xf32> to vector<2x32xf32>
    %64 = vector.extract_strided_slice %46 {offsets = [0, 64], sizes = [2, 32], strides = [1, 1]} : vector<2x96xf32> to vector<2x32xf32>
    %65 = arith.mulf %54, %64 : vector<2x32xf32>
    %66 = arith.addf %63, %65 : vector<2x32xf32>
    %67 = math.tanh %66 : vector<2x32xf32>
    %cst_20 = arith.constant 1.000000e+00 : f32
    %68 = vector.broadcast %cst_20 : f32 to vector<2x32xf32>
    %69 = arith.subf %68, %62 : vector<2x32xf32>
    %70 = arith.mulf %69, %67 : vector<2x32xf32>
    %71 = arith.mulf %62, %36 : vector<2x32xf32>
    %72 = arith.addf %70, %71 : vector<2x32xf32>
    %73 = arith.index_cast %c1_i32 : i32 to index
    %c0_21 = arith.constant 0 : index
    %c0_22 = arith.constant 0 : index
    %74 = vector.load %arg7[%73, %c0_21, %c0_22] : memref<8x2x32xf32, #tpu.memory_space<vmem>>, vector<1x2x32xf32>
    %75 = vector.shape_cast %74 : vector<1x2x32xf32> to vector<2x32xf32>
    %76 = vector.shape_cast %72 : vector<2x32xf32> to vector<1x2x32xf32>
    tpu.vector_store %arg7[%73, %c0_21, %c0_22], %76 {strides = array<i32>} : memref<8x2x32xf32, #tpu.memory_space<vmem>>, vector<1x2x32xf32>,
    %c2_i32 = arith.constant 2 : i32
    %77 = arith.index_cast %c2_i32 : i32 to index
    %c0_23 = arith.constant 0 : index
    %c0_24 = arith.constant 0 : index
    %78 = vector.load %arg0[%77, %c0_23, %c0_24] : memref<8x2x96xf32, #tpu.memory_space<vmem>>, vector<1x2x96xf32>
    %79 = vector.shape_cast %78 : vector<1x2x96xf32> to vector<2x96xf32>
    %cst_25 = arith.constant dense<0.000000e+00> : vector<2x96xf32>
    %80 = tpu.matmul %72, %0, %cst_25 {dimension_numbers = #tpu.dot_dimension_numbers<[1], [0], [0], [1], [0, 0, 1, 1], [], []>} : vector<2x32xf32>, vector<32x96xf32>, vector<2x96xf32> -> vector<2x96xf32>
    %81 = vector.broadcast %1 : vector<1x96xf32> to vector<2x96xf32>
    %82 = arith.addf %80, %81 : vector<2x96xf32>
    %83 = vector.extract_strided_slice %79 {offsets = [0, 0], sizes = [2, 32], strides = [1, 1]} : vector<2x96xf32> to vector<2x32xf32>
    %84 = vector.extract_strided_slice %82 {offsets = [0, 0], sizes = [2, 32], strides = [1, 1]} : vector<2x96xf32> to vector<2x32xf32>
    %85 = arith.addf %83, %84 : vector<2x32xf32>
    %86 = arith.negf %85 : vector<2x32xf32>
    %87 = math.exp %86 : vector<2x32xf32>
    %cst_26 = arith.constant 1.000000e+00 : f32
    %88 = vector.broadcast %cst_26 : f32 to vector<2x32xf32>
    %89 = arith.addf %88, %87 : vector<2x32xf32>
    %90 = arith.divf %88, %89 : vector<2x32xf32>
    %91 = vector.extract_strided_slice %79 {offsets = [0, 32], sizes = [2, 32], strides = [1, 1]} : vector<2x96xf32> to vector<2x32xf32>
    %92 = vector.extract_strided_slice %82 {offsets = [0, 32], sizes = [2, 32], strides = [1, 1]} : vector<2x96xf32> to vector<2x32xf32>
    %93 = arith.addf %91, %92 : vector<2x32xf32>
    %94 = arith.negf %93 : vector<2x32xf32>
    %95 = math.exp %94 : vector<2x32xf32>
    %cst_27 = arith.constant 1.000000e+00 : f32
    %96 = vector.broadcast %cst_27 : f32 to vector<2x32xf32>
    %97 = arith.addf %96, %95 : vector<2x32xf32>
    %98 = arith.divf %96, %97 : vector<2x32xf32>
    %99 = vector.extract_strided_slice %79 {offsets = [0, 64], sizes = [2, 32], strides = [1, 1]} : vector<2x96xf32> to vector<2x32xf32>
    %100 = vector.extract_strided_slice %82 {offsets = [0, 64], sizes = [2, 32], strides = [1, 1]} : vector<2x96xf32> to vector<2x32xf32>
    %101 = arith.mulf %90, %100 : vector<2x32xf32>
    %102 = arith.addf %99, %101 : vector<2x32xf32>
    %103 = math.tanh %102 : vector<2x32xf32>
    %cst_28 = arith.constant 1.000000e+00 : f32
    %104 = vector.broadcast %cst_28 : f32 to vector<2x32xf32>
    %105 = arith.subf %104, %98 : vector<2x32xf32>
    %106 = arith.mulf %105, %103 : vector<2x32xf32>
    %107 = arith.mulf %98, %72 : vector<2x32xf32>
    %108 = arith.addf %106, %107 : vector<2x32xf32>
    %109 = arith.index_cast %c2_i32 : i32 to index
    %c0_29 = arith.constant 0 : index
    %c0_30 = arith.constant 0 : index
    %110 = vector.load %arg7[%109, %c0_29, %c0_30] : memref<8x2x32xf32, #tpu.memory_space<vmem>>, vector<1x2x32xf32>
    %111 = vector.shape_cast %110 : vector<1x2x32xf32> to vector<2x32xf32>
    %112 = vector.shape_cast %108 : vector<2x32xf32> to vector<1x2x32xf32>
    tpu.vector_store %arg7[%109, %c0_29, %c0_30], %112 {strides = array<i32>} : memref<8x2x32xf32, #tpu.memory_space<vmem>>, vector<1x2x32xf32>,
    %c3_i32 = arith.constant 3 : i32
    %113 = arith.index_cast %c3_i32 : i32 to index
    %c0_31 = arith.constant 0 : index
    %c0_32 = arith.constant 0 : index
    %114 = vector.load %arg0[%113, %c0_31, %c0_32] : memref<8x2x96xf32, #tpu.memory_space<vmem>>, vector<1x2x96xf32>
    %115 = vector.shape_cast %114 : vector<1x2x96xf32> to vector<2x96xf32>
    %cst_33 = arith.constant dense<0.000000e+00> : vector<2x96xf32>
    %116 = tpu.matmul %108, %0, %cst_33 {dimension_numbers = #tpu.dot_dimension_numbers<[1], [0], [0], [1], [0, 0, 1, 1], [], []>} : vector<2x32xf32>, vector<32x96xf32>, vector<2x96xf32> -> vector<2x96xf32>
    %117 = vector.broadcast %1 : vector<1x96xf32> to vector<2x96xf32>
    %118 = arith.addf %116, %117 : vector<2x96xf32>
    %119 = vector.extract_strided_slice %115 {offsets = [0, 0], sizes = [2, 32], strides = [1, 1]} : vector<2x96xf32> to vector<2x32xf32>
    %120 = vector.extract_strided_slice %118 {offsets = [0, 0], sizes = [2, 32], strides = [1, 1]} : vector<2x96xf32> to vector<2x32xf32>
    %121 = arith.addf %119, %120 : vector<2x32xf32>
    %122 = arith.negf %121 : vector<2x32xf32>
    %123 = math.exp %122 : vector<2x32xf32>
    %cst_34 = arith.constant 1.000000e+00 : f32
    %124 = vector.broadcast %cst_34 : f32 to vector<2x32xf32>
    %125 = arith.addf %124, %123 : vector<2x32xf32>
    %126 = arith.divf %124, %125 : vector<2x32xf32>
    %127 = vector.extract_strided_slice %115 {offsets = [0, 32], sizes = [2, 32], strides = [1, 1]} : vector<2x96xf32> to vector<2x32xf32>
    %128 = vector.extract_strided_slice %118 {offsets = [0, 32], sizes = [2, 32], strides = [1, 1]} : vector<2x96xf32> to vector<2x32xf32>
    %129 = arith.addf %127, %128 : vector<2x32xf32>
    %130 = arith.negf %129 : vector<2x32xf32>
    %131 = math.exp %130 : vector<2x32xf32>
    %cst_35 = arith.constant 1.000000e+00 : f32
    %132 = vector.broadcast %cst_35 : f32 to vector<2x32xf32>
    %133 = arith.addf %132, %131 : vector<2x32xf32>
    %134 = arith.divf %132, %133 : vector<2x32xf32>
    %135 = vector.extract_strided_slice %115 {offsets = [0, 64], sizes = [2, 32], strides = [1, 1]} : vector<2x96xf32> to vector<2x32xf32>
    %136 = vector.extract_strided_slice %118 {offsets = [0, 64], sizes = [2, 32], strides = [1, 1]} : vector<2x96xf32> to vector<2x32xf32>
    %137 = arith.mulf %126, %136 : vector<2x32xf32>
    %138 = arith.addf %135, %137 : vector<2x32xf32>
    %139 = math.tanh %138 : vector<2x32xf32>
    %cst_36 = arith.constant 1.000000e+00 : f32
    %140 = vector.broadcast %cst_36 : f32 to vector<2x32xf32>
    %141 = arith.subf %140, %134 : vector<2x32xf32>
    %142 = arith.mulf %141, %139 : vector<2x32xf32>
    %143 = arith.mulf %134, %108 : vector<2x32xf32>
    %144 = arith.addf %142, %143 : vector<2x32xf32>
    %145 = arith.index_cast %c3_i32 : i32 to index
    %c0_37 = arith.constant 0 : index
    %c0_38 = arith.constant 0 : index
    %146 = vector.load %arg7[%145, %c0_37, %c0_38] : memref<8x2x32xf32, #tpu.memory_space<vmem>>, vector<1x2x32xf32>
    %147 = vector.shape_cast %146 : vector<1x2x32xf32> to vector<2x32xf32>
    %148 = vector.shape_cast %144 : vector<2x32xf32> to vector<1x2x32xf32>
    tpu.vector_store %arg7[%145, %c0_37, %c0_38], %148 {strides = array<i32>} : memref<8x2x32xf32, #tpu.memory_space<vmem>>, vector<1x2x32xf32>,
    %c4_i32 = arith.constant 4 : i32
    %149 = arith.index_cast %c4_i32 : i32 to index
    %c0_39 = arith.constant 0 : index
    %c0_40 = arith.constant 0 : index
    %150 = vector.load %arg0[%149, %c0_39, %c0_40] : memref<8x2x96xf32, #tpu.memory_space<vmem>>, vector<1x2x96xf32>
    %151 = vector.shape_cast %150 : vector<1x2x96xf32> to vector<2x96xf32>
    %cst_41 = arith.constant dense<0.000000e+00> : vector<2x96xf32>
    %152 = tpu.matmul %144, %0, %cst_41 {dimension_numbers = #tpu.dot_dimension_numbers<[1], [0], [0], [1], [0, 0, 1, 1], [], []>} : vector<2x32xf32>, vector<32x96xf32>, vector<2x96xf32> -> vector<2x96xf32>
    %153 = vector.broadcast %1 : vector<1x96xf32> to vector<2x96xf32>
    %154 = arith.addf %152, %153 : vector<2x96xf32>
    %155 = vector.extract_strided_slice %151 {offsets = [0, 0], sizes = [2, 32], strides = [1, 1]} : vector<2x96xf32> to vector<2x32xf32>
    %156 = vector.extract_strided_slice %154 {offsets = [0, 0], sizes = [2, 32], strides = [1, 1]} : vector<2x96xf32> to vector<2x32xf32>
    %157 = arith.addf %155, %156 : vector<2x32xf32>
    %158 = arith.negf %157 : vector<2x32xf32>
    %159 = math.exp %158 : vector<2x32xf32>
    %cst_42 = arith.constant 1.000000e+00 : f32
    %160 = vector.broadcast %cst_42 : f32 to vector<2x32xf32>
    %161 = arith.addf %160, %159 : vector<2x32xf32>
    %162 = arith.divf %160, %161 : vector<2x32xf32>
    %163 = vector.extract_strided_slice %151 {offsets = [0, 32], sizes = [2, 32], strides = [1, 1]} : vector<2x96xf32> to vector<2x32xf32>
    %164 = vector.extract_strided_slice %154 {offsets = [0, 32], sizes = [2, 32], strides = [1, 1]} : vector<2x96xf32> to vector<2x32xf32>
    %165 = arith.addf %163, %164 : vector<2x32xf32>
    %166 = arith.negf %165 : vector<2x32xf32>
    %167 = math.exp %166 : vector<2x32xf32>
    %cst_43 = arith.constant 1.000000e+00 : f32
    %168 = vector.broadcast %cst_43 : f32 to vector<2x32xf32>
    %169 = arith.addf %168, %167 : vector<2x32xf32>
    %170 = arith.divf %168, %169 : vector<2x32xf32>
    %171 = vector.extract_strided_slice %151 {offsets = [0, 64], sizes = [2, 32], strides = [1, 1]} : vector<2x96xf32> to vector<2x32xf32>
    %172 = vector.extract_strided_slice %154 {offsets = [0, 64], sizes = [2, 32], strides = [1, 1]} : vector<2x96xf32> to vector<2x32xf32>
    %173 = arith.mulf %162, %172 : vector<2x32xf32>
    %174 = arith.addf %171, %173 : vector<2x32xf32>
    %175 = math.tanh %174 : vector<2x32xf32>
    %cst_44 = arith.constant 1.000000e+00 : f32
    %176 = vector.broadcast %cst_44 : f32 to vector<2x32xf32>
    %177 = arith.subf %176, %170 : vector<2x32xf32>
    %178 = arith.mulf %177, %175 : vector<2x32xf32>
    %179 = arith.mulf %170, %144 : vector<2x32xf32>
    %180 = arith.addf %178, %179 : vector<2x32xf32>
    %181 = arith.index_cast %c4_i32 : i32 to index
    %c0_45 = arith.constant 0 : index
    %c0_46 = arith.constant 0 : index
    %182 = vector.load %arg7[%181, %c0_45, %c0_46] : memref<8x2x32xf32, #tpu.memory_space<vmem>>, vector<1x2x32xf32>
    %183 = vector.shape_cast %182 : vector<1x2x32xf32> to vector<2x32xf32>
    %184 = vector.shape_cast %180 : vector<2x32xf32> to vector<1x2x32xf32>
    tpu.vector_store %arg7[%181, %c0_45, %c0_46], %184 {strides = array<i32>} : memref<8x2x32xf32, #tpu.memory_space<vmem>>, vector<1x2x32xf32>,
    %c5_i32 = arith.constant 5 : i32
    %185 = arith.index_cast %c5_i32 : i32 to index
    %c0_47 = arith.constant 0 : index
    %c0_48 = arith.constant 0 : index
    %186 = vector.load %arg0[%185, %c0_47, %c0_48] : memref<8x2x96xf32, #tpu.memory_space<vmem>>, vector<1x2x96xf32>
    %187 = vector.shape_cast %186 : vector<1x2x96xf32> to vector<2x96xf32>
    %cst_49 = arith.constant dense<0.000000e+00> : vector<2x96xf32>
    %188 = tpu.matmul %180, %0, %cst_49 {dimension_numbers = #tpu.dot_dimension_numbers<[1], [0], [0], [1], [0, 0, 1, 1], [], []>} : vector<2x32xf32>, vector<32x96xf32>, vector<2x96xf32> -> vector<2x96xf32>
    %189 = vector.broadcast %1 : vector<1x96xf32> to vector<2x96xf32>
    %190 = arith.addf %188, %189 : vector<2x96xf32>
    %191 = vector.extract_strided_slice %187 {offsets = [0, 0], sizes = [2, 32], strides = [1, 1]} : vector<2x96xf32> to vector<2x32xf32>
    %192 = vector.extract_strided_slice %190 {offsets = [0, 0], sizes = [2, 32], strides = [1, 1]} : vector<2x96xf32> to vector<2x32xf32>
    %193 = arith.addf %191, %192 : vector<2x32xf32>
    %194 = arith.negf %193 : vector<2x32xf32>
    %195 = math.exp %194 : vector<2x32xf32>
    %cst_50 = arith.constant 1.000000e+00 : f32
    %196 = vector.broadcast %cst_50 : f32 to vector<2x32xf32>
    %197 = arith.addf %196, %195 : vector<2x32xf32>
    %198 = arith.divf %196, %197 : vector<2x32xf32>
    %199 = vector.extract_strided_slice %187 {offsets = [0, 32], sizes = [2, 32], strides = [1, 1]} : vector<2x96xf32> to vector<2x32xf32>
    %200 = vector.extract_strided_slice %190 {offsets = [0, 32], sizes = [2, 32], strides = [1, 1]} : vector<2x96xf32> to vector<2x32xf32>
    %201 = arith.addf %199, %200 : vector<2x32xf32>
    %202 = arith.negf %201 : vector<2x32xf32>
    %203 = math.exp %202 : vector<2x32xf32>
    %cst_51 = arith.constant 1.000000e+00 : f32
    %204 = vector.broadcast %cst_51 : f32 to vector<2x32xf32>
    %205 = arith.addf %204, %203 : vector<2x32xf32>
    %206 = arith.divf %204, %205 : vector<2x32xf32>
    %207 = vector.extract_strided_slice %187 {offsets = [0, 64], sizes = [2, 32], strides = [1, 1]} : vector<2x96xf32> to vector<2x32xf32>
    %208 = vector.extract_strided_slice %190 {offsets = [0, 64], sizes = [2, 32], strides = [1, 1]} : vector<2x96xf32> to vector<2x32xf32>
    %209 = arith.mulf %198, %208 : vector<2x32xf32>
    %210 = arith.addf %207, %209 : vector<2x32xf32>
    %211 = math.tanh %210 : vector<2x32xf32>
    %cst_52 = arith.constant 1.000000e+00 : f32
    %212 = vector.broadcast %cst_52 : f32 to vector<2x32xf32>
    %213 = arith.subf %212, %206 : vector<2x32xf32>
    %214 = arith.mulf %213, %211 : vector<2x32xf32>
    %215 = arith.mulf %206, %180 : vector<2x32xf32>
    %216 = arith.addf %214, %215 : vector<2x32xf32>
    %217 = arith.index_cast %c5_i32 : i32 to index
    %c0_53 = arith.constant 0 : index
    %c0_54 = arith.constant 0 : index
    %218 = vector.load %arg7[%217, %c0_53, %c0_54] : memref<8x2x32xf32, #tpu.memory_space<vmem>>, vector<1x2x32xf32>
    %219 = vector.shape_cast %218 : vector<1x2x32xf32> to vector<2x32xf32>
    %220 = vector.shape_cast %216 : vector<2x32xf32> to vector<1x2x32xf32>
    tpu.vector_store %arg7[%217, %c0_53, %c0_54], %220 {strides = array<i32>} : memref<8x2x32xf32, #tpu.memory_space<vmem>>, vector<1x2x32xf32>,
    %c6_i32 = arith.constant 6 : i32
    %221 = arith.index_cast %c6_i32 : i32 to index
    %c0_55 = arith.constant 0 : index
    %c0_56 = arith.constant 0 : index
    %222 = vector.load %arg0[%221, %c0_55, %c0_56] : memref<8x2x96xf32, #tpu.memory_space<vmem>>, vector<1x2x96xf32>
    %223 = vector.shape_cast %222 : vector<1x2x96xf32> to vector<2x96xf32>
    %cst_57 = arith.constant dense<0.000000e+00> : vector<2x96xf32>
    %224 = tpu.matmul %216, %0, %cst_57 {dimension_numbers = #tpu.dot_dimension_numbers<[1], [0], [0], [1], [0, 0, 1, 1], [], []>} : vector<2x32xf32>, vector<32x96xf32>, vector<2x96xf32> -> vector<2x96xf32>
    %225 = vector.broadcast %1 : vector<1x96xf32> to vector<2x96xf32>
    %226 = arith.addf %224, %225 : vector<2x96xf32>
    %227 = vector.extract_strided_slice %223 {offsets = [0, 0], sizes = [2, 32], strides = [1, 1]} : vector<2x96xf32> to vector<2x32xf32>
    %228 = vector.extract_strided_slice %226 {offsets = [0, 0], sizes = [2, 32], strides = [1, 1]} : vector<2x96xf32> to vector<2x32xf32>
    %229 = arith.addf %227, %228 : vector<2x32xf32>
    %230 = arith.negf %229 : vector<2x32xf32>
    %231 = math.exp %230 : vector<2x32xf32>
    %cst_58 = arith.constant 1.000000e+00 : f32
    %232 = vector.broadcast %cst_58 : f32 to vector<2x32xf32>
    %233 = arith.addf %232, %231 : vector<2x32xf32>
    %234 = arith.divf %232, %233 : vector<2x32xf32>
    %235 = vector.extract_strided_slice %223 {offsets = [0, 32], sizes = [2, 32], strides = [1, 1]} : vector<2x96xf32> to vector<2x32xf32>
    %236 = vector.extract_strided_slice %226 {offsets = [0, 32], sizes = [2, 32], strides = [1, 1]} : vector<2x96xf32> to vector<2x32xf32>
    %237 = arith.addf %235, %236 : vector<2x32xf32>
    %238 = arith.negf %237 : vector<2x32xf32>
    %239 = math.exp %238 : vector<2x32xf32>
    %cst_59 = arith.constant 1.000000e+00 : f32
    %240 = vector.broadcast %cst_59 : f32 to vector<2x32xf32>
    %241 = arith.addf %240, %239 : vector<2x32xf32>
    %242 = arith.divf %240, %241 : vector<2x32xf32>
    %243 = vector.extract_strided_slice %223 {offsets = [0, 64], sizes = [2, 32], strides = [1, 1]} : vector<2x96xf32> to vector<2x32xf32>
    %244 = vector.extract_strided_slice %226 {offsets = [0, 64], sizes = [2, 32], strides = [1, 1]} : vector<2x96xf32> to vector<2x32xf32>
    %245 = arith.mulf %234, %244 : vector<2x32xf32>
    %246 = arith.addf %243, %245 : vector<2x32xf32>
    %247 = math.tanh %246 : vector<2x32xf32>
    %cst_60 = arith.constant 1.000000e+00 : f32
    %248 = vector.broadcast %cst_60 : f32 to vector<2x32xf32>
    %249 = arith.subf %248, %242 : vector<2x32xf32>
    %250 = arith.mulf %249, %247 : vector<2x32xf32>
    %251 = arith.mulf %242, %216 : vector<2x32xf32>
    %252 = arith.addf %250, %251 : vector<2x32xf32>
    %253 = arith.index_cast %c6_i32 : i32 to index
    %c0_61 = arith.constant 0 : index
    %c0_62 = arith.constant 0 : index
    %254 = vector.load %arg7[%253, %c0_61, %c0_62] : memref<8x2x32xf32, #tpu.memory_space<vmem>>, vector<1x2x32xf32>
    %255 = vector.shape_cast %254 : vector<1x2x32xf32> to vector<2x32xf32>
    %256 = vector.shape_cast %252 : vector<2x32xf32> to vector<1x2x32xf32>
    tpu.vector_store %arg7[%253, %c0_61, %c0_62], %256 {strides = array<i32>} : memref<8x2x32xf32, #tpu.memory_space<vmem>>, vector<1x2x32xf32>,
    %c7_i32 = arith.constant 7 : i32
    %257 = arith.index_cast %c7_i32 : i32 to index
    %c0_63 = arith.constant 0 : index
    %c0_64 = arith.constant 0 : index
    %258 = vector.load %arg0[%257, %c0_63, %c0_64] : memref<8x2x96xf32, #tpu.memory_space<vmem>>, vector<1x2x96xf32>
    %259 = vector.shape_cast %258 : vector<1x2x96xf32> to vector<2x96xf32>
    %cst_65 = arith.constant dense<0.000000e+00> : vector<2x96xf32>
    %260 = tpu.matmul %252, %0, %cst_65 {dimension_numbers = #tpu.dot_dimension_numbers<[1], [0], [0], [1], [0, 0, 1, 1], [], []>} : vector<2x32xf32>, vector<32x96xf32>, vector<2x96xf32> -> vector<2x96xf32>
    %261 = vector.broadcast %1 : vector<1x96xf32> to vector<2x96xf32>
    %262 = arith.addf %260, %261 : vector<2x96xf32>
    %263 = vector.extract_strided_slice %259 {offsets = [0, 0], sizes = [2, 32], strides = [1, 1]} : vector<2x96xf32> to vector<2x32xf32>
    %264 = vector.extract_strided_slice %262 {offsets = [0, 0], sizes = [2, 32], strides = [1, 1]} : vector<2x96xf32> to vector<2x32xf32>
    %265 = arith.addf %263, %264 : vector<2x32xf32>
    %266 = arith.negf %265 : vector<2x32xf32>
    %267 = math.exp %266 : vector<2x32xf32>
    %cst_66 = arith.constant 1.000000e+00 : f32
    %268 = vector.broadcast %cst_66 : f32 to vector<2x32xf32>
    %269 = arith.addf %268, %267 : vector<2x32xf32>
    %270 = arith.divf %268, %269 : vector<2x32xf32>
    %271 = vector.extract_strided_slice %259 {offsets = [0, 32], sizes = [2, 32], strides = [1, 1]} : vector<2x96xf32> to vector<2x32xf32>
    %272 = vector.extract_strided_slice %262 {offsets = [0, 32], sizes = [2, 32], strides = [1, 1]} : vector<2x96xf32> to vector<2x32xf32>
    %273 = arith.addf %271, %272 : vector<2x32xf32>
    %274 = arith.negf %273 : vector<2x32xf32>
    %275 = math.exp %274 : vector<2x32xf32>
    %cst_67 = arith.constant 1.000000e+00 : f32
    %276 = vector.broadcast %cst_67 : f32 to vector<2x32xf32>
    %277 = arith.addf %276, %275 : vector<2x32xf32>
    %278 = arith.divf %276, %277 : vector<2x32xf32>
    %279 = vector.extract_strided_slice %259 {offsets = [0, 64], sizes = [2, 32], strides = [1, 1]} : vector<2x96xf32> to vector<2x32xf32>
    %280 = vector.extract_strided_slice %262 {offsets = [0, 64], sizes = [2, 32], strides = [1, 1]} : vector<2x96xf32> to vector<2x32xf32>
    %281 = arith.mulf %270, %280 : vector<2x32xf32>
    %282 = arith.addf %279, %281 : vector<2x32xf32>
    %283 = math.tanh %282 : vector<2x32xf32>
    %cst_68 = arith.constant 1.000000e+00 : f32
    %284 = vector.broadcast %cst_68 : f32 to vector<2x32xf32>
    %285 = arith.subf %284, %278 : vector<2x32xf32>
    %286 = arith.mulf %285, %283 : vector<2x32xf32>
    %287 = arith.mulf %278, %252 : vector<2x32xf32>
    %288 = arith.addf %286, %287 : vector<2x32xf32>
    %289 = arith.index_cast %c7_i32 : i32 to index
    %c0_69 = arith.constant 0 : index
    %c0_70 = arith.constant 0 : index
    %290 = vector.load %arg7[%289, %c0_69, %c0_70] : memref<8x2x32xf32, #tpu.memory_space<vmem>>, vector<1x2x32xf32>
    %291 = vector.shape_cast %290 : vector<1x2x32xf32> to vector<2x32xf32>
    %292 = vector.shape_cast %288 : vector<2x32xf32> to vector<1x2x32xf32>
    tpu.vector_store %arg7[%289, %c0_69, %c0_70], %292 {strides = array<i32>} : memref<8x2x32xf32, #tpu.memory_space<vmem>>, vector<1x2x32xf32>,
    %c8_i32 = arith.constant 8 : i32
    %c0_i32_71 = arith.constant 0 : i32
    %c7_i32_72 = arith.constant 7 : i32
    %293 = arith.subi %c7_i32_72, %c0_i32_71 : i32
    %294 = arith.index_cast %293 : i32 to index
    %c0_73 = arith.constant 0 : index
    %c0_74 = arith.constant 0 : index
    %295 = vector.load %arg1[%294, %c0_73, %c0_74] : memref<8x2x96xf32, #tpu.memory_space<vmem>>, vector<1x2x96xf32>
    %296 = vector.shape_cast %295 : vector<1x2x96xf32> to vector<2x96xf32>
    %cst_75 = arith.constant dense<0.000000e+00> : vector<2x96xf32>
    %297 = tpu.matmul %4, %2, %cst_75 {dimension_numbers = #tpu.dot_dimension_numbers<[1], [0], [0], [1], [0, 0, 1, 1], [], []>} : vector<2x32xf32>, vector<32x96xf32>, vector<2x96xf32> -> vector<2x96xf32>
    %298 = vector.broadcast %3 : vector<1x96xf32> to vector<2x96xf32>
    %299 = arith.addf %297, %298 : vector<2x96xf32>
    %300 = vector.extract_strided_slice %296 {offsets = [0, 0], sizes = [2, 32], strides = [1, 1]} : vector<2x96xf32> to vector<2x32xf32>
    %301 = vector.extract_strided_slice %299 {offsets = [0, 0], sizes = [2, 32], strides = [1, 1]} : vector<2x96xf32> to vector<2x32xf32>
    %302 = arith.addf %300, %301 : vector<2x32xf32>
    %303 = arith.negf %302 : vector<2x32xf32>
    %304 = math.exp %303 : vector<2x32xf32>
    %cst_76 = arith.constant 1.000000e+00 : f32
    %305 = vector.broadcast %cst_76 : f32 to vector<2x32xf32>
    %306 = arith.addf %305, %304 : vector<2x32xf32>
    %307 = arith.divf %305, %306 : vector<2x32xf32>
    %308 = vector.extract_strided_slice %296 {offsets = [0, 32], sizes = [2, 32], strides = [1, 1]} : vector<2x96xf32> to vector<2x32xf32>
    %309 = vector.extract_strided_slice %299 {offsets = [0, 32], sizes = [2, 32], strides = [1, 1]} : vector<2x96xf32> to vector<2x32xf32>
    %310 = arith.addf %308, %309 : vector<2x32xf32>
    %311 = arith.negf %310 : vector<2x32xf32>
    %312 = math.exp %311 : vector<2x32xf32>
    %cst_77 = arith.constant 1.000000e+00 : f32
    %313 = vector.broadcast %cst_77 : f32 to vector<2x32xf32>
    %314 = arith.addf %313, %312 : vector<2x32xf32>
    %315 = arith.divf %313, %314 : vector<2x32xf32>
    %316 = vector.extract_strided_slice %296 {offsets = [0, 64], sizes = [2, 32], strides = [1, 1]} : vector<2x96xf32> to vector<2x32xf32>
    %317 = vector.extract_strided_slice %299 {offsets = [0, 64], sizes = [2, 32], strides = [1, 1]} : vector<2x96xf32> to vector<2x32xf32>
    %318 = arith.mulf %307, %317 : vector<2x32xf32>
    %319 = arith.addf %316, %318 : vector<2x32xf32>
    %320 = math.tanh %319 : vector<2x32xf32>
    %cst_78 = arith.constant 1.000000e+00 : f32
    %321 = vector.broadcast %cst_78 : f32 to vector<2x32xf32>
    %322 = arith.subf %321, %315 : vector<2x32xf32>
    %323 = arith.mulf %322, %320 : vector<2x32xf32>
    %324 = arith.mulf %315, %4 : vector<2x32xf32>
    %325 = arith.addf %323, %324 : vector<2x32xf32>
    %326 = arith.index_cast %293 : i32 to index
    %c0_79 = arith.constant 0 : index
    %c0_80 = arith.constant 0 : index
    %327 = vector.load %arg8[%326, %c0_79, %c0_80] : memref<8x2x32xf32, #tpu.memory_space<vmem>>, vector<1x2x32xf32>
    %328 = vector.shape_cast %327 : vector<1x2x32xf32> to vector<2x32xf32>
    %329 = vector.shape_cast %325 : vector<2x32xf32> to vector<1x2x32xf32>
    tpu.vector_store %arg8[%326, %c0_79, %c0_80], %329 {strides = array<i32>} : memref<8x2x32xf32, #tpu.memory_space<vmem>>, vector<1x2x32xf32>,
    %c1_i32_81 = arith.constant 1 : i32
    %c7_i32_82 = arith.constant 7 : i32
    %330 = arith.subi %c7_i32_82, %c1_i32_81 : i32
    %331 = arith.index_cast %330 : i32 to index
    %c0_83 = arith.constant 0 : index
    %c0_84 = arith.constant 0 : index
    %332 = vector.load %arg1[%331, %c0_83, %c0_84] : memref<8x2x96xf32, #tpu.memory_space<vmem>>, vector<1x2x96xf32>
    %333 = vector.shape_cast %332 : vector<1x2x96xf32> to vector<2x96xf32>
    %cst_85 = arith.constant dense<0.000000e+00> : vector<2x96xf32>
    %334 = tpu.matmul %325, %2, %cst_85 {dimension_numbers = #tpu.dot_dimension_numbers<[1], [0], [0], [1], [0, 0, 1, 1], [], []>} : vector<2x32xf32>, vector<32x96xf32>, vector<2x96xf32> -> vector<2x96xf32>
    %335 = vector.broadcast %3 : vector<1x96xf32> to vector<2x96xf32>
    %336 = arith.addf %334, %335 : vector<2x96xf32>
    %337 = vector.extract_strided_slice %333 {offsets = [0, 0], sizes = [2, 32], strides = [1, 1]} : vector<2x96xf32> to vector<2x32xf32>
    %338 = vector.extract_strided_slice %336 {offsets = [0, 0], sizes = [2, 32], strides = [1, 1]} : vector<2x96xf32> to vector<2x32xf32>
    %339 = arith.addf %337, %338 : vector<2x32xf32>
    %340 = arith.negf %339 : vector<2x32xf32>
    %341 = math.exp %340 : vector<2x32xf32>
    %cst_86 = arith.constant 1.000000e+00 : f32
    %342 = vector.broadcast %cst_86 : f32 to vector<2x32xf32>
    %343 = arith.addf %342, %341 : vector<2x32xf32>
    %344 = arith.divf %342, %343 : vector<2x32xf32>
    %345 = vector.extract_strided_slice %333 {offsets = [0, 32], sizes = [2, 32], strides = [1, 1]} : vector<2x96xf32> to vector<2x32xf32>
    %346 = vector.extract_strided_slice %336 {offsets = [0, 32], sizes = [2, 32], strides = [1, 1]} : vector<2x96xf32> to vector<2x32xf32>
    %347 = arith.addf %345, %346 : vector<2x32xf32>
    %348 = arith.negf %347 : vector<2x32xf32>
    %349 = math.exp %348 : vector<2x32xf32>
    %cst_87 = arith.constant 1.000000e+00 : f32
    %350 = vector.broadcast %cst_87 : f32 to vector<2x32xf32>
    %351 = arith.addf %350, %349 : vector<2x32xf32>
    %352 = arith.divf %350, %351 : vector<2x32xf32>
    %353 = vector.extract_strided_slice %333 {offsets = [0, 64], sizes = [2, 32], strides = [1, 1]} : vector<2x96xf32> to vector<2x32xf32>
    %354 = vector.extract_strided_slice %336 {offsets = [0, 64], sizes = [2, 32], strides = [1, 1]} : vector<2x96xf32> to vector<2x32xf32>
    %355 = arith.mulf %344, %354 : vector<2x32xf32>
    %356 = arith.addf %353, %355 : vector<2x32xf32>
    %357 = math.tanh %356 : vector<2x32xf32>
    %cst_88 = arith.constant 1.000000e+00 : f32
    %358 = vector.broadcast %cst_88 : f32 to vector<2x32xf32>
    %359 = arith.subf %358, %352 : vector<2x32xf32>
    %360 = arith.mulf %359, %357 : vector<2x32xf32>
    %361 = arith.mulf %352, %325 : vector<2x32xf32>
    %362 = arith.addf %360, %361 : vector<2x32xf32>
    %363 = arith.index_cast %330 : i32 to index
    %c0_89 = arith.constant 0 : index
    %c0_90 = arith.constant 0 : index
    %364 = vector.load %arg8[%363, %c0_89, %c0_90] : memref<8x2x32xf32, #tpu.memory_space<vmem>>, vector<1x2x32xf32>
    %365 = vector.shape_cast %364 : vector<1x2x32xf32> to vector<2x32xf32>
    %366 = vector.shape_cast %362 : vector<2x32xf32> to vector<1x2x32xf32>
    tpu.vector_store %arg8[%363, %c0_89, %c0_90], %366 {strides = array<i32>} : memref<8x2x32xf32, #tpu.memory_space<vmem>>, vector<1x2x32xf32>,
    %c2_i32_91 = arith.constant 2 : i32
    %c7_i32_92 = arith.constant 7 : i32
    %367 = arith.subi %c7_i32_92, %c2_i32_91 : i32
    %368 = arith.index_cast %367 : i32 to index
    %c0_93 = arith.constant 0 : index
    %c0_94 = arith.constant 0 : index
    %369 = vector.load %arg1[%368, %c0_93, %c0_94] : memref<8x2x96xf32, #tpu.memory_space<vmem>>, vector<1x2x96xf32>
    %370 = vector.shape_cast %369 : vector<1x2x96xf32> to vector<2x96xf32>
    %cst_95 = arith.constant dense<0.000000e+00> : vector<2x96xf32>
    %371 = tpu.matmul %362, %2, %cst_95 {dimension_numbers = #tpu.dot_dimension_numbers<[1], [0], [0], [1], [0, 0, 1, 1], [], []>} : vector<2x32xf32>, vector<32x96xf32>, vector<2x96xf32> -> vector<2x96xf32>
    %372 = vector.broadcast %3 : vector<1x96xf32> to vector<2x96xf32>
    %373 = arith.addf %371, %372 : vector<2x96xf32>
    %374 = vector.extract_strided_slice %370 {offsets = [0, 0], sizes = [2, 32], strides = [1, 1]} : vector<2x96xf32> to vector<2x32xf32>
    %375 = vector.extract_strided_slice %373 {offsets = [0, 0], sizes = [2, 32], strides = [1, 1]} : vector<2x96xf32> to vector<2x32xf32>
    %376 = arith.addf %374, %375 : vector<2x32xf32>
    %377 = arith.negf %376 : vector<2x32xf32>
    %378 = math.exp %377 : vector<2x32xf32>
    %cst_96 = arith.constant 1.000000e+00 : f32
    %379 = vector.broadcast %cst_96 : f32 to vector<2x32xf32>
    %380 = arith.addf %379, %378 : vector<2x32xf32>
    %381 = arith.divf %379, %380 : vector<2x32xf32>
    %382 = vector.extract_strided_slice %370 {offsets = [0, 32], sizes = [2, 32], strides = [1, 1]} : vector<2x96xf32> to vector<2x32xf32>
    %383 = vector.extract_strided_slice %373 {offsets = [0, 32], sizes = [2, 32], strides = [1, 1]} : vector<2x96xf32> to vector<2x32xf32>
    %384 = arith.addf %382, %383 : vector<2x32xf32>
    %385 = arith.negf %384 : vector<2x32xf32>
    %386 = math.exp %385 : vector<2x32xf32>
    %cst_97 = arith.constant 1.000000e+00 : f32
    %387 = vector.broadcast %cst_97 : f32 to vector<2x32xf32>
    %388 = arith.addf %387, %386 : vector<2x32xf32>
    %389 = arith.divf %387, %388 : vector<2x32xf32>
    %390 = vector.extract_strided_slice %370 {offsets = [0, 64], sizes = [2, 32], strides = [1, 1]} : vector<2x96xf32> to vector<2x32xf32>
    %391 = vector.extract_strided_slice %373 {offsets = [0, 64], sizes = [2, 32], strides = [1, 1]} : vector<2x96xf32> to vector<2x32xf32>
    %392 = arith.mulf %381, %391 : vector<2x32xf32>
    %393 = arith.addf %390, %392 : vector<2x32xf32>
    %394 = math.tanh %393 : vector<2x32xf32>
    %cst_98 = arith.constant 1.000000e+00 : f32
    %395 = vector.broadcast %cst_98 : f32 to vector<2x32xf32>
    %396 = arith.subf %395, %389 : vector<2x32xf32>
    %397 = arith.mulf %396, %394 : vector<2x32xf32>
    %398 = arith.mulf %389, %362 : vector<2x32xf32>
    %399 = arith.addf %397, %398 : vector<2x32xf32>
    %400 = arith.index_cast %367 : i32 to index
    %c0_99 = arith.constant 0 : index
    %c0_100 = arith.constant 0 : index
    %401 = vector.load %arg8[%400, %c0_99, %c0_100] : memref<8x2x32xf32, #tpu.memory_space<vmem>>, vector<1x2x32xf32>
    %402 = vector.shape_cast %401 : vector<1x2x32xf32> to vector<2x32xf32>
    %403 = vector.shape_cast %399 : vector<2x32xf32> to vector<1x2x32xf32>
    tpu.vector_store %arg8[%400, %c0_99, %c0_100], %403 {strides = array<i32>} : memref<8x2x32xf32, #tpu.memory_space<vmem>>, vector<1x2x32xf32>,
    %c3_i32_101 = arith.constant 3 : i32
    %c7_i32_102 = arith.constant 7 : i32
    %404 = arith.subi %c7_i32_102, %c3_i32_101 : i32
    %405 = arith.index_cast %404 : i32 to index
    %c0_103 = arith.constant 0 : index
    %c0_104 = arith.constant 0 : index
    %406 = vector.load %arg1[%405, %c0_103, %c0_104] : memref<8x2x96xf32, #tpu.memory_space<vmem>>, vector<1x2x96xf32>
    %407 = vector.shape_cast %406 : vector<1x2x96xf32> to vector<2x96xf32>
    %cst_105 = arith.constant dense<0.000000e+00> : vector<2x96xf32>
    %408 = tpu.matmul %399, %2, %cst_105 {dimension_numbers = #tpu.dot_dimension_numbers<[1], [0], [0], [1], [0, 0, 1, 1], [], []>} : vector<2x32xf32>, vector<32x96xf32>, vector<2x96xf32> -> vector<2x96xf32>
    %409 = vector.broadcast %3 : vector<1x96xf32> to vector<2x96xf32>
    %410 = arith.addf %408, %409 : vector<2x96xf32>
    %411 = vector.extract_strided_slice %407 {offsets = [0, 0], sizes = [2, 32], strides = [1, 1]} : vector<2x96xf32> to vector<2x32xf32>
    %412 = vector.extract_strided_slice %410 {offsets = [0, 0], sizes = [2, 32], strides = [1, 1]} : vector<2x96xf32> to vector<2x32xf32>
    %413 = arith.addf %411, %412 : vector<2x32xf32>
    %414 = arith.negf %413 : vector<2x32xf32>
    %415 = math.exp %414 : vector<2x32xf32>
    %cst_106 = arith.constant 1.000000e+00 : f32
    %416 = vector.broadcast %cst_106 : f32 to vector<2x32xf32>
    %417 = arith.addf %416, %415 : vector<2x32xf32>
    %418 = arith.divf %416, %417 : vector<2x32xf32>
    %419 = vector.extract_strided_slice %407 {offsets = [0, 32], sizes = [2, 32], strides = [1, 1]} : vector<2x96xf32> to vector<2x32xf32>
    %420 = vector.extract_strided_slice %410 {offsets = [0, 32], sizes = [2, 32], strides = [1, 1]} : vector<2x96xf32> to vector<2x32xf32>
    %421 = arith.addf %419, %420 : vector<2x32xf32>
    %422 = arith.negf %421 : vector<2x32xf32>
    %423 = math.exp %422 : vector<2x32xf32>
    %cst_107 = arith.constant 1.000000e+00 : f32
    %424 = vector.broadcast %cst_107 : f32 to vector<2x32xf32>
    %425 = arith.addf %424, %423 : vector<2x32xf32>
    %426 = arith.divf %424, %425 : vector<2x32xf32>
    %427 = vector.extract_strided_slice %407 {offsets = [0, 64], sizes = [2, 32], strides = [1, 1]} : vector<2x96xf32> to vector<2x32xf32>
    %428 = vector.extract_strided_slice %410 {offsets = [0, 64], sizes = [2, 32], strides = [1, 1]} : vector<2x96xf32> to vector<2x32xf32>
    %429 = arith.mulf %418, %428 : vector<2x32xf32>
    %430 = arith.addf %427, %429 : vector<2x32xf32>
    %431 = math.tanh %430 : vector<2x32xf32>
    %cst_108 = arith.constant 1.000000e+00 : f32
    %432 = vector.broadcast %cst_108 : f32 to vector<2x32xf32>
    %433 = arith.subf %432, %426 : vector<2x32xf32>
    %434 = arith.mulf %433, %431 : vector<2x32xf32>
    %435 = arith.mulf %426, %399 : vector<2x32xf32>
    %436 = arith.addf %434, %435 : vector<2x32xf32>
    %437 = arith.index_cast %404 : i32 to index
    %c0_109 = arith.constant 0 : index
    %c0_110 = arith.constant 0 : index
    %438 = vector.load %arg8[%437, %c0_109, %c0_110] : memref<8x2x32xf32, #tpu.memory_space<vmem>>, vector<1x2x32xf32>
    %439 = vector.shape_cast %438 : vector<1x2x32xf32> to vector<2x32xf32>
    %440 = vector.shape_cast %436 : vector<2x32xf32> to vector<1x2x32xf32>
    tpu.vector_store %arg8[%437, %c0_109, %c0_110], %440 {strides = array<i32>} : memref<8x2x32xf32, #tpu.memory_space<vmem>>, vector<1x2x32xf32>,
    %c4_i32_111 = arith.constant 4 : i32
    %c7_i32_112 = arith.constant 7 : i32
    %441 = arith.subi %c7_i32_112, %c4_i32_111 : i32
    %442 = arith.index_cast %441 : i32 to index
    %c0_113 = arith.constant 0 : index
    %c0_114 = arith.constant 0 : index
    %443 = vector.load %arg1[%442, %c0_113, %c0_114] : memref<8x2x96xf32, #tpu.memory_space<vmem>>, vector<1x2x96xf32>
    %444 = vector.shape_cast %443 : vector<1x2x96xf32> to vector<2x96xf32>
    %cst_115 = arith.constant dense<0.000000e+00> : vector<2x96xf32>
    %445 = tpu.matmul %436, %2, %cst_115 {dimension_numbers = #tpu.dot_dimension_numbers<[1], [0], [0], [1], [0, 0, 1, 1], [], []>} : vector<2x32xf32>, vector<32x96xf32>, vector<2x96xf32> -> vector<2x96xf32>
    %446 = vector.broadcast %3 : vector<1x96xf32> to vector<2x96xf32>
    %447 = arith.addf %445, %446 : vector<2x96xf32>
    %448 = vector.extract_strided_slice %444 {offsets = [0, 0], sizes = [2, 32], strides = [1, 1]} : vector<2x96xf32> to vector<2x32xf32>
    %449 = vector.extract_strided_slice %447 {offsets = [0, 0], sizes = [2, 32], strides = [1, 1]} : vector<2x96xf32> to vector<2x32xf32>
    %450 = arith.addf %448, %449 : vector<2x32xf32>
    %451 = arith.negf %450 : vector<2x32xf32>
    %452 = math.exp %451 : vector<2x32xf32>
    %cst_116 = arith.constant 1.000000e+00 : f32
    %453 = vector.broadcast %cst_116 : f32 to vector<2x32xf32>
    %454 = arith.addf %453, %452 : vector<2x32xf32>
    %455 = arith.divf %453, %454 : vector<2x32xf32>
    %456 = vector.extract_strided_slice %444 {offsets = [0, 32], sizes = [2, 32], strides = [1, 1]} : vector<2x96xf32> to vector<2x32xf32>
    %457 = vector.extract_strided_slice %447 {offsets = [0, 32], sizes = [2, 32], strides = [1, 1]} : vector<2x96xf32> to vector<2x32xf32>
    %458 = arith.addf %456, %457 : vector<2x32xf32>
    %459 = arith.negf %458 : vector<2x32xf32>
    %460 = math.exp %459 : vector<2x32xf32>
    %cst_117 = arith.constant 1.000000e+00 : f32
    %461 = vector.broadcast %cst_117 : f32 to vector<2x32xf32>
    %462 = arith.addf %461, %460 : vector<2x32xf32>
    %463 = arith.divf %461, %462 : vector<2x32xf32>
    %464 = vector.extract_strided_slice %444 {offsets = [0, 64], sizes = [2, 32], strides = [1, 1]} : vector<2x96xf32> to vector<2x32xf32>
    %465 = vector.extract_strided_slice %447 {offsets = [0, 64], sizes = [2, 32], strides = [1, 1]} : vector<2x96xf32> to vector<2x32xf32>
    %466 = arith.mulf %455, %465 : vector<2x32xf32>
    %467 = arith.addf %464, %466 : vector<2x32xf32>
    %468 = math.tanh %467 : vector<2x32xf32>
    %cst_118 = arith.constant 1.000000e+00 : f32
    %469 = vector.broadcast %cst_118 : f32 to vector<2x32xf32>
    %470 = arith.subf %469, %463 : vector<2x32xf32>
    %471 = arith.mulf %470, %468 : vector<2x32xf32>
    %472 = arith.mulf %463, %436 : vector<2x32xf32>
    %473 = arith.addf %471, %472 : vector<2x32xf32>
    %474 = arith.index_cast %441 : i32 to index
    %c0_119 = arith.constant 0 : index
    %c0_120 = arith.constant 0 : index
    %475 = vector.load %arg8[%474, %c0_119, %c0_120] : memref<8x2x32xf32, #tpu.memory_space<vmem>>, vector<1x2x32xf32>
    %476 = vector.shape_cast %475 : vector<1x2x32xf32> to vector<2x32xf32>
    %477 = vector.shape_cast %473 : vector<2x32xf32> to vector<1x2x32xf32>
    tpu.vector_store %arg8[%474, %c0_119, %c0_120], %477 {strides = array<i32>} : memref<8x2x32xf32, #tpu.memory_space<vmem>>, vector<1x2x32xf32>,
    %c5_i32_121 = arith.constant 5 : i32
    %c7_i32_122 = arith.constant 7 : i32
    %478 = arith.subi %c7_i32_122, %c5_i32_121 : i32
    %479 = arith.index_cast %478 : i32 to index
    %c0_123 = arith.constant 0 : index
    %c0_124 = arith.constant 0 : index
    %480 = vector.load %arg1[%479, %c0_123, %c0_124] : memref<8x2x96xf32, #tpu.memory_space<vmem>>, vector<1x2x96xf32>
    %481 = vector.shape_cast %480 : vector<1x2x96xf32> to vector<2x96xf32>
    %cst_125 = arith.constant dense<0.000000e+00> : vector<2x96xf32>
    %482 = tpu.matmul %473, %2, %cst_125 {dimension_numbers = #tpu.dot_dimension_numbers<[1], [0], [0], [1], [0, 0, 1, 1], [], []>} : vector<2x32xf32>, vector<32x96xf32>, vector<2x96xf32> -> vector<2x96xf32>
    %483 = vector.broadcast %3 : vector<1x96xf32> to vector<2x96xf32>
    %484 = arith.addf %482, %483 : vector<2x96xf32>
    %485 = vector.extract_strided_slice %481 {offsets = [0, 0], sizes = [2, 32], strides = [1, 1]} : vector<2x96xf32> to vector<2x32xf32>
    %486 = vector.extract_strided_slice %484 {offsets = [0, 0], sizes = [2, 32], strides = [1, 1]} : vector<2x96xf32> to vector<2x32xf32>
    %487 = arith.addf %485, %486 : vector<2x32xf32>
    %488 = arith.negf %487 : vector<2x32xf32>
    %489 = math.exp %488 : vector<2x32xf32>
    %cst_126 = arith.constant 1.000000e+00 : f32
    %490 = vector.broadcast %cst_126 : f32 to vector<2x32xf32>
    %491 = arith.addf %490, %489 : vector<2x32xf32>
    %492 = arith.divf %490, %491 : vector<2x32xf32>
    %493 = vector.extract_strided_slice %481 {offsets = [0, 32], sizes = [2, 32], strides = [1, 1]} : vector<2x96xf32> to vector<2x32xf32>
    %494 = vector.extract_strided_slice %484 {offsets = [0, 32], sizes = [2, 32], strides = [1, 1]} : vector<2x96xf32> to vector<2x32xf32>
    %495 = arith.addf %493, %494 : vector<2x32xf32>
    %496 = arith.negf %495 : vector<2x32xf32>
    %497 = math.exp %496 : vector<2x32xf32>
    %cst_127 = arith.constant 1.000000e+00 : f32
    %498 = vector.broadcast %cst_127 : f32 to vector<2x32xf32>
    %499 = arith.addf %498, %497 : vector<2x32xf32>
    %500 = arith.divf %498, %499 : vector<2x32xf32>
    %501 = vector.extract_strided_slice %481 {offsets = [0, 64], sizes = [2, 32], strides = [1, 1]} : vector<2x96xf32> to vector<2x32xf32>
    %502 = vector.extract_strided_slice %484 {offsets = [0, 64], sizes = [2, 32], strides = [1, 1]} : vector<2x96xf32> to vector<2x32xf32>
    %503 = arith.mulf %492, %502 : vector<2x32xf32>
    %504 = arith.addf %501, %503 : vector<2x32xf32>
    %505 = math.tanh %504 : vector<2x32xf32>
    %cst_128 = arith.constant 1.000000e+00 : f32
    %506 = vector.broadcast %cst_128 : f32 to vector<2x32xf32>
    %507 = arith.subf %506, %500 : vector<2x32xf32>
    %508 = arith.mulf %507, %505 : vector<2x32xf32>
    %509 = arith.mulf %500, %473 : vector<2x32xf32>
    %510 = arith.addf %508, %509 : vector<2x32xf32>
    %511 = arith.index_cast %478 : i32 to index
    %c0_129 = arith.constant 0 : index
    %c0_130 = arith.constant 0 : index
    %512 = vector.load %arg8[%511, %c0_129, %c0_130] : memref<8x2x32xf32, #tpu.memory_space<vmem>>, vector<1x2x32xf32>
    %513 = vector.shape_cast %512 : vector<1x2x32xf32> to vector<2x32xf32>
    %514 = vector.shape_cast %510 : vector<2x32xf32> to vector<1x2x32xf32>
    tpu.vector_store %arg8[%511, %c0_129, %c0_130], %514 {strides = array<i32>} : memref<8x2x32xf32, #tpu.memory_space<vmem>>, vector<1x2x32xf32>,
    %c6_i32_131 = arith.constant 6 : i32
    %c7_i32_132 = arith.constant 7 : i32
    %515 = arith.subi %c7_i32_132, %c6_i32_131 : i32
    %516 = arith.index_cast %515 : i32 to index
    %c0_133 = arith.constant 0 : index
    %c0_134 = arith.constant 0 : index
    %517 = vector.load %arg1[%516, %c0_133, %c0_134] : memref<8x2x96xf32, #tpu.memory_space<vmem>>, vector<1x2x96xf32>
    %518 = vector.shape_cast %517 : vector<1x2x96xf32> to vector<2x96xf32>
    %cst_135 = arith.constant dense<0.000000e+00> : vector<2x96xf32>
    %519 = tpu.matmul %510, %2, %cst_135 {dimension_numbers = #tpu.dot_dimension_numbers<[1], [0], [0], [1], [0, 0, 1, 1], [], []>} : vector<2x32xf32>, vector<32x96xf32>, vector<2x96xf32> -> vector<2x96xf32>
    %520 = vector.broadcast %3 : vector<1x96xf32> to vector<2x96xf32>
    %521 = arith.addf %519, %520 : vector<2x96xf32>
    %522 = vector.extract_strided_slice %518 {offsets = [0, 0], sizes = [2, 32], strides = [1, 1]} : vector<2x96xf32> to vector<2x32xf32>
    %523 = vector.extract_strided_slice %521 {offsets = [0, 0], sizes = [2, 32], strides = [1, 1]} : vector<2x96xf32> to vector<2x32xf32>
    %524 = arith.addf %522, %523 : vector<2x32xf32>
    %525 = arith.negf %524 : vector<2x32xf32>
    %526 = math.exp %525 : vector<2x32xf32>
    %cst_136 = arith.constant 1.000000e+00 : f32
    %527 = vector.broadcast %cst_136 : f32 to vector<2x32xf32>
    %528 = arith.addf %527, %526 : vector<2x32xf32>
    %529 = arith.divf %527, %528 : vector<2x32xf32>
    %530 = vector.extract_strided_slice %518 {offsets = [0, 32], sizes = [2, 32], strides = [1, 1]} : vector<2x96xf32> to vector<2x32xf32>
    %531 = vector.extract_strided_slice %521 {offsets = [0, 32], sizes = [2, 32], strides = [1, 1]} : vector<2x96xf32> to vector<2x32xf32>
    %532 = arith.addf %530, %531 : vector<2x32xf32>
    %533 = arith.negf %532 : vector<2x32xf32>
    %534 = math.exp %533 : vector<2x32xf32>
    %cst_137 = arith.constant 1.000000e+00 : f32
    %535 = vector.broadcast %cst_137 : f32 to vector<2x32xf32>
    %536 = arith.addf %535, %534 : vector<2x32xf32>
    %537 = arith.divf %535, %536 : vector<2x32xf32>
    %538 = vector.extract_strided_slice %518 {offsets = [0, 64], sizes = [2, 32], strides = [1, 1]} : vector<2x96xf32> to vector<2x32xf32>
    %539 = vector.extract_strided_slice %521 {offsets = [0, 64], sizes = [2, 32], strides = [1, 1]} : vector<2x96xf32> to vector<2x32xf32>
    %540 = arith.mulf %529, %539 : vector<2x32xf32>
    %541 = arith.addf %538, %540 : vector<2x32xf32>
    %542 = math.tanh %541 : vector<2x32xf32>
    %cst_138 = arith.constant 1.000000e+00 : f32
    %543 = vector.broadcast %cst_138 : f32 to vector<2x32xf32>
    %544 = arith.subf %543, %537 : vector<2x32xf32>
    %545 = arith.mulf %544, %542 : vector<2x32xf32>
    %546 = arith.mulf %537, %510 : vector<2x32xf32>
    %547 = arith.addf %545, %546 : vector<2x32xf32>
    %548 = arith.index_cast %515 : i32 to index
    %c0_139 = arith.constant 0 : index
    %c0_140 = arith.constant 0 : index
    %549 = vector.load %arg8[%548, %c0_139, %c0_140] : memref<8x2x32xf32, #tpu.memory_space<vmem>>, vector<1x2x32xf32>
    %550 = vector.shape_cast %549 : vector<1x2x32xf32> to vector<2x32xf32>
    %551 = vector.shape_cast %547 : vector<2x32xf32> to vector<1x2x32xf32>
    tpu.vector_store %arg8[%548, %c0_139, %c0_140], %551 {strides = array<i32>} : memref<8x2x32xf32, #tpu.memory_space<vmem>>, vector<1x2x32xf32>,
    %c7_i32_141 = arith.constant 7 : i32
    %c7_i32_142 = arith.constant 7 : i32
    %552 = arith.subi %c7_i32_142, %c7_i32_141 : i32
    %553 = arith.index_cast %552 : i32 to index
    %c0_143 = arith.constant 0 : index
    %c0_144 = arith.constant 0 : index
    %554 = vector.load %arg1[%553, %c0_143, %c0_144] : memref<8x2x96xf32, #tpu.memory_space<vmem>>, vector<1x2x96xf32>
    %555 = vector.shape_cast %554 : vector<1x2x96xf32> to vector<2x96xf32>
    %cst_145 = arith.constant dense<0.000000e+00> : vector<2x96xf32>
    %556 = tpu.matmul %547, %2, %cst_145 {dimension_numbers = #tpu.dot_dimension_numbers<[1], [0], [0], [1], [0, 0, 1, 1], [], []>} : vector<2x32xf32>, vector<32x96xf32>, vector<2x96xf32> -> vector<2x96xf32>
    %557 = vector.broadcast %3 : vector<1x96xf32> to vector<2x96xf32>
    %558 = arith.addf %556, %557 : vector<2x96xf32>
    %559 = vector.extract_strided_slice %555 {offsets = [0, 0], sizes = [2, 32], strides = [1, 1]} : vector<2x96xf32> to vector<2x32xf32>
    %560 = vector.extract_strided_slice %558 {offsets = [0, 0], sizes = [2, 32], strides = [1, 1]} : vector<2x96xf32> to vector<2x32xf32>
    %561 = arith.addf %559, %560 : vector<2x32xf32>
    %562 = arith.negf %561 : vector<2x32xf32>
    %563 = math.exp %562 : vector<2x32xf32>
    %cst_146 = arith.constant 1.000000e+00 : f32
    %564 = vector.broadcast %cst_146 : f32 to vector<2x32xf32>
    %565 = arith.addf %564, %563 : vector<2x32xf32>
    %566 = arith.divf %564, %565 : vector<2x32xf32>
    %567 = vector.extract_strided_slice %555 {offsets = [0, 32], sizes = [2, 32], strides = [1, 1]} : vector<2x96xf32> to vector<2x32xf32>
    %568 = vector.extract_strided_slice %558 {offsets = [0, 32], sizes = [2, 32], strides = [1, 1]} : vector<2x96xf32> to vector<2x32xf32>
    %569 = arith.addf %567, %568 : vector<2x32xf32>
    %570 = arith.negf %569 : vector<2x32xf32>
    %571 = math.exp %570 : vector<2x32xf32>
    %cst_147 = arith.constant 1.000000e+00 : f32
    %572 = vector.broadcast %cst_147 : f32 to vector<2x32xf32>
    %573 = arith.addf %572, %571 : vector<2x32xf32>
    %574 = arith.divf %572, %573 : vector<2x32xf32>
    %575 = vector.extract_strided_slice %555 {offsets = [0, 64], sizes = [2, 32], strides = [1, 1]} : vector<2x96xf32> to vector<2x32xf32>
    %576 = vector.extract_strided_slice %558 {offsets = [0, 64], sizes = [2, 32], strides = [1, 1]} : vector<2x96xf32> to vector<2x32xf32>
    %577 = arith.mulf %566, %576 : vector<2x32xf32>
    %578 = arith.addf %575, %577 : vector<2x32xf32>
    %579 = math.tanh %578 : vector<2x32xf32>
    %cst_148 = arith.constant 1.000000e+00 : f32
    %580 = vector.broadcast %cst_148 : f32 to vector<2x32xf32>
    %581 = arith.subf %580, %574 : vector<2x32xf32>
    %582 = arith.mulf %581, %579 : vector<2x32xf32>
    %583 = arith.mulf %574, %547 : vector<2x32xf32>
    %584 = arith.addf %582, %583 : vector<2x32xf32>
    %585 = arith.index_cast %552 : i32 to index
    %c0_149 = arith.constant 0 : index
    %c0_150 = arith.constant 0 : index
    %586 = vector.load %arg8[%585, %c0_149, %c0_150] : memref<8x2x32xf32, #tpu.memory_space<vmem>>, vector<1x2x32xf32>
    %587 = vector.shape_cast %586 : vector<1x2x32xf32> to vector<2x32xf32>
    %588 = vector.shape_cast %584 : vector<2x32xf32> to vector<1x2x32xf32>
    tpu.vector_store %arg8[%585, %c0_149, %c0_150], %588 {strides = array<i32>} : memref<8x2x32xf32, #tpu.memory_space<vmem>>, vector<1x2x32xf32>,
    %c8_i32_151 = arith.constant 8 : i32
    %c0_152 = arith.constant 0 : index
    %c0_153 = arith.constant 0 : index
    %c0_154 = arith.constant 0 : index
    %589 = vector.load %arg7[%c0_152, %c0_153, %c0_154] : memref<8x2x32xf32, #tpu.memory_space<vmem>>, vector<8x2x32xf32>
    %c0_155 = arith.constant 0 : index
    %c0_156 = arith.constant 0 : index
    %c0_157 = arith.constant 0 : index
    %590 = vector.load %arg8[%c0_155, %c0_156, %c0_157] : memref<8x2x32xf32, #tpu.memory_space<vmem>>, vector<8x2x32xf32>
    %591 = tpu.concatenate %589, %590 in 2 : vector<8x2x32xf32>, vector<8x2x32xf32> -> vector<8x2x64xf32>
    %c0_158 = arith.constant 0 : index
    %c0_159 = arith.constant 0 : index
    %c0_160 = arith.constant 0 : index
    %592 = vector.load %arg6[%c0_158, %c0_159, %c0_160] : memref<8x2x64xf32, #tpu.memory_space<vmem>>, vector<8x2x64xf32>
    tpu.vector_store %arg6[%c0_158, %c0_159, %c0_160], %591 {strides = array<i32>} : memref<8x2x64xf32, #tpu.memory_space<vmem>>, vector<8x2x64xf32>,
    return
  }
}

</mosaic_0001>

<bundles_post_ra>
// kernel: self_matching_forward.3
= control target key start
LH: loop header
LB: loop body
LE: loop exit
PB: predicated region body
PF: predicated region fallthrough
CT: control target
= control target key end

     0   :  { %v2211_v0 = vmov 0.0   ;;  %vm2212_vm0 = vmmov 0   ;;  %s2213_s30 = smov 64   ;;  %s2214_s9 = smov 96   ;;  %vm144_vm1 = vcmask 254976   ;;  %vm40_vm2 = vcmask 261120   ;;  %s2686_s2 = inlined_call_operand.vmem [shape: f32[32,96], index: 2, kind: input, shape index: {}]   ;;  %s2687_s3 = inlined_call_operand.vmem [shape: f32[1,96], index: 3, kind: input, shape index: {}]   ;;  %s2688_s0 = inlined_call_operand.vmem [shape: f32[8,2,96], index: 0, kind: input, shape index: {}]   ;;  %s2689_s4 = inlined_call_operand.vmem [shape: f32[32,96], index: 4, kind: input, shape index: {}]   ;;  %s2690_s5 = inlined_call_operand.vmem [shape: f32[1,96], index: 5, kind: input, shape index: {}]   ;;  %s2691_s1 = inlined_call_operand.vmem [shape: f32[8,2,96], index: 1, kind: input, shape index: {}]   ;;  %s2692_s6 = inlined_call_operand.vmem [shape: f32[8,2,64], index: 6, kind: output, shape index: {}]  }
   0x1   :  { %1933 = vmatprep.subr.mxu0 %v2211_v0  ;;  %v2255_v1 = vld [vmem:[%s2686_s2 + $0x18] sm:$0xff]  ;;  %v2260_v2 = vld [vmem:[%s2686_s2 + $0x10] sm:$0xff]  ;;  %1941 = vmatprep.mubr.msk.f32.mxu0 %vm2212_vm0, %v2211_v0  ;;  %v2270_v3 = vld [vmem:[%s2686_s2 + $0x8] sm:$0xff]  ;;  %vm1794_vm3 = vcmask 517120  }
   0x2   :  { %1934 = vmatpush3.msra.mxu0 %v2255_v1  ;;  %1944 = vmatprep.subr.mxu1 %v2211_v0  ;;  %v2279_v4 = vld [vmem:[%s2686_s2] sm:$0xff] }
   0x3   :  { %1935 = vmatprep.subr.mxu0 %v2211_v0  ;;  %1945 = vmatpush3.msra.mxu1 %v2255_v1  ;;  %v2307_v5 = vld [vmem:[%s2687_s3] ss:$0 sm:$0xff]  ;;  %v1809_v29 = vld [vmem:[%s2688_s0 + $0x2] sm:$0x3]  ;;  %v1812_v49 = vld [vmem:[%s2688_s0 + $0x4] sm:$0x3] }
   0x4   :  { %1936 = vmatpush3.msra.mxu0 %v2260_v2  ;;  %1946 = vmatprep.subr.mxu1 %v2211_v0  ;;  %v33_v9 = vld [vmem:[%s2688_s0] sm:$0x3] }
   0x5   :  { %1937 = vmatprep.subr.mxu0 %v2211_v0  ;;  %1947 = vmatpush3.msra.mxu1 %v2260_v2 }
   0x6   :  { %1938 = vmatpush3.msra.mxu0 %v2270_v3  ;;  %1948 = vmatprep.subr.mxu1 %v2211_v0 }
   0x7   :  { %1939 = vmatprep.subr.mxu0 %v2211_v0  ;;  %1949 = vmatpush3.msra.mxu1 %v2270_v3 }
   0x8   :  { %1940 = vmatpush3.msra.mxu0 %v2279_v4  ;;  %1950 = vmatprep.subr.mxu1 %v2211_v0 }
   0x9   :  { %1942 = vmatmul.mubr.f32.vlgmr.msra.gmra.mxu0 %v2211_v0  ;;  %1951 = vmatpush3.msra.mxu1 %v2279_v4 }
   0xa   :  { %1952 = vmatprep.mubr.msk.f32.mxu1 %vm2212_vm0, %v2211_v0  ;;  %1955 = vmatprep.subr.mxu0 %v2211_v0 }
   0xb   :  { %1956 = vmatpush3.msra.mxu0 %v2255_v1  ;;  %1963 = vmatprep.mubr.msk.f32.mxu0 %vm2212_vm0, %v2211_v0 }
   0xc   :  { %1957 = vmatprep.subr.mxu0 %v2211_v0  ;;  %1966 = vmatprep.subr.mxu1 %v2211_v0 }
   0xd   :  { %1958 = vmatpush3.msra.mxu0 %v2260_v2 }
   0xe   :  { %1959 = vmatprep.subr.mxu0 %v2211_v0 }
   0xf   :  { %1960 = vmatpush3.msra.mxu0 %v2270_v3 }
  0x10   :  { %1961 = vmatprep.subr.mxu0 %v2211_v0 }
  0x11   :  { %1962 = vmatpush3.msra.mxu0 %v2279_v4 }
  0x12   :  { %1977 = vmatprep.subr.mxu0 %v2211_v0 }
  0xc9   :  { %v110_v6 = vpop.f32.mrf.mxu0 }
  0xca   :  { %v111_v7 = vadd.f32 %v2307_v5, %v110_v6 }
  0xcb   :  { %v1943_v8 = vpop.f32.mrf.mxu0 }
  0xcc   :  { %122 = vrot.lane.b32.xlu0 %v111_v7, %s2213_s30  ;;  %v114_v10 = vadd.f32 %v111_v7, %v33_v9 }
  0xce   :  { %v1808_v11 = vmul.f32 -1.442695, %v114_v10 }
  0xd0   :  { %2114 = vpow2.f32 %v1808_v11  ;;  %v1815_v11 = vld [vmem:[%s2688_s0 + $0x6] sm:$0x3] }
  0xdd   :  { %v2115_v12 = vpop.eup %2114 }
  0xde   :  { %v118_v13 = vadd.f32 1.0, %v2115_v12 }
  0xe0   :  { %2116 = vrcp.f32 %v118_v13 }
  0xed   :  { %v2117_v14 = vpop.eup %2116 }
  0xee   :  { %v132_v20 = vsub.f32 1.0, %v2117_v14  ;;  %v138_v22 = vmul.f32 0.0, %v2117_v14 }
 0x13e   :  { %v123_v15 = vpop.permute.xlu0 %122 }
 0x13f   :  { %v125_v16 = vmul.f32 %v2117_v14, %v123_v15 }
 0x141   :  { %127 = vrot.lane.b32.xlu0 %v125_v16, %s2213_s30 }
 0x1b3   :  { %v128_v17 = vpop.permute.xlu0 %127 }
 0x1b4   :  { %v130_v18 = vadd.f32 %v128_v17, %v33_v9 }
 0x1b6   :  { %2118 = vtanh.f32 %v130_v18 }
 0x1c3   :  { %v2119_v19 = vpop.eup %2118 }
 0x1c4   :  { %134 = vrot.lane.b32.xlu1 %v2119_v19, %s2214_s9 }
 0x236   :  { %v135_v21 = vpop.permute.xlu1 %134 }
 0x237   :  { %v137_v23 = vmul.f32 %v135_v21, %v132_v20 }
 0x239   :  { %v139_v24 = vadd.f32 %v138_v22, %v137_v23 }
 0x23b   :  { %141 = vrot.lane.b32.xlu1 %v139_v24, %s2214_s9 }
 0x2ad   :  { %v142_v25 = vpop.permute.xlu1 %141 }
 0x2ae   :  { %145 = vst.msk [vmem:[#allocation2] sm:$0x3] %vm144_vm1, %v142_v25  ;;  %1953 = vmatmul.mubr.msk.f32.vlgmr.msra.gmra.mxu1 %vm40_vm2, %v142_v25 }
 0x2af   :  { %1967 = vmatpush3.msra.mxu1 %v2255_v1  ;;  %1974 = vmatprep.mubr.msk.f32.mxu1 %vm2212_vm0, %v2211_v0 }
 0x2b0   :  { %1968 = vmatprep.subr.mxu1 %v2211_v0 }
 0x2b1   :  { %1969 = vmatpush3.msra.mxu1 %v2260_v2 }
 0x2b2   :  { %1970 = vmatprep.subr.mxu1 %v2211_v0 }
 0x2b3   :  { %1971 = vmatpush3.msra.mxu1 %v2270_v3 }
 0x2b4   :  { %1972 = vmatprep.subr.mxu1 %v2211_v0 }
 0x2b5   :  { %1973 = vmatpush3.msra.mxu1 %v2279_v4 }
 0x2b6   :  { %1988 = vmatprep.subr.mxu1 %v2211_v0 }
 0x36e   :  { %v216_v26 = vpop.f32.mrf.mxu1 }
 0x36f   :  { %v217_v27 = vadd.f32 %v2307_v5, %v216_v26 }
 0x370   :  { %v1954_v28 = vpop.f32.mrf.mxu1 }
 0x371   :  { %228 = vrot.lane.b32.xlu0 %v217_v27, %s2213_s30  ;;  %v220_v30 = vadd.f32 %v1809_v29, %v217_v27 }
 0x373   :  { %v1811_v31 = vmul.f32 -1.442695, %v220_v30 }
 0x375   :  { %2120 = vpow2.f32 %v1811_v31  ;;  %v1818_v31 = vld [vmem:[%s2688_s0 + $0x8] sm:$0x3] }
 0x382   :  { %v2121_v32 = vpop.eup %2120 }
 0x383   :  { %v224_v33 = vadd.f32 1.0, %v2121_v32 }
 0x385   :  { %2122 = vrcp.f32 %v224_v33 }
 0x392   :  { %v2123_v34 = vpop.eup %2122 }
 0x393   :  { %v238_v40 = vsub.f32 1.0, %v2123_v34  ;;  %v244_v42 = vmul.f32 %v2123_v34, %v139_v24 }
 0x3e3   :  { %v229_v35 = vpop.permute.xlu0 %228 }
 0x3e4   :  { %v231_v36 = vmul.f32 %v2123_v34, %v229_v35 }
 0x3e6   :  { %233 = vrot.lane.b32.xlu1 %v231_v36, %s2213_s30 }
 0x458   :  { %v234_v37 = vpop.permute.xlu1 %233 }
 0x459   :  { %v236_v38 = vadd.f32 %v1809_v29, %v234_v37 }
 0x45b   :  { %2124 = vtanh.f32 %v236_v38 }
 0x468   :  { %v2125_v39 = vpop.eup %2124 }
 0x469   :  { %240 = vrot.lane.b32.xlu0 %v2125_v39, %s2214_s9 }
 0x4db   :  { %v241_v41 = vpop.permute.xlu0 %240 }
 0x4dc   :  { %v243_v43 = vmul.f32 %v241_v41, %v238_v40 }
 0x4de   :  { %v245_v44 = vadd.f32 %v244_v42, %v243_v43 }
 0x4e0   :  { %247 = vrot.lane.b32.xlu1 %v245_v44, %s2214_s9 }
 0x552   :  { %v248_v45 = vpop.permute.xlu1 %247 }
 0x553   :  { %251 = vst.msk [vmem:[#allocation2 + $0x2] sm:$0x3] %vm144_vm1, %v248_v45  ;;  %1964 = vmatmul.mubr.msk.f32.vlgmr.msra.gmra.mxu0 %vm40_vm2, %v248_v45 }
 0x554   :  { %1978 = vmatpush3.msra.mxu0 %v2255_v1  ;;  %1985 = vmatprep.mubr.msk.f32.mxu0 %vm2212_vm0, %v2211_v0 }
 0x555   :  { %1979 = vmatprep.subr.mxu0 %v2211_v0 }
 0x556   :  { %1980 = vmatpush3.msra.mxu0 %v2260_v2 }
 0x557   :  { %1981 = vmatprep.subr.mxu0 %v2211_v0 }
 0x558   :  { %1982 = vmatpush3.msra.mxu0 %v2270_v3 }
 0x559   :  { %1983 = vmatprep.subr.mxu0 %v2211_v0 }
 0x55a   :  { %1984 = vmatpush3.msra.mxu0 %v2279_v4 }
 0x55b   :  { %1999 = vmatprep.subr.mxu0 %v2211_v0 }
 0x613   :  { %v322_v46 = vpop.f32.mrf.mxu0 }
 0x614   :  { %v323_v47 = vadd.f32 %v2307_v5, %v322_v46 }
 0x615   :  { %v1965_v48 = vpop.f32.mrf.mxu0 }
 0x616   :  { %334 = vrot.lane.b32.xlu0 %v323_v47, %s2213_s30  ;;  %v326_v50 = vadd.f32 %v1812_v49, %v323_v47 }
 0x618   :  { %v1814_v51 = vmul.f32 -1.442695, %v326_v50 }
 0x61a   :  { %2126 = vpow2.f32 %v1814_v51 }
 0x627   :  { %v2127_v52 = vpop.eup %2126 }
 0x628   :  { %v330_v53 = vadd.f32 1.0, %v2127_v52 }
 0x62a   :  { %2128 = vrcp.f32 %v330_v53 }
 0x637   :  { %v2129_v54 = vpop.eup %2128 }
 0x638   :  { %v344_v60 = vsub.f32 1.0, %v2129_v54  ;;  %v350_v62 = vmul.f32 %v2129_v54, %v245_v44 }
 0x688   :  { %v335_v55 = vpop.permute.xlu0 %334 }
 0x689   :  { %v337_v56 = vmul.f32 %v2129_v54, %v335_v55 }
 0x68b   :  { %339 = vrot.lane.b32.xlu1 %v337_v56, %s2213_s30 }
 0x6fd   :  { %v340_v57 = vpop.permute.xlu1 %339 }
 0x6fe   :  { %v342_v58 = vadd.f32 %v1812_v49, %v340_v57 }
 0x700   :  { %2130 = vtanh.f32 %v342_v58 }
 0x70d   :  { %v2131_v59 = vpop.eup %2130 }
 0x70e   :  { %346 = vrot.lane.b32.xlu0 %v2131_v59, %s2214_s9 }
 0x780   :  { %v347_v61 = vpop.permute.xlu0 %346 }
 0x781   :  { %v349_v63 = vmul.f32 %v347_v61, %v344_v60 }
 0x783   :  { %v351_v6 = vadd.f32 %v350_v62, %v349_v63  ;;  %v2423_v63 = vld [vmem:[%s2689_s4 + $0x18] sm:$0xff] }
 0x785   :  { %353 = vrot.lane.b32.xlu1 %v351_v6, %s2214_s9 }
 0x7f7   :  { %v354_v7 = vpop.permute.xlu1 %353 }
 0x7f8   :  { %357 = vst.msk [vmem:[#allocation2 + $0x4] sm:$0x3] %vm144_vm1, %v354_v7  ;;  %1975 = vmatmul.mubr.msk.f32.vlgmr.msra.gmra.mxu1 %vm40_vm2, %v354_v7  ;;  %v2430_v7 = vld [vmem:[%s2689_s4 + $0x10] sm:$0xff] }
 0x7f9   :  { %1989 = vmatpush3.msra.mxu1 %v2255_v1  ;;  %1996 = vmatprep.mubr.msk.f32.mxu1 %vm2212_vm0, %v2211_v0 }
 0x7fa   :  { %1990 = vmatprep.subr.mxu1 %v2211_v0 }
 0x7fb   :  { %1991 = vmatpush3.msra.mxu1 %v2260_v2 }
 0x7fc   :  { %1992 = vmatprep.subr.mxu1 %v2211_v0 }
 0x7fd   :  { %1993 = vmatpush3.msra.mxu1 %v2270_v3 }
 0x7fe   :  { %1994 = vmatprep.subr.mxu1 %v2211_v0 }
 0x7ff   :  { %1995 = vmatpush3.msra.mxu1 %v2279_v4 }
 0x800   :  { %2010 = vmatprep.subr.mxu1 %v2211_v0 }
 0x8b8   :  { %v428_v8 = vpop.f32.mrf.mxu1 }
 0x8b9   :  { %v429_v9 = vadd.f32 %v2307_v5, %v428_v8  ;;  %v2439_v8 = vld [vmem:[%s2689_s4 + $0x8] sm:$0xff] }
 0x8ba   :  { %v1976_v10 = vpop.f32.mrf.mxu1 }
 0x8bb   :  { %440 = vrot.lane.b32.xlu0 %v429_v9, %s2213_s30  ;;  %v432_v12 = vadd.f32 %v1815_v11, %v429_v9  ;;  %v2446_v9 = vld [vmem:[%s2689_s4] sm:$0xff] }
 0x8bd   :  { %v1817_v13 = vmul.f32 -1.442695, %v432_v12 }
 0x8bf   :  { %2132 = vpow2.f32 %v1817_v13  ;;  %v2468_v13 = vld [vmem:[%s2690_s5] ss:$0 sm:$0xff] }
 0x8cc   :  { %v2133_v14 = vpop.eup %2132 }
 0x8cd   :  { %v436_v15 = vadd.f32 1.0, %v2133_v14 }
 0x8cf   :  { %2134 = vrcp.f32 %v436_v15 }
 0x8dc   :  { %v2135_v16 = vpop.eup %2134 }
 0x8dd   :  { %v450_v22 = vsub.f32 1.0, %v2135_v16  ;;  %v456_v24 = vmul.f32 %v2135_v16, %v351_v6 }
 0x92d   :  { %v441_v17 = vpop.permute.xlu0 %440 }
 0x92e   :  { %v443_v18 = vmul.f32 %v2135_v16, %v441_v17  ;;  %v1824_v17 = vld [vmem:[%s2688_s0 + $0xc] sm:$0x3] }
 0x930   :  { %445 = vrot.lane.b32.xlu1 %v443_v18, %s2213_s30 }
 0x9a2   :  { %v446_v19 = vpop.permute.xlu1 %445 }
 0x9a3   :  { %v448_v20 = vadd.f32 %v1815_v11, %v446_v19  ;;  %v1830_v19 = vld [vmem:[%s2691_s1 + $0xe] sm:$0x3] }
 0x9a5   :  { %2136 = vtanh.f32 %v448_v20 }
 0x9b2   :  { %v2137_v21 = vpop.eup %2136 }
 0x9b3   :  { %452 = vrot.lane.b32.xlu0 %v2137_v21, %s2214_s9 }
 0xa25   :  { %v453_v23 = vpop.permute.xlu0 %452 }
 0xa26   :  { %v455_v25 = vmul.f32 %v453_v23, %v450_v22 }
 0xa28   :  { %v457_v26 = vadd.f32 %v456_v24, %v455_v25 }
 0xa2a   :  { %459 = vrot.lane.b32.xlu1 %v457_v26, %s2214_s9 }
 0xa9c   :  { %v460_v27 = vpop.permute.xlu1 %459 }
 0xa9d   :  { %463 = vst.msk [vmem:[#allocation2 + $0x6] sm:$0x3] %vm144_vm1, %v460_v27  ;;  %1986 = vmatmul.mubr.msk.f32.vlgmr.msra.gmra.mxu0 %vm40_vm2, %v460_v27 }
 0xa9e   :  { %2000 = vmatpush3.msra.mxu0 %v2255_v1  ;;  %2007 = vmatprep.mubr.msk.f32.mxu0 %vm2212_vm0, %v2211_v0 }
 0xa9f   :  { %2001 = vmatprep.subr.mxu0 %v2211_v0 }
 0xaa0   :  { %2002 = vmatpush3.msra.mxu0 %v2260_v2 }
 0xaa1   :  { %2003 = vmatprep.subr.mxu0 %v2211_v0 }
 0xaa2   :  { %2004 = vmatpush3.msra.mxu0 %v2270_v3 }
 0xaa3   :  { %2005 = vmatprep.subr.mxu0 %v2211_v0 }
 0xaa4   :  { %2006 = vmatpush3.msra.mxu0 %v2279_v4 }
 0xaa5   :  { %2021 = vmatprep.subr.mxu0 %v2211_v0 }
 0xb5d   :  { %v534_v28 = vpop.f32.mrf.mxu0 }
 0xb5e   :  { %v535_v29 = vadd.f32 %v2307_v5, %v534_v28 }
 0xb5f   :  { %v1987_v30 = vpop.f32.mrf.mxu0 }
 0xb60   :  { %546 = vrot.lane.b32.xlu0 %v535_v29, %s2213_s30  ;;  %v538_v32 = vadd.f32 %v1818_v31, %v535_v29 }
 0xb62   :  { %v1820_v33 = vmul.f32 -1.442695, %v538_v32 }
 0xb64   :  { %2138 = vpow2.f32 %v1820_v33 }
 0xb71   :  { %v2139_v34 = vpop.eup %2138 }
 0xb72   :  { %v542_v35 = vadd.f32 1.0, %v2139_v34 }
 0xb74   :  { %2140 = vrcp.f32 %v542_v35 }
 0xb81   :  { %v2141_v36 = vpop.eup %2140 }
 0xb82   :  { %v556_v42 = vsub.f32 1.0, %v2141_v36  ;;  %v562_v44 = vmul.f32 %v2141_v36, %v457_v26 }
 0xbd2   :  { %v547_v37 = vpop.permute.xlu0 %546 }
 0xbd3   :  { %v549_v38 = vmul.f32 %v2141_v36, %v547_v37 }
 0xbd5   :  { %551 = vrot.lane.b32.xlu1 %v549_v38, %s2213_s30 }
 0xc47   :  { %v552_v39 = vpop.permute.xlu1 %551 }
 0xc48   :  { %v554_v40 = vadd.f32 %v1818_v31, %v552_v39 }
 0xc4a   :  { %2142 = vtanh.f32 %v554_v40 }
 0xc57   :  { %v2143_v41 = vpop.eup %2142 }
 0xc58   :  { %558 = vrot.lane.b32.xlu0 %v2143_v41, %s2214_s9 }
 0xcca   :  { %v559_v43 = vpop.permute.xlu0 %558 }
 0xccb   :  { %v561_v45 = vmul.f32 %v559_v43, %v556_v42 }
 0xccd   :  { %v563_v46 = vadd.f32 %v562_v44, %v561_v45 }
 0xccf   :  { %565 = vrot.lane.b32.xlu1 %v563_v46, %s2214_s9 }
 0xd41   :  { %v566_v47 = vpop.permute.xlu1 %565 }
 0xd42   :  { %569 = vst.msk [vmem:[#allocation2 + $0x8] sm:$0x3] %vm144_vm1, %v566_v47  ;;  %1997 = vmatmul.mubr.msk.f32.vlgmr.msra.gmra.mxu1 %vm40_vm2, %v566_v47 }
 0xd43   :  { %2011 = vmatpush3.msra.mxu1 %v2255_v1  ;;  %2018 = vmatprep.mubr.msk.f32.mxu1 %vm2212_vm0, %v2211_v0 }
 0xd44   :  { %2012 = vmatprep.subr.mxu1 %v2211_v0 }
 0xd45   :  { %2013 = vmatpush3.msra.mxu1 %v2260_v2  ;;  %v1821_v2 = vld [vmem:[%s2688_s0 + $0xa] sm:$0x3] }
 0xd46   :  { %2014 = vmatprep.subr.mxu1 %v2211_v0 }
 0xd47   :  { %2015 = vmatpush3.msra.mxu1 %v2270_v3 }
 0xd48   :  { %2016 = vmatprep.subr.mxu1 %v2211_v0 }
 0xd49   :  { %2017 = vmatpush3.msra.mxu1 %v2279_v4 }
 0xd4a   :  { %2032 = vmatprep.subr.mxu1 %v2211_v0 }
 0xe02   :  { %v640_v48 = vpop.f32.mrf.mxu1 }
 0xe03   :  { %v641_v1 = vadd.f32 %v2307_v5, %v640_v48 }
 0xe04   :  { %v1998_v49 = vpop.f32.mrf.mxu1 }
 0xe05   :  { %652 = vrot.lane.b32.xlu0 %v641_v1, %s2213_s30  ;;  %v644_v50 = vadd.f32 %v1821_v2, %v641_v1 }
 0xe07   :  { %v1823_v51 = vmul.f32 -1.442695, %v644_v50 }
 0xe09   :  { %2144 = vpow2.f32 %v1823_v51 }
 0xe16   :  { %v2145_v3 = vpop.eup %2144 }
 0xe17   :  { %v648_v52 = vadd.f32 1.0, %v2145_v3 }
 0xe19   :  { %2146 = vrcp.f32 %v648_v52  ;;  %v1833_v52 = vld [vmem:[%s2691_s1 + $0xc] sm:$0x3] }
 0xe26   :  { %v2147_v53 = vpop.eup %2146 }
 0xe27   :  { %v662_v58 = vsub.f32 1.0, %v2147_v53  ;;  %v668_v60 = vmul.f32 %v2147_v53, %v563_v46 }
 0xe77   :  { %v653_v4 = vpop.permute.xlu0 %652 }
 0xe78   :  { %v655_v54 = vmul.f32 %v2147_v53, %v653_v4 }
 0xe7a   :  { %657 = vrot.lane.b32.xlu1 %v655_v54, %s2213_s30 }
 0xeec   :  { %v658_v55 = vpop.permute.xlu1 %657 }
 0xeed   :  { %v660_v56 = vadd.f32 %v1821_v2, %v658_v55 }
 0xeef   :  { %2148 = vtanh.f32 %v660_v56 }
 0xefc   :  { %v2149_v57 = vpop.eup %2148 }
 0xefd   :  { %664 = vrot.lane.b32.xlu0 %v2149_v57, %s2214_s9 }
 0xf6f   :  { %v665_v59 = vpop.permute.xlu0 %664 }
 0xf70   :  { %v667_v61 = vmul.f32 %v665_v59, %v662_v58 }
 0xf72   :  { %v2416_v62 = vadd.f32 %v668_v60, %v667_v61 }
 0xf74   :  { %671 = vrot.lane.b32.xlu1 %v2416_v62, %s2214_s9 }
 0xfe6   :  { %v672_v6 = vpop.permute.xlu1 %671 }
 0xfe7   :  { %675 = vst.msk [vmem:[#allocation2 + $0xa] sm:$0x3] %vm144_vm1, %v672_v6  ;;  %2008 = vmatmul.mubr.msk.f32.vlgmr.msra.gmra.mxu0 %vm40_vm2, %v672_v6 }
 0xfe8   :  { %2022 = vmatpush3.msra.mxu0 %v2423_v63  ;;  %2029 = vmatprep.mubr.msk.f32.mxu0 %vm2212_vm0, %v2211_v0 }
 0xfe9   :  { %2023 = vmatprep.subr.mxu0 %v2211_v0 }
 0xfea   :  { %2024 = vmatpush3.msra.mxu0 %v2430_v7 }
 0xfeb   :  { %2025 = vmatprep.subr.mxu0 %v2211_v0 }
 0xfec   :  { %2026 = vmatpush3.msra.mxu0 %v2439_v8 }
 0xfed   :  { %2027 = vmatprep.subr.mxu0 %v2211_v0 }
 0xfee   :  { %2028 = vmatpush3.msra.mxu0 %v2446_v9 }
 0xfef   :  { %2030 = vmatmul.mubr.f32.vlgmr.msra.gmra.mxu0 %v2211_v0  ;;  %2043 = vmatprep.subr.mxu0 %v2211_v0 }
 0xff0   :  { %2044 = vmatpush3.msra.mxu0 %v2423_v63  ;;  %2051 = vmatprep.mubr.msk.f32.mxu0 %vm2212_vm0, %v2211_v0 }
 0xff1   :  { %2045 = vmatprep.subr.mxu0 %v2211_v0 }
 0xff2   :  { %2046 = vmatpush3.msra.mxu0 %v2430_v7 }
 0xff3   :  { %2047 = vmatprep.subr.mxu0 %v2211_v0 }
 0xff4   :  { %2048 = vmatpush3.msra.mxu0 %v2439_v8 }
 0xff5   :  { %2049 = vmatprep.subr.mxu0 %v2211_v0 }
 0xff6   :  { %2050 = vmatpush3.msra.mxu0 %v2446_v9 }
 0xff7   :  { %2065 = vmatprep.subr.mxu0 %v2211_v0 }
0x10a7   :  { %v746_v10 = vpop.f32.mrf.mxu0 }
0x10a8   :  { %v747_v11 = vadd.f32 %v2307_v5, %v746_v10 }
0x10a9   :  { %v2009_v12 = vpop.f32.mrf.mxu0 }
0x10aa   :  { %758 = vrot.lane.b32.xlu0 %v747_v11, %s2213_s30  ;;  %v750_v18 = vadd.f32 %v1824_v17, %v747_v11 }
0x10ac   :  { %v1826_v5 = vmul.f32 -1.442695, %v750_v18  ;;  %v1836_v18 = vld [vmem:[%s2691_s1 + $0xa] sm:$0x3] }
0x10ae   :  { %2150 = vpow2.f32 %v1826_v5 }
0x10af   :  { %v962_v14 = vpop.f32.mrf.mxu0 }
0x10b0   :  { %v963_v15 = vadd.f32 %v2468_v13, %v962_v14 }
0x10b1   :  { %v2031_v16 = vpop.f32.mrf.mxu0 }
0x10b2   :  { %974 = vrot.lane.b32.xlu1 %v963_v15, %s2213_s30  ;;  %v966_v20 = vadd.f32 %v1830_v19, %v963_v15 }
0x10b4   :  { %v1832_v21 = vmul.f32 -1.442695, %v966_v20 }
0x10b6   :  { %2152 = vpow2.f32 %v1832_v21 }
0x10bb   :  { %v2151_v22 = vpop.eup %2150 }
0x10bc   :  { %v754_v23 = vadd.f32 1.0, %v2151_v22 }
0x10be   :  { %2154 = vrcp.f32 %v754_v23 }
0x10c3   :  { %v2153_v24 = vpop.eup %2152 }
0x10c4   :  { %v970_v25 = vadd.f32 1.0, %v2153_v24 }
0x10c6   :  { %2156 = vrcp.f32 %v970_v25 }
0x10cb   :  { %v2155_v26 = vpop.eup %2154 }
0x10cc   :  { %v768_v38 = vsub.f32 1.0, %v2155_v26  ;;  %v774_v40 = vmul.f32 %v2155_v26, %v2416_v62 }
0x10d3   :  { %v2157_v29 = vpop.eup %2156 }
0x10d4   :  { %v984_v43 = vsub.f32 1.0, %v2157_v29  ;;  %v990_v45 = vmul.f32 0.0, %v2157_v29 }
0x111c   :  { %v759_v27 = vpop.permute.xlu0 %758 }
0x111d   :  { %v761_v28 = vmul.f32 %v2155_v26, %v759_v27 }
0x111f   :  { %763 = vrot.lane.b32.xlu0 %v761_v28, %s2213_s30 }
0x1124   :  { %v975_v30 = vpop.permute.xlu1 %974 }
0x1125   :  { %v977_v31 = vmul.f32 %v2157_v29, %v975_v30 }
0x1127   :  { %979 = vrot.lane.b32.xlu1 %v977_v31, %s2213_s30 }
0x1191   :  { %v764_v32 = vpop.permute.xlu0 %763 }
0x1192   :  { %v766_v33 = vadd.f32 %v1824_v17, %v764_v32 }
0x1194   :  { %2158 = vtanh.f32 %v766_v33 }
0x1199   :  { %v980_v34 = vpop.permute.xlu1 %979 }
0x119a   :  { %v982_v35 = vadd.f32 %v1830_v19, %v980_v34 }
0x119c   :  { %2160 = vtanh.f32 %v982_v35 }
0x11a1   :  { %v2159_v36 = vpop.eup %2158 }
0x11a2   :  { %770 = vrot.lane.b32.xlu0 %v2159_v36, %s2214_s9 }
0x11a9   :  { %v2161_v37 = vpop.eup %2160 }
0x11aa   :  { %986 = vrot.lane.b32.xlu1 %v2161_v37, %s2214_s9  ;;  %v1839_v37 = vld [vmem:[%s2691_s1 + $0x8] sm:$0x3] }
0x1214   :  { %v771_v39 = vpop.permute.xlu0 %770 }
0x1215   :  { %v773_v41 = vmul.f32 %v771_v39, %v768_v38 }
0x1217   :  { %v2483_v42 = vadd.f32 %v774_v40, %v773_v41 }
0x1219   :  { %777 = vrot.lane.b32.xlu0 %v2483_v42, %s2214_s9 }
0x121c   :  { %v987_v44 = vpop.permute.xlu1 %986 }
0x121d   :  { %v989_v46 = vmul.f32 %v987_v44, %v984_v43 }
0x121f   :  { %v991_v47 = vadd.f32 %v990_v45, %v989_v46 }
0x1221   :  { %993 = vrot.lane.b32.xlu1 %v991_v47, %s2214_s9 }
0x128b   :  { %v778_v48 = vpop.permute.xlu0 %777 }
0x128c   :  { %781 = vst.msk [vmem:[#allocation2 + $0xc] sm:$0x3] %vm144_vm1, %v778_v48  ;;  %2019 = vmatmul.mubr.msk.f32.vlgmr.msra.gmra.mxu1 %vm40_vm2, %v778_v48 }
0x128d   :  { %2033 = vmatpush3.msra.mxu1 %v2423_v63  ;;  %2040 = vmatprep.mubr.msk.f32.mxu1 %vm2212_vm0, %v2211_v0 }
0x128e   :  { %2034 = vmatprep.subr.mxu1 %v2211_v0 }
0x128f   :  { %2035 = vmatpush3.msra.mxu1 %v2430_v7 }
0x1290   :  { %2036 = vmatprep.subr.mxu1 %v2211_v0 }
0x1291   :  { %2037 = vmatpush3.msra.mxu1 %v2439_v8 }
0x1292   :  { %2038 = vmatprep.subr.mxu1 %v2211_v0 }
0x1293   :  { %2039 = vmatpush3.msra.mxu1 %v2446_v9  ;;  %v994_v1 = vpop.permute.xlu1 %993 }
0x1294   :  { %997 = vst.msk [vmem:[#allocation3 + $0xe] sm:$0x3] %vm144_vm1, %v994_v1  ;;  %2041 = vmatmul.mubr.msk.f32.vlgmr.msra.gmra.mxu1 %vm40_vm2, %v994_v1  ;;  %2054 = vmatprep.subr.mxu1 %v2211_v0 }
0x1295   :  { %2055 = vmatpush3.msra.mxu1 %v2423_v63  ;;  %2062 = vmatprep.mubr.msk.f32.mxu1 %vm2212_vm0, %v2211_v0 }
0x1296   :  { %2056 = vmatprep.subr.mxu1 %v2211_v0 }
0x1297   :  { %2057 = vmatpush3.msra.mxu1 %v2430_v7 }
0x1298   :  { %2058 = vmatprep.subr.mxu1 %v2211_v0 }
0x1299   :  { %2059 = vmatpush3.msra.mxu1 %v2439_v8 }
0x129a   :  { %2060 = vmatprep.subr.mxu1 %v2211_v0 }
0x129b   :  { %2061 = vmatpush3.msra.mxu1 %v2446_v9 }
0x129c   :  { %2076 = vmatprep.subr.mxu1 %v2211_v0 }
0x134c   :  { %v2512_v49 = vpop.f32.mrf.mxu1 }
0x134e   :  { %v2020_v2 = vpop.f32.mrf.mxu1 }
0x1354   :  { %v1068_v50 = vpop.f32.mrf.mxu1 }
0x1355   :  { %v1069_v51 = vadd.f32 %v2468_v13, %v1068_v50 }
0x1356   :  { %v2042_v3 = vpop.f32.mrf.mxu1 }
0x1357   :  { %1080 = vrot.lane.b32.xlu0 %v1069_v51, %s2213_s30  ;;  %v1072_v53 = vadd.f32 %v1833_v52, %v1069_v51 }
0x1359   :  { %v1835_v4 = vmul.f32 -1.442695, %v1072_v53 }
0x135b   :  { %2162 = vpow2.f32 %v1835_v4 }
0x1368   :  { %v2163_v54 = vpop.eup %2162 }
0x1369   :  { %v1076_v55 = vadd.f32 1.0, %v2163_v54 }
0x136b   :  { %2164 = vrcp.f32 %v1076_v55  ;;  %v1842_v55 = vld [vmem:[%s2691_s1 + $0x6] sm:$0x3] }
0x1378   :  { %v2165_v56 = vpop.eup %2164 }
0x1379   :  { %v1090_v62 = vsub.f32 1.0, %v2165_v56  ;;  %v1096_v10 = vmul.f32 %v2165_v56, %v991_v47 }
0x13c9   :  { %v1081_v57 = vpop.permute.xlu0 %1080 }
0x13ca   :  { %v1083_v58 = vmul.f32 %v2165_v56, %v1081_v57 }
0x13cc   :  { %1085 = vrot.lane.b32.xlu1 %v1083_v58, %s2213_s30 }
0x143e   :  { %v1086_v59 = vpop.permute.xlu1 %1085 }
0x143f   :  { %v1088_v60 = vadd.f32 %v1833_v52, %v1086_v59 }
0x1441   :  { %2166 = vtanh.f32 %v1088_v60 }
0x144e   :  { %v2167_v61 = vpop.eup %2166 }
0x144f   :  { %1092 = vrot.lane.b32.xlu0 %v2167_v61, %s2214_s9 }
0x14c1   :  { %v1093_v6 = vpop.permute.xlu0 %1092 }
0x14c2   :  { %v1095_v11 = vmul.f32 %v1093_v6, %v1090_v62 }
0x14c4   :  { %v1097_v12 = vadd.f32 %v1096_v10, %v1095_v11 }
0x14c6   :  { %1099 = vrot.lane.b32.xlu1 %v1097_v12, %s2214_s9 }
0x1538   :  { %v1100_v14 = vpop.permute.xlu1 %1099 }
0x1539   :  { %1103 = vst.msk [vmem:[#allocation3 + $0xc] sm:$0x3] %vm144_vm1, %v1100_v14  ;;  %2052 = vmatmul.mubr.msk.f32.vlgmr.msra.gmra.mxu0 %vm40_vm2, %v1100_v14 }
0x153a   :  { %2066 = vmatpush3.msra.mxu0 %v2423_v63  ;;  %2073 = vmatprep.mubr.msk.f32.mxu0 %vm2212_vm0, %v2211_v0 }
0x153b   :  { %2067 = vmatprep.subr.mxu0 %v2211_v0 }
0x153c   :  { %2068 = vmatpush3.msra.mxu0 %v2430_v7 }
0x153d   :  { %2069 = vmatprep.subr.mxu0 %v2211_v0 }
0x153e   :  { %2070 = vmatpush3.msra.mxu0 %v2439_v8 }
0x153f   :  { %2071 = vmatprep.subr.mxu0 %v2211_v0 }
0x1540   :  { %2072 = vmatpush3.msra.mxu0 %v2446_v9 }
0x1541   :  { %2087 = vmatprep.subr.mxu0 %v2211_v0 }
0x15f9   :  { %v1174_v15 = vpop.f32.mrf.mxu0 }
0x15fa   :  { %v1175_v16 = vadd.f32 %v2468_v13, %v1174_v15 }
0x15fb   :  { %v2053_v17 = vpop.f32.mrf.mxu0 }
0x15fc   :  { %1186 = vrot.lane.b32.xlu0 %v1175_v16, %s2213_s30  ;;  %v1178_v5 = vadd.f32 %v1836_v18, %v1175_v16 }
0x15fe   :  { %v1838_v19 = vmul.f32 -1.442695, %v1178_v5 }
0x1600   :  { %2168 = vpow2.f32 %v1838_v19 }
0x160d   :  { %v2169_v20 = vpop.eup %2168 }
0x160e   :  { %v1182_v21 = vadd.f32 1.0, %v2169_v20 }
0x1610   :  { %2170 = vrcp.f32 %v1182_v21 }
0x161d   :  { %v2171_v22 = vpop.eup %2170 }
0x161e   :  { %v1196_v28 = vsub.f32 1.0, %v2171_v22  ;;  %v1202_v30 = vmul.f32 %v2171_v22, %v1097_v12 }
0x166e   :  { %v1187_v23 = vpop.permute.xlu0 %1186 }
0x166f   :  { %v1189_v24 = vmul.f32 %v2171_v22, %v1187_v23 }
0x1671   :  { %1191 = vrot.lane.b32.xlu1 %v1189_v24, %s2213_s30 }
0x16e3   :  { %v1192_v25 = vpop.permute.xlu1 %1191 }
0x16e4   :  { %v1194_v26 = vadd.f32 %v1836_v18, %v1192_v25 }
0x16e6   :  { %2172 = vtanh.f32 %v1194_v26 }
0x16f3   :  { %v2173_v27 = vpop.eup %2172 }
0x16f4   :  { %1198 = vrot.lane.b32.xlu0 %v2173_v27, %s2214_s9 }
0x1766   :  { %v1199_v29 = vpop.permute.xlu0 %1198 }
0x1767   :  { %v1201_v31 = vmul.f32 %v1199_v29, %v1196_v28 }
0x1769   :  { %v1203_v32 = vadd.f32 %v1202_v30, %v1201_v31 }
0x176b   :  { %1205 = vrot.lane.b32.xlu1 %v1203_v32, %s2214_s9 }
0x17dd   :  { %v1206_v33 = vpop.permute.xlu1 %1205 }
0x17de   :  { %1209 = vst.msk [vmem:[#allocation3 + $0xa] sm:$0x3] %vm144_vm1, %v1206_v33  ;;  %2063 = vmatmul.mubr.msk.f32.vlgmr.msra.gmra.mxu1 %vm40_vm2, %v1206_v33 }
0x17df   :  { %2077 = vmatpush3.msra.mxu1 %v2423_v63  ;;  %2084 = vmatprep.mubr.msk.f32.mxu1 %vm2212_vm0, %v2211_v0 }
0x17e0   :  { %2078 = vmatprep.subr.mxu1 %v2211_v0 }
0x17e1   :  { %2079 = vmatpush3.msra.mxu1 %v2430_v7 }
0x17e2   :  { %2080 = vmatprep.subr.mxu1 %v2211_v0 }
0x17e3   :  { %2081 = vmatpush3.msra.mxu1 %v2439_v8 }
0x17e4   :  { %2082 = vmatprep.subr.mxu1 %v2211_v0 }
0x17e5   :  { %2083 = vmatpush3.msra.mxu1 %v2446_v9 }
0x17e6   :  { %2098 = vmatprep.subr.mxu1 %v2211_v0 }
0x189e   :  { %v1280_v34 = vpop.f32.mrf.mxu1 }
0x189f   :  { %v1281_v35 = vadd.f32 %v2468_v13, %v1280_v34 }
0x18a0   :  { %v2064_v36 = vpop.f32.mrf.mxu1 }
0x18a1   :  { %1292 = vrot.lane.b32.xlu0 %v1281_v35, %s2213_s30  ;;  %v1284_v38 = vadd.f32 %v1839_v37, %v1281_v35  ;;  %v1848_v36 = vld [vmem:[%s2691_s1 + $0x2] sm:$0x3] }
0x18a3   :  { %v1841_v39 = vmul.f32 -1.442695, %v1284_v38 }
0x18a5   :  { %2174 = vpow2.f32 %v1841_v39 }
0x18b2   :  { %v2175_v40 = vpop.eup %2174 }
0x18b3   :  { %v1288_v41 = vadd.f32 1.0, %v2175_v40 }
0x18b5   :  { %2176 = vrcp.f32 %v1288_v41 }
0x18c2   :  { %v2177_v43 = vpop.eup %2176 }
0x18c3   :  { %v1302_v1 = vsub.f32 1.0, %v2177_v43  ;;  %v1308_v50 = vmul.f32 %v2177_v43, %v1203_v32 }
0x1913   :  { %v1293_v44 = vpop.permute.xlu0 %1292 }
0x1914   :  { %v1295_v45 = vmul.f32 %v2177_v43, %v1293_v44 }
0x1916   :  { %1297 = vrot.lane.b32.xlu1 %v1295_v45, %s2213_s30 }
0x1988   :  { %v1298_v46 = vpop.permute.xlu1 %1297 }
0x1989   :  { %v1300_v47 = vadd.f32 %v1839_v37, %v1298_v46 }
0x198b   :  { %2178 = vtanh.f32 %v1300_v47 }
0x1998   :  { %v2179_v48 = vpop.eup %2178 }
0x1999   :  { %1304 = vrot.lane.b32.xlu0 %v2179_v48, %s2214_s9 }
0x1a0b   :  { %v1305_v2 = vpop.permute.xlu0 %1304 }
0x1a0c   :  { %v1307_v51 = vmul.f32 %v1305_v2, %v1302_v1 }
0x1a0e   :  { %v1309_v3 = vadd.f32 %v1308_v50, %v1307_v51 }
0x1a10   :  { %1311 = vrot.lane.b32.xlu1 %v1309_v3, %s2214_s9 }
0x1a82   :  { %v1312_v52 = vpop.permute.xlu1 %1311 }
0x1a83   :  { %1315 = vst.msk [vmem:[#allocation3 + $0x8] sm:$0x3] %vm144_vm1, %v1312_v52  ;;  %2074 = vmatmul.mubr.msk.f32.vlgmr.msra.gmra.mxu0 %vm40_vm2, %v1312_v52 }
0x1a84   :  { %2088 = vmatpush3.msra.mxu0 %v2423_v63  ;;  %2095 = vmatprep.mubr.msk.f32.mxu0 %vm2212_vm0, %v2211_v0 }
0x1a85   :  { %2089 = vmatprep.subr.mxu0 %v2211_v0 }
0x1a86   :  { %2090 = vmatpush3.msra.mxu0 %v2430_v7 }
0x1a87   :  { %2091 = vmatprep.subr.mxu0 %v2211_v0 }
0x1a88   :  { %2092 = vmatpush3.msra.mxu0 %v2439_v8 }
0x1a89   :  { %2093 = vmatprep.subr.mxu0 %v2211_v0 }
0x1a8a   :  { %2094 = vmatpush3.msra.mxu0 %v2446_v9 }
0x1b43   :  { %v1386_v53 = vpop.f32.mrf.mxu0 }
0x1b44   :  { %v1387_v4 = vadd.f32 %v2468_v13, %v1386_v53  ;;  %v1827_v53 = vld [vmem:[%s2688_s0 + $0xe] sm:$0x3]  ;;  %s2215_s0 = smov 32  }
0x1b45   :  { %v2075_v54 = vpop.f32.mrf.mxu0 }
0x1b46   :  { %1398 = vrot.lane.b32.xlu0 %v1387_v4, %s2213_s30  ;;  %v1390_v56 = vadd.f32 %v1842_v55, %v1387_v4 }
0x1b48   :  { %v1844_v57 = vmul.f32 -1.442695, %v1390_v56 }
0x1b4a   :  { %2180 = vpow2.f32 %v1844_v57 }
0x1b57   :  { %v2181_v58 = vpop.eup %2180 }
0x1b58   :  { %v1394_v59 = vadd.f32 1.0, %v2181_v58 }
0x1b5a   :  { %2182 = vrcp.f32 %v1394_v59 }
0x1b67   :  { %v2183_v60 = vpop.eup %2182 }
0x1b68   :  { %v1408_v12 = vsub.f32 1.0, %v2183_v60  ;;  %v1414_v15 = vmul.f32 %v2183_v60, %v1309_v3  ;;  %v2210_v3 = vld [vmem:[%s2687_s3] ss:$0 sm:$0xff] }
0x1b69   :  { %v853_v52 = vadd.f32 %v2210_v3, %v2512_v49 }
0x1b6b   :  { %v856_v4 = vadd.f32 %v1827_v53, %v853_v52 }
0x1b6d   :  { %v1829_v54 = vmul.f32 -1.442695, %v856_v4  ;;  %v1738_v4 = vld [vmem:[#allocation2] sm:$0x3] }
0x1bb8   :  { %v1399_v61 = vpop.permute.xlu0 %1398 }
0x1bb9   :  { %v1401_v62 = vmul.f32 %v2183_v60, %v1399_v61 }
0x1bbb   :  { %1403 = vrot.lane.b32.xlu1 %v1401_v62, %s2213_s30 }
0x1c2d   :  { %v1404_v6 = vpop.permute.xlu1 %1403 }
0x1c2e   :  { %v1406_v10 = vadd.f32 %v1842_v55, %v1404_v6 }
0x1c30   :  { %2184 = vtanh.f32 %v1406_v10 }
0x1c3d   :  { %v2185_v11 = vpop.eup %2184 }
0x1c3e   :  { %1410 = vrot.lane.b32.xlu0 %v2185_v11, %s2214_s9 }
0x1cb0   :  { %v1411_v14 = vpop.permute.xlu0 %1410 }
0x1cb1   :  { %v1413_v16 = vmul.f32 %v1411_v14, %v1408_v12 }
0x1cb3   :  { %v1415_v17 = vadd.f32 %v1414_v15, %v1413_v16 }
0x1cb5   :  { %1417 = vrot.lane.b32.xlu1 %v1415_v17, %s2214_s9 }
0x1d27   :  { %v1418_v18 = vpop.permute.xlu1 %1417 }
0x1d28   :  { %1421 = vst.msk [vmem:[#allocation3 + $0x6] sm:$0x3] %vm144_vm1, %v1418_v18  ;;  %2085 = vmatmul.mubr.msk.f32.vlgmr.msra.gmra.mxu1 %vm40_vm2, %v1418_v18 }
0x1d29   :  { %2099 = vmatpush3.msra.mxu1 %v2423_v63  ;;  %2106 = vmatprep.mubr.msk.f32.mxu1 %vm2212_vm0, %v2211_v0  ;;  %v1845_v63 = vld [vmem:[%s2691_s1 + $0x4] sm:$0x3] }
0x1d2a   :  { %2100 = vmatprep.subr.mxu1 %v2211_v0 }
0x1d2b   :  { %2101 = vmatpush3.msra.mxu1 %v2430_v7 }
0x1d2c   :  { %2102 = vmatprep.subr.mxu1 %v2211_v0 }
0x1d2d   :  { %2103 = vmatpush3.msra.mxu1 %v2439_v8 }
0x1d2e   :  { %2104 = vmatprep.subr.mxu1 %v2211_v0 }
0x1d2f   :  { %2105 = vmatpush3.msra.mxu1 %v2446_v9 }
0x1de8   :  { %v1492_v5 = vpop.f32.mrf.mxu1 }
0x1de9   :  { %v1493_v19 = vadd.f32 %v2468_v13, %v1492_v5  ;;  %v1749_v5 = vld [vmem:[#allocation3 + $0x6] sm:$0x3] }
0x1dea   :  { %v2086_v20 = vpop.f32.mrf.mxu1 }
0x1deb   :  { %1504 = vrot.lane.b32.xlu0 %v1493_v19, %s2213_s30  ;;  %v1496_v21 = vadd.f32 %v1845_v63, %v1493_v19  ;;  %v1751_v19 = vld [vmem:[#allocation3 + $0xa] sm:$0x3] }
0x1ded   :  { %v1847_v7 = vmul.f32 -1.442695, %v1496_v21 }
0x1def   :  { %2186 = vpow2.f32 %v1847_v7 }
0x1dfc   :  { %v2187_v22 = vpop.eup %2186 }
0x1dfd   :  { %v1500_v23 = vadd.f32 1.0, %v2187_v22 }
0x1dff   :  { %2188 = vrcp.f32 %v1500_v23 }
0x1e0c   :  { %v2189_v8 = vpop.eup %2188 }
0x1e0d   :  { %v1514_v27 = vsub.f32 1.0, %v2189_v8  ;;  %v1520_v29 = vmul.f32 %v2189_v8, %v1415_v17 }
0x1e5d   :  { %v1505_v0 = vpop.permute.xlu0 %1504 }
0x1e5e   :  { %v1507_v24 = vmul.f32 %v2189_v8, %v1505_v0 }
0x1e60   :  { %1509 = vrot.lane.b32.xlu1 %v1507_v24, %s2213_s30  ;;  %v1739_v24 = vld [vmem:[#allocation2 + $0x2] sm:$0x3] }
0x1ed2   :  { %v1510_v9 = vpop.permute.xlu1 %1509 }
0x1ed3   :  { %v1512_v25 = vadd.f32 %v1845_v63, %v1510_v9 }
0x1ed5   :  { %2190 = vtanh.f32 %v1512_v25 }
0x1ee2   :  { %v2191_v26 = vpop.eup %2190 }
0x1ee3   :  { %1516 = vrot.lane.b32.xlu0 %v2191_v26, %s2214_s9  ;;  %v1741_v26 = vld [vmem:[#allocation2 + $0x6] sm:$0x3] }
0x1f55   :  { %v1517_v28 = vpop.permute.xlu0 %1516 }
0x1f56   :  { %v1519_v30 = vmul.f32 %v1517_v28, %v1514_v27 }
0x1f58   :  { %v1521_v31 = vadd.f32 %v1520_v29, %v1519_v30  ;;  %v1743_v29 = vld [vmem:[#allocation2 + $0xa] sm:$0x3] }
0x1f5a   :  { %1523 = vrot.lane.b32.xlu1 %v1521_v31, %s2214_s9 }
0x1fcc   :  { %v1524_v32 = vpop.permute.xlu1 %1523 }
0x1fcd   :  { %1527 = vst.msk [vmem:[#allocation3 + $0x4] sm:$0x3] %vm144_vm1, %v1524_v32  ;;  %2096 = vmatmul.mubr.msk.f32.vlgmr.msra.gmra.mxu0 %vm40_vm2, %v1524_v32 }
0x208d   :  { %v1598_v33 = vpop.f32.mrf.mxu0 }
0x208e   :  { %v1599_v34 = vadd.f32 %v2468_v13, %v1598_v33 }
0x208f   :  { %v2097_v35 = vpop.f32.mrf.mxu0 }
0x2090   :  { %1610 = vrot.lane.b32.xlu0 %v1599_v34, %s2213_s30  ;;  %v1602_v37 = vadd.f32 %v1848_v36, %v1599_v34 }
0x2092   :  { %v1850_v38 = vmul.f32 -1.442695, %v1602_v37 }
0x2094   :  { %2192 = vpow2.f32 %v1850_v38 }
0x20a1   :  { %v2193_v39 = vpop.eup %2192 }
0x20a2   :  { %v1606_v40 = vadd.f32 1.0, %v2193_v39 }
0x20a4   :  { %2194 = vrcp.f32 %v1606_v40 }
0x20b1   :  { %v2195_v41 = vpop.eup %2194 }
0x20b2   :  { %v1620_v48 = vsub.f32 1.0, %v2195_v41  ;;  %v1626_v2 = vmul.f32 %v2195_v41, %v1521_v31 }
0x2102   :  { %v1611_v43 = vpop.permute.xlu0 %1610 }
0x2103   :  { %v1613_v44 = vmul.f32 %v2195_v41, %v1611_v43 }
0x2105   :  { %1615 = vrot.lane.b32.xlu1 %v1613_v44, %s2213_s30  ;;  %v1748_v44 = vld [vmem:[#allocation3 + $0x4] sm:$0x3] }
0x2177   :  { %v1616_v45 = vpop.permute.xlu1 %1615 }
0x2178   :  { %v1618_v46 = vadd.f32 %v1848_v36, %v1616_v45  ;;  %v1750_v45 = vld [vmem:[#allocation3 + $0x8] sm:$0x3] }
0x217a   :  { %2196 = vtanh.f32 %v1618_v46 }
0x217b   :  { %2198 = vpow2.f32 %v1829_v54 }
0x2187   :  { %v2197_v47 = vpop.eup %2196 }
0x2188   :  { %1622 = vrot.lane.b32.xlu0 %v2197_v47, %s2214_s9  ;;  %v2199_v55 = vpop.eup %2198  ;;  %v1740_v47 = vld [vmem:[#allocation2 + $0x4] sm:$0x3] }
0x2189   :  { %v860_v56 = vadd.f32 1.0, %v2199_v55  ;;  %v1744_v55 = vld [vmem:[#allocation2 + $0xc] sm:$0x3] }
0x218b   :  { %2200 = vrcp.f32 %v860_v56 }
0x2198   :  { %v2201_v58 = vpop.eup %2200 }
0x2199   :  { %v874_v12 = vsub.f32 1.0, %v2201_v58  ;;  %v880_v15 = vmul.f32 %v2201_v58, %v2483_v42  ;;  %v1753_v42 = vld [vmem:[#allocation3 + $0xe] sm:$0x3] }
0x21fa   :  { %v1623_v1 = vpop.permute.xlu0 %1622 }
0x21fb   :  { %v1625_v50 = vmul.f32 %v1623_v1, %v1620_v48 }
0x21fd   :  { %v2609_v51 = vadd.f32 %v1626_v2, %v1625_v50  ;;  %v1742_v2 = vld [vmem:[#allocation2 + $0x8] sm:$0x3] }
0x21ff   :  { %1629 = vrot.lane.b32.xlu1 %v2609_v51, %s2214_s9 }
0x2203   :  { %864 = vrot.lane.b32.xlu1 %v853_v52, %s2213_s30  ;;  %v1752_v52 = vld [vmem:[#allocation3 + $0xc] sm:$0x3] }
0x2271   :  { %v1630_v57 = vpop.permute.xlu1 %1629 }
0x2272   :  { %1633 = vst.msk [vmem:[#allocation3 + $0x2] sm:$0x3] %vm144_vm1, %v1630_v57  ;;  %2107 = vmatmul.mubr.msk.f32.vlgmr.msra.gmra.mxu1 %vm40_vm2, %v1630_v57 }
0x2275   :  { %v865_v59 = vpop.permute.xlu1 %864 }
0x2276   :  { %v867_v49 = vmul.f32 %v2201_v58, %v865_v59 }
0x2278   :  { %869 = vrot.lane.b32.xlu1 %v867_v49, %s2213_s30 }
0x2279   :  { %v1747_v18 = vld [vmem:[#allocation3 + $0x2] sm:$0x3] }
0x22ea   :  { %v870_v60 = vpop.permute.xlu1 %869 }
0x22eb   :  { %v872_v61 = vadd.f32 %v1827_v53, %v870_v60 }
0x22ed   :  { %2202 = vtanh.f32 %v872_v61 }
0x22fa   :  { %v2203_v62 = vpop.eup %2202 }
0x22fb   :  { %876 = vrot.lane.b32.xlu1 %v2203_v62, %s2214_s9 }
0x2332   :  { %v1703_v6 = vpop.f32.mrf.mxu1 }
0x2333   :  { %v1704_v10 = vadd.f32 %v2468_v13, %v1703_v6  ;;  %v1634_v13 = vld [vmem:[%s2691_s1] sm:$0x3] }
0x2334   :  { %v2108_v11 = vpop.f32.mrf.mxu1 }
0x2335   :  { %1715 = vrot.lane.b32.xlu0 %v1704_v10, %s2213_s30  ;;  %v1707_v20 = vadd.f32 %v1704_v10, %v1634_v13 }
0x2337   :  { %v1852_v63 = vmul.f32 -1.442695, %v1707_v20 }
0x2339   :  { %2204 = vpow2.f32 %v1852_v63 }
0x2346   :  { %v2205_v21 = vpop.eup %2204 }
0x2347   :  { %v1711_v7 = vadd.f32 1.0, %v2205_v21 }
0x2349   :  { %2206 = vrcp.f32 %v1711_v7 }
0x2356   :  { %v2207_v22 = vpop.eup %2206 }
0x2357   :  { %v1725_v38 = vsub.f32 1.0, %v2207_v22  ;;  %v1731_v40 = vmul.f32 %v2207_v22, %v2609_v51 }
0x236d   :  { %v877_v14 = vpop.permute.xlu1 %876 }
0x236e   :  { %v879_v16 = vmul.f32 %v877_v14, %v874_v12 }
0x2370   :  { %v881_v17 = vadd.f32 %v880_v15, %v879_v16 }
0x2372   :  { %883 = vrot.lane.b32.xlu1 %v881_v17, %s2214_s9 }
0x2376   :  { %1764 = vrot.lane.b32.xlu1 %v1747_v18, %s2215_s0 }
0x237a   :  { %1768 = vrot.lane.b32.xlu1 %v1749_v5, %s2215_s0 }
0x237e   :  { %1772 = vrot.lane.b32.xlu1 %v1751_v19, %s2215_s0 }
0x2382   :  { %1776 = vrot.lane.b32.xlu1 %v1753_v42, %s2215_s0 }
0x23a7   :  { %v1716_v23 = vpop.permute.xlu0 %1715 }
0x23a8   :  { %v1718_v8 = vmul.f32 %v2207_v22, %v1716_v23 }
0x23aa   :  { %1720 = vrot.lane.b32.xlu0 %v1718_v8, %s2213_s30 }
0x23e4   :  { %v884_v0 = vpop.permute.xlu1 %883 }
0x23e5   :  { %887 = vst.msk [vmem:[#allocation2 + $0xe] sm:$0x3] %vm144_vm1, %v884_v0 }
0x23e8   :  { %v1765_v9 = vpop.permute.xlu1 %1764 }
0x23e9   :  { %v1787_v25 = vsel %vm40_vm2, %v1739_v24, %v1765_v9 }
0x23ea   :  { %1796 = vst.msk [vmem:[%s2692_s6 + $0x2] sm:$0x3] %vm1794_vm3, %v1787_v25 }
0x23ec   :  { %v1769_v27 = vpop.permute.xlu1 %1768  ;;  %v1745_v32 = vld [vmem:[#allocation2 + $0xe] sm:$0x3] }
0x23ed   :  { %v1789_v28 = vsel %vm40_vm2, %v1741_v26, %v1769_v27 }
0x23ee   :  { %1798 = vst.msk [vmem:[%s2692_s6 + $0x6] sm:$0x3] %vm1794_vm3, %v1789_v28 }
0x23f0   :  { %v1773_v30 = vpop.permute.xlu1 %1772 }
0x23f1   :  { %v1791_v31 = vsel %vm40_vm2, %v1743_v29, %v1773_v30 }
0x23f2   :  { %1800 = vst.msk [vmem:[%s2692_s6 + $0xa] sm:$0x3] %vm1794_vm3, %v1791_v31 }
0x23f4   :  { %v1777_v33 = vpop.permute.xlu1 %1776 }
0x23f5   :  { %v1793_v34 = vsel %vm40_vm2, %v1745_v32, %v1777_v33 }
0x23f6   :  { %1802 = vst.msk [vmem:[%s2692_s6 + $0xe] sm:$0x3] %vm1794_vm3, %v1793_v34 }
0x241c   :  { %v1721_v35 = vpop.permute.xlu0 %1720 }
0x241d   :  { %v1723_v36 = vadd.f32 %v1721_v35, %v1634_v13 }
0x241f   :  { %2208 = vtanh.f32 %v1723_v36 }
0x242c   :  { %v2209_v37 = vpop.eup %2208 }
0x242d   :  { %1727 = vrot.lane.b32.xlu0 %v2209_v37, %s2214_s9 }
0x249f   :  { %v1728_v39 = vpop.permute.xlu0 %1727 }
0x24a0   :  { %v1730_v41 = vmul.f32 %v1728_v39, %v1725_v38 }
0x24a2   :  { %v1732_v43 = vadd.f32 %v1731_v40, %v1730_v41 }
0x24a4   :  { %1734 = vrot.lane.b32.xlu0 %v1732_v43, %s2214_s9 }
0x24a8   :  { %1766 = vrot.lane.b32.xlu0 %v1748_v44, %s2215_s0 }
0x24ac   :  { %1770 = vrot.lane.b32.xlu0 %v1750_v45, %s2215_s0 }
0x2516   :  { %v1735_v46 = vpop.permute.xlu0 %1734 }
0x2517   :  { %1737 = vst.msk [vmem:[#allocation3] sm:$0x3] %vm144_vm1, %v1735_v46 }
0x251a   :  { %v1767_v48 = vpop.permute.xlu0 %1766 }
0x251b   :  { %v1788_v1 = vsel %vm40_vm2, %v1740_v47, %v1767_v48 }
0x251c   :  { %1797 = vst.msk [vmem:[%s2692_s6 + $0x4] sm:$0x3] %vm1794_vm3, %v1788_v1 }
0x251e   :  { %v1771_v50 = vpop.permute.xlu0 %1770  ;;  %v1746_v51 = vld [vmem:[#allocation3] sm:$0x3] }
0x251f   :  { %v1790_v3 = vsel %vm40_vm2, %v1742_v2, %v1771_v50  ;;  %1762 = vrot.lane.b32.xlu0 %v1746_v51, %s2215_s0 }
0x2520   :  { %1799 = vst.msk [vmem:[%s2692_s6 + $0x8] sm:$0x3] %vm1794_vm3, %v1790_v3 }
0x2523   :  { %1774 = vrot.lane.b32.xlu0 %v1752_v52, %s2215_s0 }
0x2591   :  { %v1763_v53 = vpop.permute.xlu0 %1762 }
0x2592   :  { %v1786_v54 = vsel %vm40_vm2, %v1738_v4, %v1763_v53 }
0x2593   :  { %1795 = vst.msk [vmem:[%s2692_s6] sm:$0x3] %vm1794_vm3, %v1786_v54 }
0x2595   :  { %v1775_v56 = vpop.permute.xlu0 %1774 }
0x2596   :  { %v1792_v57 = vsel %vm40_vm2, %v1744_v55, %v1775_v56 }
0x2597   :  { %1801 = vst.msk [vmem:[%s2692_s6 + $0xc] sm:$0x3] %vm1794_vm3, %v1792_v57 }

// kernel: self_matching_forward.2
= control target key start
LH: loop header
LB: loop body
LE: loop exit
PB: predicated region body
PF: predicated region fallthrough
CT: control target
= control target key end

     0   :  { %vm64_vm0 = vcmask 261120   ;;  %v2149_v12 = vmov 1966171168   ;;  %v244_v14 = vlaneseq  ;;  %vm603_vm1 = vcmask 1041409   ;;  %s2809_s4 = inlined_call_operand.vmem [shape: f32[32,32], index: 4, kind: input, shape index: {}]   ;;  %s2810_s2 = inlined_call_operand.vmem [shape: f32[32,32], index: 2, kind: input, shape index: {}]   ;;  %s2811_s1 = inlined_call_operand.vmem [shape: f32[2,8,32], index: 1, kind: input, shape index: {}, may-alias: {0,1}]   ;;  %s2812_s0 = inlined_call_operand.vmem [shape: f32[2,8,32], index: 0, kind: input, shape index: {}, may-alias: {0,1}]   ;;  %s2813_s5 = inlined_call_operand.vmem [shape: f32[1,32], index: 5, kind: input, shape index: {}]   ;;  %s2814_s3 = inlined_call_operand.vmem [shape: f32[1,32], index: 3, kind: input, shape index: {}]   ;;  %s2815_s6 = inlined_call_operand.vmem [shape: f32[1,32], index: 6, kind: input, shape index: {}]   ;;  %s2816_s7 = inlined_call_operand.vmem [shape: f32[32,32], index: 7, kind: input, shape index: {}]   ;;  %s2817_s8 = inlined_call_operand.vmem [shape: f32[32,32], index: 8, kind: input, shape index: {}]   ;;  %s2818_s10 = inlined_call_operand.vmem [shape: f32[32,96], index: 10, kind: input, shape index: {}]   ;;  %s2819_s12 = inlined_call_operand.vmem [shape: f32[32,96], index: 12, kind: input, shape index: {}]   ;;  %s2820_s9 = inlined_call_operand.vmem [shape: f32[1,32], index: 9, kind: input, shape index: {}]   ;;  %s2821_s11 = inlined_call_operand.vmem [shape: f32[1,96], index: 11, kind: input, shape index: {}]   ;;  %s2822_s13 = inlined_call_operand.vmem [shape: f32[1,96], index: 13, kind: input, shape index: {}]   ;;  %s2823_s14 = inlined_call_operand.vmem [shape: f32[8,2,96], index: 14, kind: output, shape index: {0}]   ;;  %s2824_s15 = inlined_call_operand.vmem [shape: f32[8,2,96], index: 15, kind: output, shape index: {1}]  }
   0x1   :  { %v149_v0 = vld [vmem:[%s2809_s4 + $0x18] sm:$0xff]  ;;  %v148_v1 = vld [vmem:[%s2809_s4 + $0x10] sm:$0xff]  ;;  %v147_v4 = vld [vmem:[%s2809_s4 + $0x8] sm:$0xff]  ;;  %v242_v13 = vunpack.c.l.s4 %v2149_v12  ;;  %vm605_vm2 = vcmask 1042434   ;;  %vm607_vm3 = vcmask 1043459   ;;  %vm609_vm4 = vcmask 1044484  }
   0x2   :  { %v56_v2 = vld [vmem:[%s2810_s2 + $0x18] sm:$0xff]  ;;  %1970 = vmatprep.subr.mxu1 %v149_v0  ;;  %v55_v3 = vld [vmem:[%s2810_s2 + $0x10] sm:$0xff]  ;;  %v51_v5 = vld [vmem:[%s2811_s1] sm:$0xff]  ;;  %v2282_v16 = vshrl.u32 %v244_v14, 7  ;;  %vm611_vm5 = vcmask 1045509   ;;  %vm613_vm6 = vcmask 1046534  }
   0x3   :  { %1959 = vmatprep.subr.mxu0 %v56_v2  ;;  %1971 = vmatpush3.msra.mxu1 %v149_v0  ;;  %v54_v6 = vld [vmem:[%s2810_s2 + $0x8] sm:$0xff]  ;;  %v146_v7 = vld [vmem:[%s2809_s4] sm:$0xff]  ;;  %v243_v15 = vunpack.c.0.s8 %v242_v13  ;;  %vm615_vm7 = vcmask 1047559   ;;  %vm626_vm8 = vcmask 64512   ;;  %vm2152_vm9 = vmmov 0  }
   0x4   :  { %1960 = vmatpush3.msra.mxu0 %v56_v2  ;;  %1972 = vmatprep.subr.mxu1 %v148_v1  ;;  %v53_v8 = vld [vmem:[%s2810_s2] sm:$0xff]  ;;  %v52_v9 = vld [vmem:[%s2811_s1 + $0x8] sm:$0xff]  ;;  %v2289_v28 = vsub.s32 0, %v2282_v16  ;;  %vm1742_vm10 = vcmask 779264  }
   0x5   :  { %1961 = vmatprep.subr.mxu0 %v55_v3  ;;  %1973 = vmatpush3.msra.mxu1 %v148_v1  ;;  %v2269_v10 = vld [vmem:[%s2812_s0] sm:$0xff]  ;;  %v2274_v11 = vld [vmem:[%s2812_s0 + $0x8] sm:$0xff]  ;;  %v246_v18 = vsub.s32 %v243_v15, %v2282_v16 }
   0x6   :  { %1962 = vmatpush3.msra.mxu0 %v55_v3  ;;  %1974 = vmatprep.subr.mxu1 %v147_v4  ;;  %v1900_v17 = vld [vmem:[%s2813_s5] ss:$0 sm:$0xff] }
   0x7   :  { %1978 = vmatprep.mubr.msk.f32.mxu1 %vm64_vm0, %v51_v5  ;;  %1975 = vmatpush3.msra.mxu1 %v147_v4  ;;  %v1897_v31 = vld [vmem:[%s2814_s3] ss:$0 sm:$0xff] }
   0x8   :  { %1963 = vmatprep.subr.mxu0 %v54_v6  ;;  %1976 = vmatprep.subr.mxu1 %v146_v7  ;;  %v2315_v15 = vld [vmem:[%s2815_s6] ss:$0 sm:$0xff] }
   0x9   :  { %1964 = vmatpush3.msra.mxu0 %v54_v6  ;;  %1977 = vmatpush3.msra.mxu1 %v146_v7 }
   0xa   :  { %1965 = vmatprep.subr.mxu0 %v53_v8  ;;  %1979 = vmatmul.mubr.msk.f32.vlgmr.msra.gmra.mxu1 %vm64_vm0, %v52_v9 }
   0xb   :  { %1966 = vmatpush3.msra.mxu0 %v53_v8  ;;  %1967 = vmatprep.mubr.msk.f32.mxu0 %vm64_vm0, %v2269_v10 }
   0xc   :  { %1968 = vmatmul.mubr.msk.f32.vlgmr.msra.gmra.mxu0 %vm64_vm0, %v2274_v11 }
  0xca   :  { %v1980_v19 = vpop.f32.mrf.mxu1 }
  0xcb   :  { %v235_v20 = vadd.f32 %v1980_v19, %v1900_v17 }
  0xcc   :  { %v229_v21 = vpop.f32.mrf.mxu1  ;;  %v1969_v25 = vpop.f32.mrf.mxu0 }
  0xcd   :  { %v289_v22 = vcombine.high %v235_v20, %v235_v20  ;;  %v296_v23 = vrot.slane %v235_v20, %v246_v18  ;;  %v230_v24 = vadd.f32 %v1900_v17, %v229_v21  ;;  %v2295_v40 = vadd.f32 %v1969_v25, %v1897_v31 }
  0xce   :  { %v137_v37 = vpop.f32.mrf.mxu0 }
  0xcf   :  { %v304_v26 = vcombine.high %v296_v23, %v296_v23  ;;  %v312_v27 = vrot.slane %v296_v23, %v246_v18  ;;  %v240_v29 = vcombine.high %v230_v24, %v230_v24  ;;  %v247_v30 = vrot.slane %v230_v24, %v246_v18 }
  0xd0   :  { %v303_v32 = vrot.slane %v289_v22, %v246_v18  ;;  %v138_v43 = vadd.f32 %v1897_v31, %v137_v37 }
  0xd1   :  { %v326_v33 = vrot.slane %v304_v26, %v246_v18  ;;  %v254_v34 = vrot.slane %v240_v29, %v246_v18  ;;  %v255_v35 = vcombine.high %v247_v30, %v247_v30  ;;  %v263_v36 = vrot.slane %v247_v30, %v246_v18 }
  0xd2   :  { %v334_v38 = vcombine.high %v312_v27, %v312_v27  ;;  %v373_v39 = vrot.slane %v312_v27, %v2289_v28  ;;  %v319_v44 = vrot.slane %v303_v32, %v246_v18  ;;  %v305_v62 = vcombine.high %v303_v32, %v303_v32 }
  0xd3   :  { %v270_v41 = vrot.slane %v254_v34, %v246_v18  ;;  %v256_v42 = vcombine.high %v254_v34, %v254_v34  ;;  %v377_v45 = vrot.slane %v326_v33, %v2289_v28  ;;  %v277_v46 = vrot.slane %v255_v35, %v246_v18 }
  0xd4   :  { %v285_v47 = vcombine.high %v263_v36, %v263_v36  ;;  %v381_v48 = vrot.slane %v334_v38, %v2289_v28  ;;  %v341_v49 = vrot.slane %v263_v36, %v2289_v28  ;;  %v426_v51 = vadd.f32 %v373_v39, %v2295_v40 }
  0xd5   :  { %v357_v50 = vrot.slane %v270_v41, %v2289_v28  ;;  %v287_v52 = vcombine.high %v277_v46, %v277_v46  ;;  %v284_v54 = vrot.slane %v256_v42, %v246_v18  ;;  %v427_v58 = vadd.f32 %v377_v45, %v2295_v40 }
  0xd6   :  { %v349_v53 = vrot.slane %v285_v47, %v2289_v28  ;;  %2043 = vtanh.f32 %v426_v51  ;;  %v418_v55 = vadd.f32 %v341_v49, %v138_v43  ;;  %v389_v59 = vrot.slane %v319_v44, %v2289_v28 }
  0xd7   :  { %v353_v56 = vrot.slane %v287_v52, %v2289_v28  ;;  %v422_v60 = vadd.f32 %v357_v50, %v138_v43  ;;  %v428_v61 = vadd.f32 %v381_v48, %v2295_v40  ;;  %v286_v63 = vcombine.high %v270_v41, %v270_v41 }
  0xd8   :  { %v420_v57 = vadd.f32 %v349_v53, %v138_v43  ;;  %2045 = vtanh.f32 %v418_v55  ;;  %v361_v0 = vrot.slane %v284_v54, %v2289_v28  ;;  %v336_v2 = vcombine.high %v326_v33, %v326_v33 }
  0xd9   :  { %v421_v1 = vadd.f32 %v353_v56, %v138_v43  ;;  %v345_v3 = vrot.slane %v277_v46, %v2289_v28  ;;  %v430_v4 = vadd.f32 %v389_v59, %v2295_v40  ;;  %v333_v5 = vrot.slane %v305_v62, %v246_v18 }
  0xda   :  { %2047 = vtanh.f32 %v420_v57  ;;  %v288_v6 = vcombine.high %v284_v54, %v284_v54  ;;  %v365_v7 = vrot.slane %v286_v63, %v2289_v28  ;;  %v423_v8 = vadd.f32 %v361_v0, %v138_v43 }
  0xdb   :  { %2049 = vtanh.f32 %v427_v58  ;;  %v385_v9 = vrot.slane %v336_v2, %v2289_v28  ;;  %v419_v12 = vadd.f32 %v345_v3, %v138_v43  ;;  %v337_v13 = vcombine.high %v333_v5, %v333_v5 }
  0xdc   :  { %2051 = vtanh.f32 %v422_v60  ;;  %v369_v17 = vrot.slane %v288_v6, %v2289_v28  ;;  %v424_v19 = vadd.f32 %v365_v7, %v138_v43  ;;  %v335_v20 = vcombine.high %v319_v44, %v319_v44 }
  0xdd   :  { %2053 = vtanh.f32 %v428_v61  ;;  %v393_v21 = vrot.slane %v333_v5, %v2289_v28  ;;  %v429_v23 = vadd.f32 %v385_v9, %v2295_v40  ;;  %v401_v25 = vrot.slane %v337_v13, %v2289_v28 }
  0xde   :  { %2055 = vtanh.f32 %v421_v1  ;;  %v425_v30 = vadd.f32 %v369_v17, %v138_v43  ;;  %v397_v32 = vrot.slane %v335_v20, %v2289_v28 }
  0xdf   :  { %2057 = vtanh.f32 %v430_v4  ;;  %v431_v37 = vadd.f32 %v393_v21, %v2295_v40  ;;  %v433_v42 = vadd.f32 %v401_v25, %v2295_v40 }
  0xe0   :  { %2059 = vtanh.f32 %v423_v8  ;;  %v432_v46 = vadd.f32 %v397_v32, %v2295_v40 }
  0xe1   :  { %2061 = vtanh.f32 %v419_v12 }
  0xe2   :  { %2063 = vtanh.f32 %v424_v19 }
  0xe3   :  { %v2044_v18 = vpop.eup %2043  ;;  %2065 = vtanh.f32 %v429_v23 }
  0xe4   :  { %v465_v22 = vmul.f32 %v2044_v18, %v2315_v15  ;;  %2067 = vtanh.f32 %v425_v30 }
  0xe5   :  { %v2046_v24 = vpop.eup %2045  ;;  %2069 = vtanh.f32 %v431_v37 }
  0xe6   :  { %v497_v27 = vsel %vm64_vm0, %v465_v22, 0.0  ;;  %v457_v29 = vmul.f32 %v2046_v24, %v2315_v15  ;;  %2071 = vtanh.f32 %v433_v42  ;;  %v538_v24 = vand.u32 127, %v244_v14 }
  0xe7   :  { %v2048_v26 = vpop.eup %2047  ;;  %498 = vadd.xlane.f32.xlu1 %v497_v27  ;;  %2073 = vtanh.f32 %v432_v46 }
  0xe8   :  { %v2050_v31 = vpop.eup %2049  ;;  %v459_v33 = vmul.f32 %v2048_v26, %v2315_v15  ;;  %v473_v35 = vsel %vm64_vm0, %v457_v29, 0.0  ;;  %v2375_v27 = vsub.s32 %v538_v24, %v2282_v16 }
  0xe9   :  { %v2052_v34 = vpop.eup %2051  ;;  %v466_v36 = vmul.f32 %v2050_v31, %v2315_v15  ;;  %474 = vadd.xlane.f32.xlu0 %v473_v35 }
  0xea   :  { %v2054_v38 = vpop.eup %2053  ;;  %v479_v39 = vsel %vm64_vm0, %v459_v33, 0.0  ;;  %v461_v41 = vmul.f32 %v2052_v34, %v2315_v15 }
  0xeb   :  { %v2056_v43 = vpop.eup %2055  ;;  %480 = vadd.xlane.f32.xlu1 %v479_v39  ;;  %v500_v44 = vsel %vm64_vm0, %v466_v36, 0.0  ;;  %v467_v45 = vmul.f32 %v2054_v38, %v2315_v15 }
  0xec   :  { %v2058_v47 = vpop.eup %2057  ;;  %v485_v48 = vsel %vm64_vm0, %v461_v41, 0.0  ;;  %v460_v49 = vmul.f32 %v2056_v43, %v2315_v15 }
  0xed   :  { %501 = vadd.xlane.f32.xlu0 %v500_v44  ;;  %v2060_v50 = vpop.eup %2059  ;;  %v503_v51 = vsel %vm64_vm0, %v467_v45, 0.0  ;;  %v469_v52 = vmul.f32 %v2058_v47, %v2315_v15 }
  0xee   :  { %v2062_v53 = vpop.eup %2061  ;;  %v482_v54 = vsel %vm64_vm0, %v460_v49, 0.0  ;;  %v462_v40 = vmul.f32 %v2060_v50, %v2315_v15 }
  0xef   :  { %486 = vadd.xlane.f32.xlu1 %v485_v48  ;;  %v2064_v55 = vpop.eup %2063  ;;  %v509_v56 = vsel %vm64_vm0, %v469_v52, 0.0  ;;  %v458_v57 = vmul.f32 %v2062_v53, %v2315_v15 }
  0xf0   :  { %v2066_v58 = vpop.eup %2065  ;;  %v488_v59 = vsel %vm64_vm0, %v462_v40, 0.0  ;;  %v463_v60 = vmul.f32 %v2064_v55, %v2315_v15 }
  0xf1   :  { %504 = vadd.xlane.f32.xlu0 %v503_v51  ;;  %v2068_v61 = vpop.eup %2067  ;;  %v476_v62 = vsel %vm64_vm0, %v458_v57, 0.0  ;;  %v468_v63 = vmul.f32 %v2066_v58, %v2315_v15 }
  0xf2   :  { %v2070_v0 = vpop.eup %2069  ;;  %v491_v1 = vsel %vm64_vm0, %v463_v60, 0.0  ;;  %v464_v2 = vmul.f32 %v2068_v61, %v2315_v15 }
  0xf3   :  { %483 = vadd.xlane.f32.xlu1 %v482_v54  ;;  %v2072_v3 = vpop.eup %2071  ;;  %v506_v4 = vsel %vm64_vm0, %v468_v63, 0.0  ;;  %v470_v5 = vmul.f32 %v2070_v0, %v2315_v15 }
  0xf4   :  { %v2074_v6 = vpop.eup %2073  ;;  %v494_v7 = vsel %vm64_vm0, %v464_v2, 0.0  ;;  %v472_v8 = vmul.f32 %v2072_v3, %v2315_v15  ;;  %v2150_v3 = vmov 0  }
  0xf5   :  { %510 = vadd.xlane.f32.xlu0 %v509_v56  ;;  %v512_v9 = vsel %vm64_vm0, %v470_v5, 0.0  ;;  %v471_v12 = vmul.f32 %v2074_v6, %v2315_v15  ;;  %2041 = vset.pattern.permute.xlu1 %v2150_v3  ;;  %v2433_v5 = vsub.s32 6, %v2282_v16 }
  0xf6   :  { %v518_v13 = vsel %vm64_vm0, %v472_v8, 0.0  ;;  %2042 = vset.pattern.permute.xlu0 %v2150_v3 }
  0xf7   :  { %489 = vadd.xlane.f32.xlu1 %v488_v59  ;;  %v515_v17 = vsel %vm64_vm0, %v471_v12, 0.0 }
  0xf9   :  { %477 = vadd.xlane.f32.xlu0 %v476_v62 }
  0xfb   :  { %492 = vadd.xlane.f32.xlu1 %v491_v1 }
  0xfd   :  { %507 = vadd.xlane.f32.xlu0 %v506_v4  ;;  %v2430_v4 = vsub.s32 5, %v2282_v16 }
  0xff   :  { %495 = vadd.xlane.f32.xlu1 %v494_v7 }
 0x101   :  { %513 = vadd.xlane.f32.xlu0 %v512_v9  ;;  %v2442_v9 = vsub.s32 7, %v2282_v16 }
 0x103   :  { %519 = vadd.xlane.f32.xlu1 %v518_v13 }
 0x105   :  { %516 = vadd.xlane.f32.xlu0 %v515_v17 }
 0x170   :  { %v2357_v19 = vpop.xlane.xlu1 %498 }
 0x171   :  { %v574_v43 = vrot.slane %v2357_v19, %v2375_v27 }
 0x172   :  { %v2359_v18 = vpop.xlane.xlu0 %474 }
 0x173   :  { %v542_v30 = vrot.slane %v2359_v18, %v2375_v27 }
 0x174   :  { %v2361_v20 = vpop.xlane.xlu1 %480 }
 0x175   :  { %v550_v32 = vrot.slane %v2361_v20, %v2375_v27 }
 0x176   :  { %v2363_v21 = vpop.xlane.xlu0 %501 }
 0x177   :  { %v578_v35 = vrot.slane %v2363_v21, %v2375_v27 }
 0x178   :  { %v2365_v22 = vpop.xlane.xlu1 %486 }
 0x179   :  { %v558_v36 = vrot.slane %v2365_v22, %v2375_v27  ;;  %v617_v50 = vsel %vm603_vm1, %v578_v35, %v574_v43  ;;  %v2468_v43 = vsub.s32 3, %v2282_v16 }
 0x17a   :  { %v2367_v23 = vpop.xlane.xlu0 %504 }
 0x17b   :  { %v582_v39 = vrot.slane %v2367_v23, %v2375_v27 }
 0x17c   :  { %v2369_v15 = vpop.xlane.xlu1 %483 }
 0x17d   :  { %v554_v33 = vrot.slane %v2369_v15, %v2375_v27  ;;  %v618_v53 = vsel %vm605_vm2, %v582_v39, %v617_v50 }
 0x17e   :  { %v2372_v25 = vpop.xlane.xlu0 %510 }
 0x17f   :  { %v590_v57 = vrot.slane %v2372_v25, %v2375_v27 }
 0x180   :  { %v490_v26 = vpop.xlane.xlu1 %489 }
 0x181   :  { %v562_v41 = vrot.slane %v490_v26, %v2375_v27 }
 0x182   :  { %v2377_v29 = vpop.xlane.xlu0 %477 }
 0x183   :  { %v546_v31 = vrot.slane %v2377_v29, %v2375_v27 }
 0x184   :  { %v493_v14 = vpop.xlane.xlu1 %492 }
 0x185   :  { %v604_v34 = vsel %vm603_vm1, %v546_v31, %v542_v30  ;;  %v566_v44 = vrot.slane %v493_v14, %v2375_v27  ;;  %v2448_v30 = vsub.s32 1, %v2282_v16 }
 0x186   :  { %v606_v37 = vsel %vm605_vm2, %v550_v32, %v604_v34  ;;  %v2393_v38 = vpop.xlane.xlu0 %507 }
 0x187   :  { %v608_v42 = vsel %vm607_vm3, %v554_v33, %v606_v37  ;;  %v586_v45 = vrot.slane %v2393_v38, %v2375_v27 }
 0x188   :  { %v496_v46 = vpop.xlane.xlu1 %495  ;;  %v610_v47 = vsel %vm609_vm4, %v558_v36, %v608_v42 }
 0x189   :  { %v570_v48 = vrot.slane %v496_v46, %v2375_v27  ;;  %v612_v49 = vsel %vm611_vm5, %v562_v41, %v610_v47  ;;  %v619_v40 = vsel %vm607_vm3, %v586_v45, %v618_v53 }
 0x18a   :  { %v2408_v51 = vpop.xlane.xlu0 %513  ;;  %v614_v52 = vsel %vm613_vm6, %v566_v44, %v612_v49  ;;  %v620_v61 = vsel %vm609_vm4, %v590_v57, %v619_v40 }
 0x18b   :  { %v616_v54 = vsel %vm615_vm7, %v570_v48, %v614_v52  ;;  %v594_v55 = vrot.slane %v2408_v51, %v2375_v27 }
 0x18c   :  { %v627_v56 = vsel %vm626_vm8, %v616_v54, -inf  ;;  %v520_v58 = vpop.xlane.xlu1 %519 }
 0x18d   :  { %628 = vmax.xlane.f32.xlu0 %v627_v56  ;;  %v602_v62 = vrot.slane %v520_v58, %v2375_v27  ;;  %v621_v63 = vsel %vm611_vm5, %v594_v55, %v620_v61 }
 0x18e   :  { %v2419_v59 = vpop.xlane.xlu0 %516 }
 0x18f   :  { %v598_v60 = vrot.slane %v2419_v59, %v2375_v27 }
 0x191   :  { %v622_v0 = vsel %vm613_vm6, %v598_v60, %v621_v63 }
 0x192   :  { %v623_v1 = vsel %vm615_vm7, %v602_v62, %v622_v0 }
 0x193   :  { %v630_v2 = vsel %vm626_vm8, %v623_v1, -inf }
 0x194   :  { %631 = vmax.xlane.f32.xlu1 %v630_v2 }
 0x216   :  { %v2435_v6 = vpop.xlane.xlu0 %628 }
 0x217   :  { %v638_v7 = vrot.slane %v2435_v6, %v2289_v28  ;;  %v658_v8 = vrot.slane %v2435_v6, %v2430_v4  ;;  %v662_v13 = vrot.slane %v2435_v6, %v2433_v5  ;;  %v666_v31 = vrot.slane %v2435_v6, %v2442_v9 }
 0x218   :  { %v650_v1 = vrot.slane %v2435_v6, %v2468_v43 }
 0x219   :  { %v715_v12 = vsub.f32 %v2359_v18, %v638_v7  ;;  %v720_v17 = vsub.f32 %v490_v26, %v658_v8  ;;  %v721_v33 = vsub.f32 %v493_v14, %v662_v13  ;;  %v2459_v26 = vsub.s32 2, %v2282_v16 }
 0x21a   :  { %v722_v41 = vsub.f32 %v496_v46, %v666_v31  ;;  %v2474_v46 = vsub.s32 4, %v2282_v16 }
 0x21b   :  { %v731_v24 = vmul.f32 1.442695, %v715_v12  ;;  %v741_v34 = vmul.f32 1.442695, %v720_v17  ;;  %v743_v14 = vmul.f32 1.442695, %v721_v33  ;;  %v718_v12 = vsub.f32 %v2369_v15, %v650_v1 }
 0x21c   :  { %v745_v48 = vmul.f32 1.442695, %v722_v41  ;;  %v654_v8 = vrot.slane %v2435_v6, %v2474_v46 }
 0x21d   :  { %2075 = vpow2.f32 %v731_v24  ;;  %v2452_v32 = vpop.xlane.xlu1 %631  ;;  %v737_v24 = vmul.f32 1.442695, %v718_v12 }
 0x21e   :  { %v670_v35 = vrot.slane %v2452_v32, %v2289_v28  ;;  %v674_v18 = vrot.slane %v2452_v32, %v2448_v30  ;;  %v678_v37 = vrot.slane %v2452_v32, %v2459_v26  ;;  %2077 = vpow2.f32 %v741_v34 }
 0x21f   :  { %v698_v42 = vrot.slane %v2452_v32, %v2442_v9  ;;  %v682_v45 = vrot.slane %v2452_v32, %v2468_v43  ;;  %v686_v49 = vrot.slane %v2452_v32, %v2474_v46  ;;  %v694_v31 = vrot.slane %v2452_v32, %v2433_v5 }
 0x220   :  { %v723_v36 = vsub.f32 %v2357_v19, %v670_v35  ;;  %v724_v39 = vsub.f32 %v2363_v21, %v674_v18  ;;  %v725_v19 = vsub.f32 %v2367_v23, %v678_v37  ;;  %v690_v23 = vrot.slane %v2452_v32, %v2430_v4 }
 0x221   :  { %v730_v21 = vsub.f32 %v520_v58, %v698_v42  ;;  %v726_v50 = vsub.f32 %v2393_v38, %v682_v45  ;;  %v727_v40 = vsub.f32 %v2372_v25, %v686_v49  ;;  %v642_v38 = vrot.slane %v2435_v6, %v2448_v30 }
 0x222   :  { %v747_v44 = vmul.f32 1.442695, %v723_v36  ;;  %v749_v47 = vmul.f32 1.442695, %v724_v39  ;;  %v751_v52 = vmul.f32 1.442695, %v725_v19  ;;  %v728_v57 = vsub.f32 %v2408_v51, %v690_v23 }
 0x223   :  { %v761_v54 = vmul.f32 1.442695, %v730_v21  ;;  %v753_v55 = vmul.f32 1.442695, %v726_v50  ;;  %v755_v58 = vmul.f32 1.442695, %v727_v40  ;;  %v646_v25 = vrot.slane %v2435_v6, %v2459_v26 }
 0x224   :  { %2079 = vpow2.f32 %v747_v44  ;;  %v716_v62 = vsub.f32 %v2377_v29, %v642_v38  ;;  %v757_v63 = vmul.f32 1.442695, %v728_v57  ;;  %v729_v15 = vsub.f32 %v2419_v59, %v694_v31 }
 0x225   :  { %2081 = vpow2.f32 %v743_v14  ;;  %v717_v2 = vsub.f32 %v2361_v20, %v646_v25  ;;  %v719_v20 = vsub.f32 %v2365_v22, %v654_v8 }
 0x226   :  { %2083 = vpow2.f32 %v749_v47  ;;  %v733_v3 = vmul.f32 1.442695, %v716_v62  ;;  %v759_v35 = vmul.f32 1.442695, %v729_v15 }
 0x227   :  { %2085 = vpow2.f32 %v745_v48  ;;  %v735_v13 = vmul.f32 1.442695, %v717_v2  ;;  %v739_v6 = vmul.f32 1.442695, %v719_v20 }
 0x228   :  { %2087 = vpow2.f32 %v751_v52 }
 0x229   :  { %2089 = vpow2.f32 %v761_v54 }
 0x22a   :  { %v2479_v53 = vpop.eup %2075  ;;  %2091 = vpow2.f32 %v753_v55 }
 0x22b   :  { %780 = vperm.xlu0 %2042, %v2479_v53   ;;  %v2485_v56 = vpop.eup %2077  ;;  %2093 = vpow2.f32 %v755_v58 }
 0x22c   :  { %2095 = vpow2.f32 %v757_v63 }
 0x22d   :  { %2097 = vpow2.f32 %v733_v3 }
 0x22e   :  { %2099 = vpow2.f32 %v735_v13 }
 0x22f   :  { %795 = vperm.xlu0 %2042, %v2485_v56   ;;  %2101 = vpow2.f32 %v737_v24 }
 0x230   :  { %2103 = vpow2.f32 %v739_v6 }
 0x231   :  { %v2491_v60 = vpop.eup %2079  ;;  %2105 = vpow2.f32 %v759_v35 }
 0x232   :  { %v2493_v61 = vpop.eup %2081  ;;  %804 = vperm.xlu1 %2041, %v2491_v60  }
 0x233   :  { %798 = vperm.xlu0 %2042, %v2493_v61   ;;  %v2500_v0 = vpop.eup %2083 }
 0x234   :  { %v2502_v51 = vpop.eup %2085 }
 0x235   :  { %v2509_v7 = vpop.eup %2087 }
 0x236   :  { %807 = vperm.xlu1 %2041, %v2500_v0   ;;  %v2511_v29 = vpop.eup %2089 }
 0x237   :  { %801 = vperm.xlu0 %2042, %v2502_v51   ;;  %v2518_v17 = vpop.eup %2091 }
 0x238   :  { %v2524_v33 = vpop.eup %2093 }
 0x239   :  { %v2528_v34 = vpop.eup %2095 }
 0x23a   :  { %810 = vperm.xlu1 %2041, %v2509_v7   ;;  %v2531_v22 = vpop.eup %2097 }
 0x23b   :  { %825 = vperm.xlu0 %2042, %v2511_v29   ;;  %v2534_v32 = vpop.eup %2099 }
 0x23c   :  { %v2537_v18 = vpop.eup %2101 }
 0x23d   :  { %v2540_v59 = vpop.eup %2103 }
 0x23e   :  { %813 = vperm.xlu1 %2041, %v2518_v17   ;;  %v2543_v36 = vpop.eup %2105 }
 0x242   :  { %816 = vperm.xlu1 %2041, %v2524_v33  }
 0x246   :  { %819 = vperm.xlu1 %2041, %v2528_v34  }
 0x24a   :  { %783 = vperm.xlu1 %2041, %v2531_v22  }
 0x24e   :  { %786 = vperm.xlu1 %2041, %v2534_v32  }
 0x252   :  { %789 = vperm.xlu1 %2041, %v2537_v18  }
 0x256   :  { %792 = vperm.xlu1 %2041, %v2540_v59  }
 0x25a   :  { %822 = vperm.xlu1 %2041, %v2543_v36  }
 0x2a6   :  { %v781_v42 = vpop.permute.xlu0 %780 }
 0x2a7   :  { %v830_v23 = vrot.slane %v781_v42, %v2375_v27 }
 0x2aa   :  { %v796_v19 = vpop.permute.xlu0 %795 }
 0x2ab   :  { %v850_v3 = vrot.slane %v796_v19, %v2375_v27 }
 0x2ad   :  { %v805_v37 = vpop.permute.xlu1 %804 }
 0x2ae   :  { %v799_v48 = vpop.permute.xlu0 %798  ;;  %v862_v57 = vrot.slane %v805_v37, %v2375_v27 }
 0x2af   :  { %v854_v20 = vrot.slane %v799_v48, %v2375_v27 }
 0x2b1   :  { %v808_v39 = vpop.permute.xlu1 %807 }
 0x2b2   :  { %v802_v52 = vpop.permute.xlu0 %801  ;;  %v866_v40 = vrot.slane %v808_v39, %v2375_v27 }
 0x2b3   :  { %v858_v15 = vrot.slane %v802_v52, %v2375_v27 }
 0x2b4   :  { %v898_v8 = vsel %vm603_vm1, %v866_v40, %v862_v57 }
 0x2b5   :  { %v811_v41 = vpop.permute.xlu1 %810 }
 0x2b6   :  { %v870_v38 = vrot.slane %v811_v41, %v2375_v27  ;;  %v826_v31 = vpop.permute.xlu0 %825 }
 0x2b8   :  { %v899_v24 = vsel %vm605_vm2, %v870_v38, %v898_v8 }
 0x2b9   :  { %v814_v14 = vpop.permute.xlu1 %813 }
 0x2ba   :  { %v874_v58 = vrot.slane %v814_v14, %v2375_v27 }
 0x2bc   :  { %v900_v35 = vsel %vm607_vm3, %v874_v58, %v899_v24 }
 0x2bd   :  { %v817_v44 = vpop.permute.xlu1 %816 }
 0x2be   :  { %v878_v63 = vrot.slane %v817_v44, %v2375_v27  ;;  %v890_v44 = vrot.slane %v826_v31, %v2375_v27 }
 0x2c0   :  { %v901_v41 = vsel %vm609_vm4, %v878_v63, %v900_v35 }
 0x2c1   :  { %v820_v45 = vpop.permute.xlu1 %819 }
 0x2c2   :  { %v882_v12 = vrot.slane %v820_v45, %v2375_v27 }
 0x2c4   :  { %v902_v45 = vsel %vm611_vm5, %v882_v12, %v901_v41 }
 0x2c5   :  { %v784_v47 = vpop.permute.xlu1 %783 }
 0x2c6   :  { %v834_v49 = vrot.slane %v784_v47, %v2375_v27 }
 0x2c8   :  { %v891_v25 = vsel %vm603_vm1, %v834_v49, %v830_v23 }
 0x2c9   :  { %v787_v21 = vpop.permute.xlu1 %786 }
 0x2ca   :  { %v838_v54 = vrot.slane %v787_v21, %v2375_v27 }
 0x2cc   :  { %v892_v1 = vsel %vm605_vm2, %v838_v54, %v891_v25 }
 0x2cd   :  { %v790_v50 = vpop.permute.xlu1 %789 }
 0x2ce   :  { %v842_v55 = vrot.slane %v790_v50, %v2375_v27 }
 0x2d0   :  { %v893_v13 = vsel %vm607_vm3, %v842_v55, %v892_v1 }
 0x2d1   :  { %v793_v62 = vpop.permute.xlu1 %792 }
 0x2d2   :  { %v846_v2 = vrot.slane %v793_v62, %v2375_v27 }
 0x2d4   :  { %v894_v6 = vsel %vm609_vm4, %v846_v2, %v893_v13 }
 0x2d5   :  { %v823_v37 = vpop.permute.xlu1 %822  ;;  %v895_v39 = vsel %vm611_vm5, %v850_v3, %v894_v6 }
 0x2d6   :  { %v886_v14 = vrot.slane %v823_v37, %v2375_v27  ;;  %v896_v42 = vsel %vm613_vm6, %v854_v20, %v895_v39 }
 0x2d7   :  { %v897_v19 = vsel %vm615_vm7, %v858_v15, %v896_v42 }
 0x2d8   :  { %v907_v47 = vsel %vm626_vm8, %v897_v19, 0.0  ;;  %v903_v48 = vsel %vm613_vm6, %v886_v14, %v902_v45  ;;  %v2151_v19 = vmov 0.0  }
 0x2d9   :  { %908 = vadd.xlane.f32.xlu1 %v907_v47  ;;  %v904_v21 = vsel %vm615_vm7, %v890_v44, %v903_v48  ;;  %1981 = vmatprep.subr.mxu0 %v2151_v19 }
 0x2da   :  { %v910_v49 = vsel %vm626_vm8, %v904_v21, 0.0  ;;  %1982 = vmatpush3.msra.mxu0 %v2269_v10  ;;  %1983 = vmatprep.mubr.msk.f32.mxu0 %vm2152_vm9, %v2151_v19  ;;  %v1320_v10 = vld [vmem:[%s2817_s8 + $0x18] sm:$0xff] }
 0x2db   :  { %911 = vadd.xlane.f32.xlu0 %v910_v49  ;;  %1986 = vmatprep.subr.mxu1 %v2151_v19 }
 0x2dc   :  { %1987 = vmatpush3.msra.mxu1 %v2274_v11  ;;  %1988 = vmatprep.mubr.msk.f32.mxu1 %vm2152_vm9, %v2151_v19 }
 0x2dd   :  { %1991 = vmatprep.subr.mxu0 %v1320_v10 }
 0x362   :  { %v909_v50 = vpop.xlane.xlu1 %908 }
 0x363   :  { %v918_v55 = vrot.slane %v909_v50, %v2289_v28  ;;  %v930_v57 = vrot.slane %v909_v50, %v2468_v43  ;;  %v934_v25 = vrot.slane %v909_v50, %v2474_v46  ;;  %v922_v62 = vrot.slane %v909_v50, %v2448_v30 }
 0x364   :  { %v912_v52 = vpop.xlane.xlu0 %911  ;;  %v926_v3 = vrot.slane %v909_v50, %v2459_v26  ;;  %v942_v12 = vrot.slane %v909_v50, %v2433_v5 }
 0x365   :  { %v954_v54 = vrot.slane %v912_v52, %v2448_v30  ;;  %v950_v23 = vrot.slane %v912_v52, %v2289_v28  ;;  %v958_v40 = vrot.slane %v912_v52, %v2459_v26  ;;  %v962_v38 = vrot.slane %v912_v52, %v2468_v43 }
 0x366   :  { %v966_v58 = vrot.slane %v912_v52, %v2474_v46  ;;  %v938_v28 = vrot.slane %v909_v50, %v2430_v4  ;;  %v970_v13 = vrot.slane %v912_v52, %v2430_v4  ;;  %v946_v26 = vrot.slane %v909_v50, %v2442_v9 }
 0x367   :  { %2107 = vrcp.f32 %v954_v54  ;;  %v974_v31 = vrot.slane %v912_v52, %v2433_v5  ;;  %v978_v4 = vrot.slane %v912_v52, %v2442_v9 }
 0x368   :  { %2109 = vrcp.f32 %v950_v23 }
 0x369   :  { %2111 = vrcp.f32 %v958_v40 }
 0x36a   :  { %2113 = vrcp.f32 %v918_v55 }
 0x36b   :  { %2115 = vrcp.f32 %v962_v38 }
 0x36c   :  { %2117 = vrcp.f32 %v930_v57 }
 0x36d   :  { %2119 = vrcp.f32 %v966_v58 }
 0x36e   :  { %2121 = vrcp.f32 %v934_v25 }
 0x36f   :  { %2123 = vrcp.f32 %v922_v62 }
 0x370   :  { %2125 = vrcp.f32 %v938_v28 }
 0x371   :  { %2127 = vrcp.f32 %v926_v3 }
 0x372   :  { %2129 = vrcp.f32 %v942_v12 }
 0x373   :  { %2131 = vrcp.f32 %v970_v13 }
 0x374   :  { %v2108_v63 = vpop.eup %2107  ;;  %2133 = vrcp.f32 %v946_v26 }
 0x375   :  { %v2110_v1 = vpop.eup %2109  ;;  %v1014_v2 = vmul.f32 %v2108_v63, %v2500_v0  ;;  %2135 = vrcp.f32 %v974_v31 }
 0x376   :  { %v2112_v43 = vpop.eup %2111  ;;  %v1012_v8 = vmul.f32 %v2110_v1, %v2491_v60  ;;  %2137 = vrcp.f32 %v978_v4  ;;  %v1319_v4 = vld [vmem:[%s2817_s8 + $0x10] sm:$0xff] }
 0x377   :  { %v2114_v46 = vpop.eup %2113  ;;  %1182 = vperm.xlu1 %2041, %v1014_v2   ;;  %v1016_v30 = vmul.f32 %v2112_v43, %v2509_v7 }
 0x378   :  { %1179 = vperm.xlu0 %2042, %v1012_v8   ;;  %v2116_v20 = vpop.eup %2115  ;;  %v996_v0 = vmul.f32 %v2114_v46, %v2479_v53 }
 0x379   :  { %v2118_v24 = vpop.eup %2117  ;;  %v1018_v60 = vmul.f32 %v2116_v20, %v2518_v17 }
 0x37a   :  { %v2120_v6 = vpop.eup %2119  ;;  %v1002_v7 = vmul.f32 %v2118_v24, %v2537_v18 }
 0x37b   :  { %1185 = vperm.xlu1 %2041, %v1016_v30   ;;  %v2122_v15 = vpop.eup %2121  ;;  %v1020_v53 = vmul.f32 %v2120_v6, %v2524_v33 }
 0x37c   :  { %1036 = vperm.xlu0 %2042, %v996_v0   ;;  %v2124_v35 = vpop.eup %2123  ;;  %v1004_v37 = vmul.f32 %v2122_v15, %v2540_v59 }
 0x37d   :  { %v2126_v17 = vpop.eup %2125  ;;  %v998_v5 = vmul.f32 %v2124_v35, %v2531_v22 }
 0x37e   :  { %v2128_v39 = vpop.eup %2127  ;;  %v1006_v18 = vmul.f32 %v2126_v17, %v2485_v56 }
 0x37f   :  { %1188 = vperm.xlu1 %2041, %v1018_v60   ;;  %v2130_v41 = vpop.eup %2129  ;;  %v1000_v9 = vmul.f32 %v2128_v39, %v2534_v32 }
 0x380   :  { %1045 = vperm.xlu0 %2042, %v1002_v7   ;;  %v2132_v14 = vpop.eup %2131  ;;  %v1008_v33 = vmul.f32 %v2130_v41, %v2493_v61  ;;  %v1314_v41 = vld [vmem:[%s2816_s7 + $0x8] sm:$0xff] }
 0x381   :  { %v2134_v42 = vpop.eup %2133  ;;  %v1022_v59 = vmul.f32 %v2132_v14, %v2528_v34  ;;  %v1313_v14 = vld [vmem:[%s2816_s7] sm:$0xff] }
 0x382   :  { %v2136_v44 = vpop.eup %2135  ;;  %v1010_v45 = vmul.f32 %v2134_v42, %v2502_v51  ;;  %v1316_v51 = vld [vmem:[%s2816_s7 + $0x18] sm:$0xff]  ;;  %v2148_v42 = vld [vmem:[%s2811_s1 + $0x8] sm:$0xff] }
 0x383   :  { %1191 = vperm.xlu1 %2041, %v1020_v53   ;;  %v2138_v22 = vpop.eup %2137  ;;  %v1024_v56 = vmul.f32 %v2136_v44, %v2543_v36  ;;  %2002 = vmatprep.subr.mxu1 %v1316_v51 }
 0x384   :  { %1048 = vperm.xlu0 %2042, %v1004_v37   ;;  %v1026_v61 = vmul.f32 %v2138_v22, %v2511_v29 }
 0x387   :  { %1039 = vperm.xlu1 %2041, %v998_v5  }
 0x388   :  { %1051 = vperm.xlu0 %2042, %v1006_v18   ;;  %v1315_v18 = vld [vmem:[%s2816_s7 + $0x10] sm:$0xff] }
 0x38b   :  { %1042 = vperm.xlu1 %2041, %v1000_v9   ;;  %v1318_v9 = vld [vmem:[%s2817_s8 + $0x8] sm:$0xff] }
 0x38c   :  { %1054 = vperm.xlu0 %2042, %v1008_v33   ;;  %v1317_v33 = vld [vmem:[%s2817_s8] sm:$0xff] }
 0x38f   :  { %1194 = vperm.xlu1 %2041, %v1022_v59  }
 0x390   :  { %1057 = vperm.xlu0 %2042, %v1010_v45  }
 0x393   :  { %1197 = vperm.xlu1 %2041, %v1024_v56   ;;  %v1569_v56 = vld [vmem:[%s2818_s10 + $0x18] sm:$0xff] }
 0x394   :  { %1200 = vperm.xlu0 %2042, %v1026_v61   ;;  %v1754_v61 = vld [vmem:[%s2819_s12 + $0x18] sm:$0xff] }
 0x3f2   :  { %v1183_v34 = vpop.permute.xlu1 %1182 }
 0x3f3   :  { %v1180_v32 = vpop.permute.xlu0 %1179  ;;  %v1209_v38 = vrot.slane %v1183_v34, %v2375_v27  ;;  %v1567_v34 = vld [vmem:[%s2818_s10 + $0x8] sm:$0xff] }
 0x3f4   :  { %v1205_v57 = vrot.slane %v1180_v32, %v2375_v27  ;;  %v1752_v32 = vld [vmem:[%s2819_s12 + $0x8] sm:$0xff] }
 0x3f6   :  { %v1186_v36 = vpop.permute.xlu1 %1185  ;;  %v1234_v13 = vsel %vm603_vm1, %v1209_v38, %v1205_v57 }
 0x3f7   :  { %v1037_v29 = vpop.permute.xlu0 %1036  ;;  %v1213_v62 = vrot.slane %v1186_v36, %v2375_v27  ;;  %v1566_v36 = vld [vmem:[%s2818_s10] sm:$0xff] }
 0x3f8   :  { %v1062_v54 = vrot.slane %v1037_v29, %v2375_v27  ;;  %v1751_v29 = vld [vmem:[%s2819_s12] sm:$0xff] }
 0x3f9   :  { %v1235_v24 = vsel %vm605_vm2, %v1213_v62, %v1234_v13  ;;  %v2153_v62 = vmov 1983009808  }
 0x3fa   :  { %v1189_v47 = vpop.permute.xlu1 %1188 }
 0x3fb   :  { %v1046_v11 = vpop.permute.xlu0 %1045  ;;  %v1217_v1 = vrot.slane %v1189_v47, %v2375_v27 }
 0x3fc   :  { %v1074_v58 = vrot.slane %v1046_v11, %v2375_v27 }
 0x3fd   :  { %v1236_v31 = vsel %vm607_vm3, %v1217_v1, %v1235_v24  ;;  %v2154_v1 = vmov 1934713408  }
 0x3fe   :  { %v1192_v48 = vpop.permute.xlu1 %1191 }
 0x3ff   :  { %v1049_v21 = vpop.permute.xlu0 %1048  ;;  %v1221_v8 = vrot.slane %v1192_v48, %v2375_v27  ;;  %v1910_v48 = vld [vmem:[%s2820_s9] ss:$0 sm:$0xff] }
 0x400   :  { %v1078_v28 = vrot.slane %v1049_v21, %v2375_v27 }
 0x401   :  { %v1237_v15 = vsel %vm609_vm4, %v1221_v8, %v1236_v31 }
 0x402   :  { %v1040_v49 = vpop.permute.xlu1 %1039 }
 0x403   :  { %v1052_v50 = vpop.permute.xlu0 %1051  ;;  %v1066_v52 = vrot.slane %v1040_v49, %v2375_v27 }
 0x404   :  { %v1082_v2 = vrot.slane %v1052_v50, %v2375_v27 }
 0x405   :  { %v1091_v25 = vsel %vm603_vm1, %v1066_v52, %v1062_v54 }
 0x406   :  { %v1043_v23 = vpop.permute.xlu1 %1042 }
 0x407   :  { %v1070_v40 = vrot.slane %v1043_v23, %v2375_v27  ;;  %v1055_v55 = vpop.permute.xlu0 %1054 }
 0x408   :  { %v1086_v46 = vrot.slane %v1055_v55, %v2375_v27 }
 0x409   :  { %v1092_v63 = vsel %vm605_vm2, %v1070_v40, %v1091_v25 }
 0x40a   :  { %v1093_v3 = vsel %vm607_vm3, %v1074_v58, %v1092_v63  ;;  %v1195_v43 = vpop.permute.xlu1 %1194 }
 0x40b   :  { %v1094_v12 = vsel %vm609_vm4, %v1078_v28, %v1093_v3  ;;  %v1058_v30 = vpop.permute.xlu0 %1057  ;;  %v1225_v0 = vrot.slane %v1195_v43, %v2375_v27  ;;  %v1502_v28 = vunpack.c.l.s4 %v2153_v62 }
 0x40c   :  { %v1095_v20 = vsel %vm611_vm5, %v1082_v2, %v1094_v12  ;;  %v1090_v26 = vrot.slane %v1058_v30, %v2375_v27  ;;  %v1533_v2 = vunpack.c.l.s4 %v2154_v1 }
 0x40d   :  { %v1096_v60 = vsel %vm613_vm6, %v1086_v46, %v1095_v20  ;;  %v1238_v37 = vsel %vm611_vm5, %v1225_v0, %v1237_v15  ;;  %v1503_v63 = vunpack.c.0.s8 %v1502_v28 }
 0x40e   :  { %v1097_v6 = vsel %vm615_vm7, %v1090_v26, %v1096_v60  ;;  %v1198_v7 = vpop.permute.xlu1 %1197  ;;  %v1534_v12 = vunpack.c.0.s8 %v1533_v2 }
 0x40f   :  { %v1229_v53 = vrot.slane %v1198_v7, %v2375_v27  ;;  %v1201_v35 = vpop.permute.xlu0 %1200  ;;  %1984 = vmatmul.mubr.msk.f32.vlgmr.msra.gmra.mxu0 %vm626_vm8, %v1097_v6  ;;  %v2710_v8 = vsub.s32 %v1503_v63, %v2282_v16 }
 0x410   :  { %v1233_v17 = vrot.slane %v1201_v35, %v2375_v27  ;;  %1992 = vmatpush3.msra.mxu0 %v1320_v10  ;;  %v2147_v27 = vld [vmem:[%s2811_s1] sm:$0xff]  ;;  %v1753_v10 = vld [vmem:[%s2819_s12 + $0x10] sm:$0xff]  ;;  %v1537_v24 = vsub.s32 %v1534_v12, %v2282_v16 }
 0x411   :  { %v1239_v5 = vsel %vm613_vm6, %v1229_v53, %v1238_v37  ;;  %1993 = vmatprep.subr.mxu0 %v1319_v4 }
 0x412   :  { %v1240_v39 = vsel %vm615_vm7, %v1233_v17, %v1239_v5  ;;  %1994 = vmatpush3.msra.mxu0 %v1319_v4 }
 0x413   :  { %1989 = vmatmul.mubr.msk.f32.vlgmr.msra.gmra.mxu1 %vm626_vm8, %v1240_v39  ;;  %1995 = vmatprep.subr.mxu0 %v1318_v9 }
 0x414   :  { %2003 = vmatpush3.msra.mxu1 %v1316_v51  ;;  %2010 = vmatprep.mubr.msk.f32.mxu1 %vm64_vm0, %v2147_v27  ;;  %v1568_v51 = vld [vmem:[%s2818_s10 + $0x10] sm:$0xff] }
 0x415   :  { %2004 = vmatprep.subr.mxu1 %v1315_v18  ;;  %1996 = vmatpush3.msra.mxu0 %v1318_v9 }
 0x416   :  { %2005 = vmatpush3.msra.mxu1 %v1315_v18  ;;  %1997 = vmatprep.subr.mxu0 %v1317_v33 }
 0x417   :  { %2006 = vmatprep.subr.mxu1 %v1314_v41  ;;  %1998 = vmatpush3.msra.mxu0 %v1317_v33 }
 0x418   :  { %2007 = vmatpush3.msra.mxu1 %v1314_v41  ;;  %2013 = vmatprep.subr.mxu0 %v1569_v56 }
 0x419   :  { %2008 = vmatprep.subr.mxu1 %v1313_v14 }
 0x41a   :  { %2009 = vmatpush3.msra.mxu1 %v1313_v14 }
 0x41b   :  { %2011 = vmatmul.mubr.msk.f32.vlgmr.msra.gmra.mxu1 %vm64_vm0, %v2148_v42  ;;  %2024 = vmatprep.subr.mxu1 %v1754_v61 }
 0x41c   :  { %2025 = vmatpush3.msra.mxu1 %v1754_v61 }
 0x41d   :  { %2026 = vmatprep.subr.mxu1 %v1753_v10 }
 0x41e   :  { %2027 = vmatpush3.msra.mxu1 %v1753_v10 }
 0x41f   :  { %2028 = vmatprep.subr.mxu1 %v1752_v32 }
 0x420   :  { %2029 = vmatpush3.msra.mxu1 %v1752_v32 }
 0x421   :  { %2030 = vmatprep.subr.mxu1 %v1751_v29 }
 0x422   :  { %2031 = vmatpush3.msra.mxu1 %v1751_v29 }
 0x4cf   :  { %v1166_v59 = vpop.f32.mrf.mxu0 }
 0x4d0   :  { %1999 = vmatprep.mubr.msk.f32.mxu0 %vm64_vm0, %v1166_v59 }
 0x4d1   :  { %v1985_v44 = vpop.f32.mrf.mxu0 }
 0x4d3   :  { %v1309_v45 = vpop.f32.mrf.mxu1 }
 0x4d4   :  { %2000 = vmatmul.mubr.msk.f32.vlgmr.msra.gmra.mxu0 %vm64_vm0, %v1309_v45 }
 0x4d5   :  { %v1990_v22 = vpop.f32.mrf.mxu1  ;;  %2014 = vmatpush3.msra.mxu0 %v1569_v56  ;;  %v1916_v56 = vld [vmem:[%s2822_s13] ss:$0 sm:$0xff] }
 0x4d6   :  { %2015 = vmatprep.subr.mxu0 %v1568_v51 }
 0x4d7   :  { %2016 = vmatpush3.msra.mxu0 %v1568_v51 }
 0x4d8   :  { %2017 = vmatprep.subr.mxu0 %v1567_v34 }
 0x4d9   :  { %2018 = vmatpush3.msra.mxu0 %v1567_v34 }
 0x4da   :  { %2019 = vmatprep.subr.mxu0 %v1566_v36 }
 0x4db   :  { %2020 = vmatpush3.msra.mxu0 %v1566_v36  ;;  %v2012_v47 = vpop.f32.mrf.mxu1 }
 0x4dd   :  { %v1468_v49 = vpop.f32.mrf.mxu1 }
 0x594   :  { %v2001_v11 = vpop.f32.mrf.mxu0 }
 0x595   :  { %v1474_v21 = vadd.f32 %v2012_v47, %v2001_v11 }
 0x596   :  { %v1393_v50 = vpop.f32.mrf.mxu0 }
 0x597   :  { %v1485_v52 = vadd.f32 %v1910_v48, %v1474_v21  ;;  %v1469_v54 = vadd.f32 %v1468_v49, %v1393_v50 }
 0x599   :  { %v1912_v23 = vmul.f32 -1.442695, %v1485_v52  ;;  %v1484_v40 = vadd.f32 %v1910_v48, %v1469_v54 }
 0x59b   :  { %2139 = vpow2.f32 %v1912_v23  ;;  %v1911_v55 = vmul.f32 -1.442695, %v1484_v40 }
 0x59d   :  { %2141 = vpow2.f32 %v1911_v55 }
 0x5a8   :  { %v2140_v38 = vpop.eup %2139 }
 0x5a9   :  { %v1493_v57 = vadd.f32 1.0, %v2140_v38 }
 0x5aa   :  { %v2142_v58 = vpop.eup %2141 }
 0x5ab   :  { %2143 = vrcp.f32 %v1493_v57  ;;  %v1492_v25 = vadd.f32 1.0, %v2142_v58 }
 0x5ad   :  { %2145 = vrcp.f32 %v1492_v25 }
 0x5b8   :  { %v2144_v3 = vpop.eup %2143 }
 0x5b9   :  { %v1499_v43 = vmul.f32 %v2144_v3, %v1309_v45 }
 0x5ba   :  { %v2146_v46 = vpop.eup %2145 }
 0x5bb   :  { %v1498_v30 = vmul.f32 %v2146_v46, %v1166_v59  ;;  %v1515_v13 = vcombine.high %v1499_v43, %v2151_v19  ;;  %v1522_v26 = vrot.slane %v1499_v43, %v2710_v8 }
 0x5bd   :  { %v1500_v20 = vcombine.high %v1498_v30, %v2151_v19  ;;  %v1507_v0 = vrot.slane %v1498_v30, %v2710_v8  ;;  %v1529_v7 = vrot.slane %v1515_v13, %v2710_v8 }
 0x5bf   :  { %v1530_v60 = vcombine.low %v1507_v0, %v1522_v26  ;;  %v1531_v31 = vcombine.high %v1507_v0, %v1522_v26  ;;  %v1514_v6 = vrot.slane %v1500_v20, %v2710_v8 }
 0x5c1   :  { %v1538_v4 = vrot.slane %v1530_v60, %v1537_v24  ;;  %v1545_v15 = vrot.slane %v1531_v31, %v1537_v24  ;;  %v1546_v53 = vcombine.low %v1514_v6, %v1529_v7  ;;  %v1547_v35 = vcombine.high %v1514_v6, %v1529_v7 }
 0x5c3   :  { %v1562_v37 = vcombine.high %v1538_v4, %v2151_v19  ;;  %v1563_v17 = vcombine.high %v1545_v15, %v2151_v19  ;;  %v1554_v5 = vrot.slane %v1546_v53, %v1537_v24  ;;  %v1561_v39 = vrot.slane %v1547_v35, %v1537_v24 }
 0x5c5   :  { %v1585_v18 = vcombine.low %v1538_v4, %v1562_v37  ;;  %v1586_v41 = vcombine.low %v1545_v15, %v1563_v17  ;;  %v1564_v16 = vcombine.high %v1554_v5, %v2151_v19  ;;  %v1565_v27 = vcombine.high %v1561_v39, %v2151_v19  ;;  %v1913_v19 = vld [vmem:[%s2821_s11] ss:$0 sm:$0xff] }
 0x5c7   :  { %v1593_v9 = vrot.slane %v1585_v18, %v2710_v8  ;;  %v1600_v14 = vrot.slane %v1586_v41, %v2710_v8  ;;  %v1602_v33 = vcombine.low %v1554_v5, %v1564_v16  ;;  %v1603_v42 = vcombine.low %v1561_v39, %v1565_v27 }
 0x5c9   :  { %v1601_v59 = vcombine.low %v1593_v9, %v1600_v14  ;;  %v1610_v44 = vrot.slane %v1602_v33, %v2710_v8  ;;  %v1617_v45 = vrot.slane %v1603_v42, %v2710_v8 }
 0x5cb   :  { %2021 = vmatprep.mubr.msk.f32.mxu0 %vm64_vm0, %v1601_v59  ;;  %2032 = vmatprep.mubr.msk.f32.mxu1 %vm64_vm0, %v1601_v59  ;;  %v1618_v22 = vcombine.low %v1610_v44, %v1617_v45 }
 0x5cd   :  { %2022 = vmatmul.mubr.msk.f32.vlgmr.msra.gmra.mxu0 %vm64_vm0, %v1618_v22  ;;  %2033 = vmatmul.mubr.msk.f32.vlgmr.msra.gmra.mxu1 %vm64_vm0, %v1618_v22 }
 0x68d   :  { %v2023_v61 = vpop.f32.mrf.mxu0  ;;  %v2034_v51 = vpop.f32.mrf.mxu1 }
 0x68e   :  { %v1695_v10 = vadd.f32 %v2023_v61, %v1913_v19  ;;  %v1834_v34 = vadd.f32 %v2034_v51, %v1916_v56 }
 0x68f   :  { %v1689_v32 = vpop.f32.mrf.mxu0  ;;  %v1828_v36 = vpop.f32.mrf.mxu1 }
 0x690   :  { %v1717_v29 = vcombine.high %v1695_v10, %v1695_v10  ;;  %v1724_v47 = vrot.slane %v1695_v10, %v2710_v8  ;;  %v1856_v11 = vcombine.high %v1834_v34, %v1834_v34  ;;  %v1863_v48 = vrot.slane %v1834_v34, %v2710_v8 }
 0x691   :  { %v1690_v21 = vadd.f32 %v1913_v19, %v1689_v32  ;;  %v1829_v49 = vadd.f32 %v1916_v56, %v1828_v36 }
 0x692   :  { %v1731_v50 = vrot.slane %v1717_v29, %v2710_v8  ;;  %v1732_v52 = vcombine.high %v1724_v47, %v1724_v47  ;;  %1747 = vst.msk [vmem:[%s2823_s14 + $0x8] sm:$0x3] %vm1742_vm10, %v1724_v47  ;;  %v1870_v54 = vrot.slane %v1856_v11, %v2710_v8  ;;  %v1871_v23 = vcombine.high %v1863_v48, %v1863_v48 }
 0x693   :  { %1885 = vst.msk [vmem:[%s2824_s15 + $0x8] sm:$0x3] %vm1742_vm10, %v1863_v48  ;;  %v1700_v40 = vcombine.high %v1690_v21, %v1690_v21  ;;  %v1707_v55 = vrot.slane %v1690_v21, %v2710_v8  ;;  %v1839_v38 = vcombine.high %v1829_v49, %v1829_v49  ;;  %v1846_v57 = vrot.slane %v1829_v49, %v2710_v8 }
 0x694   :  { %v1733_v58 = vcombine.high %v1731_v50, %v1731_v50  ;;  %1748 = vst.msk [vmem:[%s2823_s14 + $0xa] sm:$0x3] %vm1742_vm10, %v1732_v52  ;;  %1749 = vst.msk [vmem:[%s2823_s14 + $0xc] sm:$0x3] %vm1742_vm10, %v1731_v50  ;;  %v1872_v25 = vcombine.high %v1870_v54, %v1870_v54 }
 0x695   :  { %1886 = vst.msk [vmem:[%s2824_s15 + $0xa] sm:$0x3] %vm1742_vm10, %v1871_v23  ;;  %1887 = vst.msk [vmem:[%s2824_s15 + $0xc] sm:$0x3] %vm1742_vm10, %v1870_v54  ;;  %v1714_v62 = vrot.slane %v1700_v40, %v2710_v8  ;;  %v1715_v28 = vcombine.high %v1707_v55, %v1707_v55  ;;  %v1853_v63 = vrot.slane %v1839_v38, %v2710_v8 }
 0x696   :  { %1743 = vst.msk [vmem:[%s2823_s14] sm:$0x3] %vm1742_vm10, %v1707_v55  ;;  %v1854_v1 = vcombine.high %v1846_v57, %v1846_v57  ;;  %1881 = vst.msk [vmem:[%s2824_s15] sm:$0x3] %vm1742_vm10, %v1846_v57 }
 0x697   :  { %1750 = vst.msk [vmem:[%s2823_s14 + $0xe] sm:$0x3] %vm1742_vm10, %v1733_v58  ;;  %1888 = vst.msk [vmem:[%s2824_s15 + $0xe] sm:$0x3] %vm1742_vm10, %v1872_v25  ;;  %v1716_v2 = vcombine.high %v1714_v62, %v1714_v62  ;;  %v1855_v3 = vcombine.high %v1853_v63, %v1853_v63 }
 0x698   :  { %1744 = vst.msk [vmem:[%s2823_s14 + $0x2] sm:$0x3] %vm1742_vm10, %v1715_v28  ;;  %1745 = vst.msk [vmem:[%s2823_s14 + $0x4] sm:$0x3] %vm1742_vm10, %v1714_v62 }
 0x699   :  { %1882 = vst.msk [vmem:[%s2824_s15 + $0x2] sm:$0x3] %vm1742_vm10, %v1854_v1  ;;  %1883 = vst.msk [vmem:[%s2824_s15 + $0x4] sm:$0x3] %vm1742_vm10, %v1853_v63 }
 0x69a   :  { %1746 = vst.msk [vmem:[%s2823_s14 + $0x6] sm:$0x3] %vm1742_vm10, %v1716_v2  ;;  %1884 = vst.msk [vmem:[%s2824_s15 + $0x6] sm:$0x3] %vm1742_vm10, %v1855_v3 }

</bundles_post_ra>
